<compile_context>
chip_gen: v7x
topology: tpu7x:2x2x1
jax: 0.10.0
libtpu: 0.0.40
codegen_flags: <defaults>
</compile_context>

<pallas_src>
import math

import jax
import jax.numpy as jnp
from jax.experimental import pallas as pl
from jax.experimental.pallas import tpu as pltpu


# ----------------------------- Pallas kernel --------------------------------
def _bilstm_layer_kernel(x_ref, len_ref, wih_ref, whh_ref, b_ref,
                         out_ref, hlast_ref, gin_sc):
    """One bidirectional LSTM layer over the full sequence (packed-seq semantics).

    x_ref     : (S*B, D)   time-major layer input, rows [t*B:(t+1)*B] == timestep t
    len_ref   : (B, 1)     int32 valid lengths per sequence
    wih_ref   : (D, 8H)    [W_ih_fwd^T | W_ih_rev^T], PyTorch gate order (i, f, g, o)
    whh_ref   : (2H, 8H)   block_diag(W_hh_fwd^T, W_hh_rev^T)
    b_ref     : (1, 8H)    [b_ih+b_hh fwd | b_ih+b_hh rev]
    out_ref   : (S, B, 2H) output; [..., :H] forward dir, [..., H:] reverse dir
    hlast_ref : (B, 2H)    final (length-frozen) hidden state [h_f | h_r]
    gin_sc    : (S*B, 8H)  VMEM scratch for the hoisted input projection
    """
    S, B, H2 = out_ref.shape
    H = H2 // 2
    G = 4 * H

    # Hoisted input projection: one big MXU matmul for all timesteps and both
    # directions; the bias is folded in here once (not per recurrence step).
    gin_sc[...] = (
        jnp.dot(x_ref[...], wih_ref[...], preferred_element_type=jnp.float32)
        + b_ref[...])

    whh = whh_ref[...]            # (2H, 8H), loaded once outside the time loop
    lengths = len_ref[...]        # (B, 1) int32
    zero = jnp.zeros((B, H), jnp.float32)

    h_f = zero
    c_f = zero
    h_r = zero
    c_r = zero

    def lstm_update(gates, c_prev):          # gates: (B, 4H), order (i, f, g, o)
        i = jax.nn.sigmoid(gates[:, 0:H])
        f = jax.nn.sigmoid(gates[:, H:2 * H])
        g = jnp.tanh(gates[:, 2 * H:3 * H])
        o = jax.nn.sigmoid(gates[:, 3 * H:4 * H])
        c_new = f * c_prev + i * g
        h_new = o * jnp.tanh(c_new)
        return h_new, c_new

    # Fully-unrolled in-kernel time loop (S is a small static shape). The forward
    # direction walks t = k while the reverse direction walks t = S-1-k; both
    # share ONE block-diagonal recurrent matmul per step.
    for k in range(S):
        t_r = S - 1 - k

        g_in_f = gin_sc[k * B:(k + 1) * B, 0:G]            # (B, 4H) fwd, time k
        g_in_r = gin_sc[t_r * B:(t_r + 1) * B, G:2 * G]    # (B, 4H) rev, time S-1-k

        h_cat = jnp.concatenate([h_f, h_r], axis=-1)       # (B, 2H)
        rec = jnp.dot(h_cat, whh, preferred_element_type=jnp.float32)  # (B, 8H)

        h_f_new, c_f_new = lstm_update(g_in_f + rec[:, 0:G], c_f)
        h_r_new, c_r_new = lstm_update(g_in_r + rec[:, G:2 * G], c_r)

        # pack_padded_sequence emulation: freeze state past each sequence length.
        valid_f = lengths > k                               # (B, 1) bool
        valid_r = lengths > t_r

        h_f = jnp.where(valid_f, h_f_new, h_f)
        c_f = jnp.where(valid_f, c_f_new, c_f)
        h_r = jnp.where(valid_r, h_r_new, h_r)
        c_r = jnp.where(valid_r, c_r_new, c_r)

        # pad_packed_sequence semantics: padded positions are zeros.
        out_ref[k, :, 0:H] = jnp.where(valid_f, h_f_new, zero)
        out_ref[t_r, :, H:2 * H] = jnp.where(valid_r, h_r_new, zero)

    # Final length-frozen states: h_f == output[b, len[b]-1, :H],
    # h_r == output[b, 0, H:]  -> consumed directly by the classification head.
    hlast_ref[:, 0:H] = h_f
    hlast_ref[:, H:2 * H] = h_r


# ------------------------- per-layer Pallas wrapper --------------------------
def bilstm_pallas_layer(x_tm, text_len, p_fwd, p_rev):
    """x_tm: (S, B, D) time-major input -> ((S, B, 2H) output, (B, 2H) h_last)."""
    S, B, D = x_tm.shape
    H = p_fwd["w_hh"].shape[1]

    # Stacked input weights / bias for both directions (gate order i, f, g, o).
    wih = jnp.concatenate([p_fwd["w_ih"].T, p_rev["w_ih"].T], axis=1)      # (D, 8H)
    bias = jnp.concatenate([p_fwd["b_ih"] + p_fwd["b_hh"],
                            p_rev["b_ih"] + p_rev["b_hh"]]).reshape(1, 8 * H)
    # Block-diagonal recurrent weight: one MXU matmul/step drives both directions.
    whh = jnp.zeros((2 * H, 8 * H), jnp.float32)
    whh = whh.at[:H, :4 * H].set(p_fwd["w_hh"].T)
    whh = whh.at[H:, 4 * H:].set(p_rev["w_hh"].T)

    x2d = x_tm.reshape(S * B, D)
    len_col = text_len.astype(jnp.int32).reshape(B, 1)

    out, h_last = pl.pallas_call(
        _bilstm_layer_kernel,
        out_shape=(jax.ShapeDtypeStruct((S, B, 2 * H), jnp.float32),
                   jax.ShapeDtypeStruct((B, 2 * H), jnp.float32)),
        grid_spec=pltpu.PrefetchScalarGridSpec(
            num_scalar_prefetch=0,
            grid=(1,),                       # single step: whole problem in VMEM
            in_specs=[
                pl.BlockSpec((S * B, D), lambda i: (0, 0)),
                pl.BlockSpec((B, 1), lambda i: (0, 0)),
                pl.BlockSpec((D, 8 * H), lambda i: (0, 0)),
                pl.BlockSpec((2 * H, 8 * H), lambda i: (0, 0)),
                pl.BlockSpec((1, 8 * H), lambda i: (0, 0)),
            ],
            out_specs=[
                pl.BlockSpec((S, B, 2 * H), lambda i: (0, 0, 0)),
                pl.BlockSpec((B, 2 * H), lambda i: (0, 0)),
            ],
            scratch_shapes=[pltpu.VMEM((S * B, 8 * H), jnp.float32)],
        ),
        compiler_params=pltpu.CompilerParams(
            dimension_semantics=("arbitrary",)),
    )(x2d, len_col, wih, whh, bias)
    return out, h_last


# ----------------------------- full forward ----------------------------------
def _forward_impl(text, text_len, params, num_layers, hidden, layer_fn):
    """Returns (text_out probabilities (B,), padded BiLSTM output (B, S, 2H))."""
    # nn.Embedding lookup (trivial XLA gather in the wrapper).
    x = jnp.take(params["embedding"], text, axis=0)          # (B, S, E)
    layer_in = jnp.transpose(x, (1, 0, 2))                   # (S, B, E) time-major
    h_last = None
    for layer in range(num_layers):
        p = params["lstm"][layer]
        layer_in, h_last = layer_fn(layer_in, text_len, p["fwd"], p["rev"])
    output = jnp.transpose(layer_in, (1, 0, 2))               # (B, S, 2H) batch-first

    # h_last == [output[b, text_len[b]-1, :H] | output[b, 0, H:]]  (frozen states),
    # so the PyTorch gather-and-concat reduces to using h_last directly.
    out_reduced = h_last
    # nn.Dropout: identity in eval mode.
    logits = out_reduced @ params["fc_w"].T + params["fc_b"]  # (B, 1)
    return jax.nn.sigmoid(jnp.squeeze(logits, axis=1)), output


def lstm_classification_forward(text, text_len, params, *, num_layers, hidden):
    return _forward_impl(text, text_len, params, num_layers, hidden,
                         bilstm_pallas_layer)[0]


# ----------------------------- parameter init --------------------------------
def init_params(key, vocab_size, emb_dim, hidden, num_layers):
    """Deterministic nn.LSTM-style init: U(-1/sqrt(H), 1/sqrt(H))."""
    params = {"lstm": []}
    key, ke = jax.random.split(key)
    params["embedding"] = jax.random.normal(ke, (vocab_size, emb_dim), jnp.float32)
    k = 1.0 / math.sqrt(hidden)
    for layer in range(num_layers):
        in_dim = emb_dim if layer == 0 else 2 * hidden
        dirs = {}
        for name in ("fwd", "rev"):
            key, k0, k1, k2, k3 = jax.random.split(key, 5)
            dirs[name] = {
                "w_ih": jax.random.uniform(k0, (4 * hidden, in_dim),
                                           jnp.float32, -k, k),
                "w_hh": jax.random.uniform(k1, (4 * hidden, hidden),
                                           jnp.float32, -k, k),
                "b_ih": jax.random.uniform(k2, (4 * hidden,), jnp.float32, -k, k),
                "b_hh": jax.random.uniform(k3, (4 * hidden,), jnp.float32, -k, k),
            }
        params["lstm"].append(dirs)
    key, kw, kb = jax.random.split(key, 3)
    kf = 1.0 / math.sqrt(2 * hidden)
    params["fc_w"] = jax.random.uniform(kw, (1, 2 * hidden), jnp.float32, -kf, kf)
    params["fc_b"] = jax.random.uniform(kb, (1,), jnp.float32, -kf, kf)
    return params


# ----------------------------- pure-JAX reference ----------------------------
def _ref_bilstm_layer(x_tm, text_len, p_fwd, p_rev):
    S, B, _ = x_tm.shape
    H = p_fwd["w_hh"].shape[1]
    t_idx = jnp.arange(S)
    valid = (t_idx[:, None] < text_len[None, :])[:, :, None]   # (S, B, 1)

    def run_dir(p, reverse):
        w_ih, w_hh = p["w_ih"], p["w_hh"]
        b = p["b_ih"] + p["b_hh"]

        def step(carry, inp):
            h, c = carry
            x_t, v = inp
            gates = x_t @ w_ih.T + h @ w_hh.T + b
            i = jax.nn.sigmoid(gates[:, 0:H])
            f = jax.nn.sigmoid(gates[:, H:2 * H])
            g = jnp.tanh(gates[:, 2 * H:3 * H])
            o = jax.nn.sigmoid(gates[:, 3 * H:4 * H])
            c_new = f * c + i * g
            h_new = o * jnp.tanh(c_new)
            h = jnp.where(v, h_new, h)
            c = jnp.where(v, c_new, c)
            return (h, c), jnp.where(v, h_new, 0.0)

        xs, vs = (x_tm[::-1], valid[::-1]) if reverse else (x_tm, valid)
        init = (jnp.zeros((B, H), jnp.float32), jnp.zeros((B, H), jnp.float32))
        (h_final, _), ys = jax.lax.scan(step, init, (xs, vs))
        return (ys[::-1] if reverse else ys), h_final

    ys_f, hf = run_dir(p_fwd, False)
    ys_r, hr = run_dir(p_rev, True)
    return (jnp.concatenate([ys_f, ys_r], axis=-1),
            jnp.concatenate([hf, hr], axis=-1))


# ------------------------------------ main ------------------------------------
if __name__ == "__main__":
    SEQ_LEN = 8        # args.seq_length (also the vocab size of nn.Embedding)
    EMB_DIM = 300      # nn.Embedding(..., 300) => args.input_size must be 300
    HIDDEN = 32        # args.dimension
    NUM_LAYERS = 2     # args.num_layers
    BATCH = 8

    key = jax.random.PRNGKey(0)
    kt, kl, kp = jax.random.split(key, 3)
    text = jax.random.randint(kt, (BATCH, SEQ_LEN), 0, SEQ_LEN, dtype=jnp.int32)
    text_len = jax.random.randint(kl, (BATCH,), 3, SEQ_LEN + 1, dtype=jnp.int32)
    params = init_params(kp, SEQ_LEN, EMB_DIM, HIDDEN, NUM_LAYERS)

    pallas_fwd = jax.jit(lambda t, l, p: _forward_impl(
        t, l, p, NUM_LAYERS, HIDDEN, bilstm_pallas_layer))
    ref_fwd = jax.jit(lambda t, l, p: _forward_impl(
        t, l, p, NUM_LAYERS, HIDDEN, _ref_bilstm_layer))

    probs, output = pallas_fwd(text, text_len, params)
    jax.block_until_ready((probs, output))

    assert probs.shape == (BATCH,)
    assert output.shape == (BATCH, SEQ_LEN, 2 * HIDDEN)

    ref_probs, ref_output = ref_fwd(text, text_len, params)
    assert jnp.allclose(output, ref_output, atol=2e-3, rtol=2e-3)
    assert jnp.allclose(probs, ref_probs, atol=2e-3, rtol=2e-3)

    # Extra check: the in-kernel h_last path must equal the literal PyTorch
    # gather  output[b, text_len[b]-1, :H] | output[b, 0, H:]  -> fc -> sigmoid.
    out_fwd = output[jnp.arange(BATCH), text_len - 1, :HIDDEN]
    out_rev = output[:, 0, HIDDEN:]
    lit = jnp.concatenate([out_fwd, out_rev], axis=1)
    lit_probs = jax.nn.sigmoid(
        jnp.squeeze(lit @ params["fc_w"].T + params["fc_b"], axis=1))
    assert jnp.allclose(probs, lit_probs, atol=2e-3, rtol=2e-3)

    print("KERNEL_OK")
</pallas_src>

<mosaic_0001>
module attributes {stable_mosaic.version = 11 : i64} {
  func.func @_bilstm_layer_kernel(%arg0: i32, %arg1: memref<64x64xf32, #tpu.memory_space<vmem>>, %arg2: memref<8x1xi32, #tpu.memory_space<vmem>>, %arg3: memref<64x256xf32, #tpu.memory_space<vmem>>, %arg4: memref<64x256xf32, #tpu.memory_space<vmem>>, %arg5: memref<1x256xf32, #tpu.memory_space<vmem>>, %arg6: memref<8x8x64xf32, #tpu.memory_space<vmem>>, %arg7: memref<8x64xf32, #tpu.memory_space<vmem>>, %arg8: memref<64x256xf32, #tpu.memory_space<vmem>>) attributes {dimension_semantics = [#tpu.dimension_semantics<arbitrary>], iteration_bounds = array<i64: 1>, scalar_prefetch = 0 : i64, scratch_operands = 1 : i64, tpu.core_type = #tpu.core_type<tc>, window_params = [{pipeline_mode = #tpu.pipeline_mode<synchronous>, transform_indices = @transform_0, window_bounds = array<i64: 64, 64>}, {pipeline_mode = #tpu.pipeline_mode<synchronous>, transform_indices = @transform_1, window_bounds = array<i64: 8, 1>}, {pipeline_mode = #tpu.pipeline_mode<synchronous>, transform_indices = @transform_2, window_bounds = array<i64: 64, 256>}, {pipeline_mode = #tpu.pipeline_mode<synchronous>, transform_indices = @transform_3, window_bounds = array<i64: 64, 256>}, {pipeline_mode = #tpu.pipeline_mode<synchronous>, transform_indices = @transform_4, window_bounds = array<i64: 1, 256>}, {pipeline_mode = #tpu.pipeline_mode<synchronous>, transform_indices = @transform_5, window_bounds = array<i64: 8, 8, 64>}, {pipeline_mode = #tpu.pipeline_mode<synchronous>, transform_indices = @transform_6, window_bounds = array<i64: 8, 64>}]} {
    %c0 = arith.constant 0 : index
    %c0_0 = arith.constant 0 : index
    %0 = vector.load %arg1[%c0, %c0_0] : memref<64x64xf32, #tpu.memory_space<vmem>>, vector<64x64xf32>
    %c0_1 = arith.constant 0 : index
    %c0_2 = arith.constant 0 : index
    %1 = vector.load %arg3[%c0_1, %c0_2] : memref<64x256xf32, #tpu.memory_space<vmem>>, vector<64x256xf32>
    %cst = arith.constant dense<0.000000e+00> : vector<64x256xf32>
    %2 = tpu.matmul %0, %1, %cst {dimension_numbers = #tpu.dot_dimension_numbers<[1], [0], [0], [1], [0, 0, 1, 1], [], []>} : vector<64x64xf32>, vector<64x256xf32>, vector<64x256xf32> -> vector<64x256xf32>
    %c0_3 = arith.constant 0 : index
    %c0_4 = arith.constant 0 : index
    %3 = vector.load %arg5[%c0_3, %c0_4] : memref<1x256xf32, #tpu.memory_space<vmem>>, vector<1x256xf32>
    %4 = vector.broadcast %3 : vector<1x256xf32> to vector<64x256xf32>
    %5 = arith.addf %2, %4 : vector<64x256xf32>
    %c0_5 = arith.constant 0 : index
    %c0_6 = arith.constant 0 : index
    %6 = vector.load %arg8[%c0_5, %c0_6] : memref<64x256xf32, #tpu.memory_space<vmem>>, vector<64x256xf32>
    tpu.vector_store %arg8[%c0_5, %c0_6], %5 {strides = array<i32>} : memref<64x256xf32, #tpu.memory_space<vmem>>, vector<64x256xf32>,
    %c0_7 = arith.constant 0 : index
    %c0_8 = arith.constant 0 : index
    %7 = vector.load %arg4[%c0_7, %c0_8] : memref<64x256xf32, #tpu.memory_space<vmem>>, vector<64x256xf32>
    %c0_9 = arith.constant 0 : index
    %c0_10 = arith.constant 0 : index
    %8 = vector.load %arg2[%c0_9, %c0_10] : memref<8x1xi32, #tpu.memory_space<vmem>>, vector<8x1xi32>
    %cst_11 = arith.constant 0.000000e+00 : f32
    %9 = vector.broadcast %cst_11 : f32 to vector<8x32xf32>
    %c0_12 = arith.constant 0 : index
    %c0_13 = arith.constant 0 : index
    %10 = vector.load %arg8[%c0_12, %c0_13] : memref<64x256xf32, #tpu.memory_space<vmem>>, vector<8x128xf32>
    %c56 = arith.constant 56 : index
    %c128 = arith.constant 128 : index
    %11 = vector.load %arg8[%c56, %c128] : memref<64x256xf32, #tpu.memory_space<vmem>>, vector<8x128xf32>
    %12 = tpu.concatenate %9, %9 in 1 : vector<8x32xf32>, vector<8x32xf32> -> vector<8x64xf32>
    %cst_14 = arith.constant dense<0.000000e+00> : vector<8x256xf32>
    %13 = tpu.matmul %12, %7, %cst_14 {dimension_numbers = #tpu.dot_dimension_numbers<[1], [0], [0], [1], [0, 0, 1, 1], [], []>} : vector<8x64xf32>, vector<64x256xf32>, vector<8x256xf32> -> vector<8x256xf32>
    %14 = vector.extract_strided_slice %13 {offsets = [0, 0], sizes = [8, 128], strides = [1, 1]} : vector<8x256xf32> to vector<8x128xf32>
    %15 = arith.addf %10, %14 : vector<8x128xf32>
    %16 = vector.extract_strided_slice %15 {offsets = [0, 0], sizes = [8, 32], strides = [1, 1]} : vector<8x128xf32> to vector<8x32xf32>
    %17 = arith.negf %16 : vector<8x32xf32>
    %18 = math.exp %17 : vector<8x32xf32>
    %cst_15 = arith.constant 1.000000e+00 : f32
    %19 = vector.broadcast %cst_15 : f32 to vector<8x32xf32>
    %20 = arith.addf %19, %18 : vector<8x32xf32>
    %21 = arith.divf %19, %20 : vector<8x32xf32>
    %22 = vector.extract_strided_slice %15 {offsets = [0, 32], sizes = [8, 32], strides = [1, 1]} : vector<8x128xf32> to vector<8x32xf32>
    %23 = arith.negf %22 : vector<8x32xf32>
    %24 = math.exp %23 : vector<8x32xf32>
    %cst_16 = arith.constant 1.000000e+00 : f32
    %25 = vector.broadcast %cst_16 : f32 to vector<8x32xf32>
    %26 = arith.addf %25, %24 : vector<8x32xf32>
    %27 = arith.divf %25, %26 : vector<8x32xf32>
    %28 = vector.extract_strided_slice %15 {offsets = [0, 64], sizes = [8, 32], strides = [1, 1]} : vector<8x128xf32> to vector<8x32xf32>
    %29 = math.tanh %28 : vector<8x32xf32>
    %30 = vector.extract_strided_slice %15 {offsets = [0, 96], sizes = [8, 32], strides = [1, 1]} : vector<8x128xf32> to vector<8x32xf32>
    %31 = arith.negf %30 : vector<8x32xf32>
    %32 = math.exp %31 : vector<8x32xf32>
    %cst_17 = arith.constant 1.000000e+00 : f32
    %33 = vector.broadcast %cst_17 : f32 to vector<8x32xf32>
    %34 = arith.addf %33, %32 : vector<8x32xf32>
    %35 = arith.divf %33, %34 : vector<8x32xf32>
    %36 = arith.mulf %27, %9 : vector<8x32xf32>
    %37 = arith.mulf %21, %29 : vector<8x32xf32>
    %38 = arith.addf %36, %37 : vector<8x32xf32>
    %39 = math.tanh %38 : vector<8x32xf32>
    %40 = arith.mulf %35, %39 : vector<8x32xf32>
    %41 = vector.extract_strided_slice %13 {offsets = [0, 128], sizes = [8, 128], strides = [1, 1]} : vector<8x256xf32> to vector<8x128xf32>
    %42 = arith.addf %11, %41 : vector<8x128xf32>
    %43 = vector.extract_strided_slice %42 {offsets = [0, 0], sizes = [8, 32], strides = [1, 1]} : vector<8x128xf32> to vector<8x32xf32>
    %44 = arith.negf %43 : vector<8x32xf32>
    %45 = math.exp %44 : vector<8x32xf32>
    %cst_18 = arith.constant 1.000000e+00 : f32
    %46 = vector.broadcast %cst_18 : f32 to vector<8x32xf32>
    %47 = arith.addf %46, %45 : vector<8x32xf32>
    %48 = arith.divf %46, %47 : vector<8x32xf32>
    %49 = vector.extract_strided_slice %42 {offsets = [0, 32], sizes = [8, 32], strides = [1, 1]} : vector<8x128xf32> to vector<8x32xf32>
    %50 = arith.negf %49 : vector<8x32xf32>
    %51 = math.exp %50 : vector<8x32xf32>
    %cst_19 = arith.constant 1.000000e+00 : f32
    %52 = vector.broadcast %cst_19 : f32 to vector<8x32xf32>
    %53 = arith.addf %52, %51 : vector<8x32xf32>
    %54 = arith.divf %52, %53 : vector<8x32xf32>
    %55 = vector.extract_strided_slice %42 {offsets = [0, 64], sizes = [8, 32], strides = [1, 1]} : vector<8x128xf32> to vector<8x32xf32>
    %56 = math.tanh %55 : vector<8x32xf32>
    %57 = vector.extract_strided_slice %42 {offsets = [0, 96], sizes = [8, 32], strides = [1, 1]} : vector<8x128xf32> to vector<8x32xf32>
    %58 = arith.negf %57 : vector<8x32xf32>
    %59 = math.exp %58 : vector<8x32xf32>
    %cst_20 = arith.constant 1.000000e+00 : f32
    %60 = vector.broadcast %cst_20 : f32 to vector<8x32xf32>
    %61 = arith.addf %60, %59 : vector<8x32xf32>
    %62 = arith.divf %60, %61 : vector<8x32xf32>
    %63 = arith.mulf %54, %9 : vector<8x32xf32>
    %64 = arith.mulf %48, %56 : vector<8x32xf32>
    %65 = arith.addf %63, %64 : vector<8x32xf32>
    %66 = math.tanh %65 : vector<8x32xf32>
    %67 = arith.mulf %62, %66 : vector<8x32xf32>
    %c0_i32 = arith.constant 0 : i32
    %68 = vector.broadcast %c0_i32 : i32 to vector<8x1xi32>
    %69 = arith.cmpi sgt, %8, %68 : vector<8x1xi32>
    %c7_i32 = arith.constant 7 : i32
    %70 = vector.broadcast %c7_i32 : i32 to vector<8x1xi32>
    %71 = arith.cmpi sgt, %8, %70 : vector<8x1xi32>
    %72 = vector.shape_cast %69 : vector<8x1xi1> to vector<8x1xi1>
    %73 = vector.broadcast %72 : vector<8x1xi1> to vector<8x32xi1>
    %74 = arith.select %73, %40, %9 : vector<8x32xi1>, vector<8x32xf32>
    %75 = vector.shape_cast %69 : vector<8x1xi1> to vector<8x1xi1>
    %76 = vector.broadcast %75 : vector<8x1xi1> to vector<8x32xi1>
    %77 = arith.select %76, %38, %9 : vector<8x32xi1>, vector<8x32xf32>
    %78 = vector.shape_cast %71 : vector<8x1xi1> to vector<8x1xi1>
    %79 = vector.broadcast %78 : vector<8x1xi1> to vector<8x32xi1>
    %80 = arith.select %79, %67, %9 : vector<8x32xi1>, vector<8x32xf32>
    %81 = vector.shape_cast %71 : vector<8x1xi1> to vector<8x1xi1>
    %82 = vector.broadcast %81 : vector<8x1xi1> to vector<8x32xi1>
    %83 = arith.select %82, %65, %9 : vector<8x32xi1>, vector<8x32xf32>
    %84 = vector.shape_cast %69 : vector<8x1xi1> to vector<8x1xi1>
    %85 = vector.broadcast %84 : vector<8x1xi1> to vector<8x32xi1>
    %86 = arith.select %85, %40, %9 : vector<8x32xi1>, vector<8x32xf32>
    %c0_21 = arith.constant 0 : index
    %c0_22 = arith.constant 0 : index
    %c0_23 = arith.constant 0 : index
    %87 = vector.load %arg6[%c0_21, %c0_22, %c0_23] : memref<8x8x64xf32, #tpu.memory_space<vmem>>, vector<1x8x32xf32>
    %88 = vector.shape_cast %87 : vector<1x8x32xf32> to vector<8x32xf32>
    %89 = vector.shape_cast %86 : vector<8x32xf32> to vector<1x8x32xf32>
    tpu.vector_store %arg6[%c0_21, %c0_22, %c0_23], %89 {strides = array<i32>} : memref<8x8x64xf32, #tpu.memory_space<vmem>>, vector<1x8x32xf32>,
    %90 = vector.shape_cast %71 : vector<8x1xi1> to vector<8x1xi1>
    %91 = vector.broadcast %90 : vector<8x1xi1> to vector<8x32xi1>
    %92 = arith.select %91, %67, %9 : vector<8x32xi1>, vector<8x32xf32>
    %c7 = arith.constant 7 : index
    %c0_24 = arith.constant 0 : index
    %c32 = arith.constant 32 : index
    %93 = vector.load %arg6[%c7, %c0_24, %c32] : memref<8x8x64xf32, #tpu.memory_space<vmem>>, vector<1x8x32xf32>
    %94 = vector.shape_cast %93 : vector<1x8x32xf32> to vector<8x32xf32>
    %95 = vector.shape_cast %92 : vector<8x32xf32> to vector<1x8x32xf32>
    tpu.vector_store %arg6[%c7, %c0_24, %c32], %95 {strides = array<i32>} : memref<8x8x64xf32, #tpu.memory_space<vmem>>, vector<1x8x32xf32>,
    %c8 = arith.constant 8 : index
    %c0_25 = arith.constant 0 : index
    %96 = vector.load %arg8[%c8, %c0_25] : memref<64x256xf32, #tpu.memory_space<vmem>>, vector<8x128xf32>
    %c48 = arith.constant 48 : index
    %c128_26 = arith.constant 128 : index
    %97 = vector.load %arg8[%c48, %c128_26] : memref<64x256xf32, #tpu.memory_space<vmem>>, vector<8x128xf32>
    %98 = tpu.concatenate %74, %80 in 1 : vector<8x32xf32>, vector<8x32xf32> -> vector<8x64xf32>
    %cst_27 = arith.constant dense<0.000000e+00> : vector<8x256xf32>
    %99 = tpu.matmul %98, %7, %cst_27 {dimension_numbers = #tpu.dot_dimension_numbers<[1], [0], [0], [1], [0, 0, 1, 1], [], []>} : vector<8x64xf32>, vector<64x256xf32>, vector<8x256xf32> -> vector<8x256xf32>
    %100 = vector.extract_strided_slice %99 {offsets = [0, 0], sizes = [8, 128], strides = [1, 1]} : vector<8x256xf32> to vector<8x128xf32>
    %101 = arith.addf %96, %100 : vector<8x128xf32>
    %102 = vector.extract_strided_slice %101 {offsets = [0, 0], sizes = [8, 32], strides = [1, 1]} : vector<8x128xf32> to vector<8x32xf32>
    %103 = arith.negf %102 : vector<8x32xf32>
    %104 = math.exp %103 : vector<8x32xf32>
    %cst_28 = arith.constant 1.000000e+00 : f32
    %105 = vector.broadcast %cst_28 : f32 to vector<8x32xf32>
    %106 = arith.addf %105, %104 : vector<8x32xf32>
    %107 = arith.divf %105, %106 : vector<8x32xf32>
    %108 = vector.extract_strided_slice %101 {offsets = [0, 32], sizes = [8, 32], strides = [1, 1]} : vector<8x128xf32> to vector<8x32xf32>
    %109 = arith.negf %108 : vector<8x32xf32>
    %110 = math.exp %109 : vector<8x32xf32>
    %cst_29 = arith.constant 1.000000e+00 : f32
    %111 = vector.broadcast %cst_29 : f32 to vector<8x32xf32>
    %112 = arith.addf %111, %110 : vector<8x32xf32>
    %113 = arith.divf %111, %112 : vector<8x32xf32>
    %114 = vector.extract_strided_slice %101 {offsets = [0, 64], sizes = [8, 32], strides = [1, 1]} : vector<8x128xf32> to vector<8x32xf32>
    %115 = math.tanh %114 : vector<8x32xf32>
    %116 = vector.extract_strided_slice %101 {offsets = [0, 96], sizes = [8, 32], strides = [1, 1]} : vector<8x128xf32> to vector<8x32xf32>
    %117 = arith.negf %116 : vector<8x32xf32>
    %118 = math.exp %117 : vector<8x32xf32>
    %cst_30 = arith.constant 1.000000e+00 : f32
    %119 = vector.broadcast %cst_30 : f32 to vector<8x32xf32>
    %120 = arith.addf %119, %118 : vector<8x32xf32>
    %121 = arith.divf %119, %120 : vector<8x32xf32>
    %122 = arith.mulf %113, %77 : vector<8x32xf32>
    %123 = arith.mulf %107, %115 : vector<8x32xf32>
    %124 = arith.addf %122, %123 : vector<8x32xf32>
    %125 = math.tanh %124 : vector<8x32xf32>
    %126 = arith.mulf %121, %125 : vector<8x32xf32>
    %127 = vector.extract_strided_slice %99 {offsets = [0, 128], sizes = [8, 128], strides = [1, 1]} : vector<8x256xf32> to vector<8x128xf32>
    %128 = arith.addf %97, %127 : vector<8x128xf32>
    %129 = vector.extract_strided_slice %128 {offsets = [0, 0], sizes = [8, 32], strides = [1, 1]} : vector<8x128xf32> to vector<8x32xf32>
    %130 = arith.negf %129 : vector<8x32xf32>
    %131 = math.exp %130 : vector<8x32xf32>
    %cst_31 = arith.constant 1.000000e+00 : f32
    %132 = vector.broadcast %cst_31 : f32 to vector<8x32xf32>
    %133 = arith.addf %132, %131 : vector<8x32xf32>
    %134 = arith.divf %132, %133 : vector<8x32xf32>
    %135 = vector.extract_strided_slice %128 {offsets = [0, 32], sizes = [8, 32], strides = [1, 1]} : vector<8x128xf32> to vector<8x32xf32>
    %136 = arith.negf %135 : vector<8x32xf32>
    %137 = math.exp %136 : vector<8x32xf32>
    %cst_32 = arith.constant 1.000000e+00 : f32
    %138 = vector.broadcast %cst_32 : f32 to vector<8x32xf32>
    %139 = arith.addf %138, %137 : vector<8x32xf32>
    %140 = arith.divf %138, %139 : vector<8x32xf32>
    %141 = vector.extract_strided_slice %128 {offsets = [0, 64], sizes = [8, 32], strides = [1, 1]} : vector<8x128xf32> to vector<8x32xf32>
    %142 = math.tanh %141 : vector<8x32xf32>
    %143 = vector.extract_strided_slice %128 {offsets = [0, 96], sizes = [8, 32], strides = [1, 1]} : vector<8x128xf32> to vector<8x32xf32>
    %144 = arith.negf %143 : vector<8x32xf32>
    %145 = math.exp %144 : vector<8x32xf32>
    %cst_33 = arith.constant 1.000000e+00 : f32
    %146 = vector.broadcast %cst_33 : f32 to vector<8x32xf32>
    %147 = arith.addf %146, %145 : vector<8x32xf32>
    %148 = arith.divf %146, %147 : vector<8x32xf32>
    %149 = arith.mulf %140, %83 : vector<8x32xf32>
    %150 = arith.mulf %134, %142 : vector<8x32xf32>
    %151 = arith.addf %149, %150 : vector<8x32xf32>
    %152 = math.tanh %151 : vector<8x32xf32>
    %153 = arith.mulf %148, %152 : vector<8x32xf32>
    %c1_i32 = arith.constant 1 : i32
    %154 = vector.broadcast %c1_i32 : i32 to vector<8x1xi32>
    %155 = arith.cmpi sgt, %8, %154 : vector<8x1xi32>
    %c6_i32 = arith.constant 6 : i32
    %156 = vector.broadcast %c6_i32 : i32 to vector<8x1xi32>
    %157 = arith.cmpi sgt, %8, %156 : vector<8x1xi32>
    %158 = vector.shape_cast %155 : vector<8x1xi1> to vector<8x1xi1>
    %159 = vector.broadcast %158 : vector<8x1xi1> to vector<8x32xi1>
    %160 = arith.select %159, %126, %74 : vector<8x32xi1>, vector<8x32xf32>
    %161 = vector.shape_cast %155 : vector<8x1xi1> to vector<8x1xi1>
    %162 = vector.broadcast %161 : vector<8x1xi1> to vector<8x32xi1>
    %163 = arith.select %162, %124, %77 : vector<8x32xi1>, vector<8x32xf32>
    %164 = vector.shape_cast %157 : vector<8x1xi1> to vector<8x1xi1>
    %165 = vector.broadcast %164 : vector<8x1xi1> to vector<8x32xi1>
    %166 = arith.select %165, %153, %80 : vector<8x32xi1>, vector<8x32xf32>
    %167 = vector.shape_cast %157 : vector<8x1xi1> to vector<8x1xi1>
    %168 = vector.broadcast %167 : vector<8x1xi1> to vector<8x32xi1>
    %169 = arith.select %168, %151, %83 : vector<8x32xi1>, vector<8x32xf32>
    %170 = vector.shape_cast %155 : vector<8x1xi1> to vector<8x1xi1>
    %171 = vector.broadcast %170 : vector<8x1xi1> to vector<8x32xi1>
    %172 = arith.select %171, %126, %9 : vector<8x32xi1>, vector<8x32xf32>
    %c1 = arith.constant 1 : index
    %c0_34 = arith.constant 0 : index
    %c0_35 = arith.constant 0 : index
    %173 = vector.load %arg6[%c1, %c0_34, %c0_35] : memref<8x8x64xf32, #tpu.memory_space<vmem>>, vector<1x8x32xf32>
    %174 = vector.shape_cast %173 : vector<1x8x32xf32> to vector<8x32xf32>
    %175 = vector.shape_cast %172 : vector<8x32xf32> to vector<1x8x32xf32>
    tpu.vector_store %arg6[%c1, %c0_34, %c0_35], %175 {strides = array<i32>} : memref<8x8x64xf32, #tpu.memory_space<vmem>>, vector<1x8x32xf32>,
    %176 = vector.shape_cast %157 : vector<8x1xi1> to vector<8x1xi1>
    %177 = vector.broadcast %176 : vector<8x1xi1> to vector<8x32xi1>
    %178 = arith.select %177, %153, %9 : vector<8x32xi1>, vector<8x32xf32>
    %c6 = arith.constant 6 : index
    %c0_36 = arith.constant 0 : index
    %c32_37 = arith.constant 32 : index
    %179 = vector.load %arg6[%c6, %c0_36, %c32_37] : memref<8x8x64xf32, #tpu.memory_space<vmem>>, vector<1x8x32xf32>
    %180 = vector.shape_cast %179 : vector<1x8x32xf32> to vector<8x32xf32>
    %181 = vector.shape_cast %178 : vector<8x32xf32> to vector<1x8x32xf32>
    tpu.vector_store %arg6[%c6, %c0_36, %c32_37], %181 {strides = array<i32>} : memref<8x8x64xf32, #tpu.memory_space<vmem>>, vector<1x8x32xf32>,
    %c16 = arith.constant 16 : index
    %c0_38 = arith.constant 0 : index
    %182 = vector.load %arg8[%c16, %c0_38] : memref<64x256xf32, #tpu.memory_space<vmem>>, vector<8x128xf32>
    %c40 = arith.constant 40 : index
    %c128_39 = arith.constant 128 : index
    %183 = vector.load %arg8[%c40, %c128_39] : memref<64x256xf32, #tpu.memory_space<vmem>>, vector<8x128xf32>
    %184 = tpu.concatenate %160, %166 in 1 : vector<8x32xf32>, vector<8x32xf32> -> vector<8x64xf32>
    %cst_40 = arith.constant dense<0.000000e+00> : vector<8x256xf32>
    %185 = tpu.matmul %184, %7, %cst_40 {dimension_numbers = #tpu.dot_dimension_numbers<[1], [0], [0], [1], [0, 0, 1, 1], [], []>} : vector<8x64xf32>, vector<64x256xf32>, vector<8x256xf32> -> vector<8x256xf32>
    %186 = vector.extract_strided_slice %185 {offsets = [0, 0], sizes = [8, 128], strides = [1, 1]} : vector<8x256xf32> to vector<8x128xf32>
    %187 = arith.addf %182, %186 : vector<8x128xf32>
    %188 = vector.extract_strided_slice %187 {offsets = [0, 0], sizes = [8, 32], strides = [1, 1]} : vector<8x128xf32> to vector<8x32xf32>
    %189 = arith.negf %188 : vector<8x32xf32>
    %190 = math.exp %189 : vector<8x32xf32>
    %cst_41 = arith.constant 1.000000e+00 : f32
    %191 = vector.broadcast %cst_41 : f32 to vector<8x32xf32>
    %192 = arith.addf %191, %190 : vector<8x32xf32>
    %193 = arith.divf %191, %192 : vector<8x32xf32>
    %194 = vector.extract_strided_slice %187 {offsets = [0, 32], sizes = [8, 32], strides = [1, 1]} : vector<8x128xf32> to vector<8x32xf32>
    %195 = arith.negf %194 : vector<8x32xf32>
    %196 = math.exp %195 : vector<8x32xf32>
    %cst_42 = arith.constant 1.000000e+00 : f32
    %197 = vector.broadcast %cst_42 : f32 to vector<8x32xf32>
    %198 = arith.addf %197, %196 : vector<8x32xf32>
    %199 = arith.divf %197, %198 : vector<8x32xf32>
    %200 = vector.extract_strided_slice %187 {offsets = [0, 64], sizes = [8, 32], strides = [1, 1]} : vector<8x128xf32> to vector<8x32xf32>
    %201 = math.tanh %200 : vector<8x32xf32>
    %202 = vector.extract_strided_slice %187 {offsets = [0, 96], sizes = [8, 32], strides = [1, 1]} : vector<8x128xf32> to vector<8x32xf32>
    %203 = arith.negf %202 : vector<8x32xf32>
    %204 = math.exp %203 : vector<8x32xf32>
    %cst_43 = arith.constant 1.000000e+00 : f32
    %205 = vector.broadcast %cst_43 : f32 to vector<8x32xf32>
    %206 = arith.addf %205, %204 : vector<8x32xf32>
    %207 = arith.divf %205, %206 : vector<8x32xf32>
    %208 = arith.mulf %199, %163 : vector<8x32xf32>
    %209 = arith.mulf %193, %201 : vector<8x32xf32>
    %210 = arith.addf %208, %209 : vector<8x32xf32>
    %211 = math.tanh %210 : vector<8x32xf32>
    %212 = arith.mulf %207, %211 : vector<8x32xf32>
    %213 = vector.extract_strided_slice %185 {offsets = [0, 128], sizes = [8, 128], strides = [1, 1]} : vector<8x256xf32> to vector<8x128xf32>
    %214 = arith.addf %183, %213 : vector<8x128xf32>
    %215 = vector.extract_strided_slice %214 {offsets = [0, 0], sizes = [8, 32], strides = [1, 1]} : vector<8x128xf32> to vector<8x32xf32>
    %216 = arith.negf %215 : vector<8x32xf32>
    %217 = math.exp %216 : vector<8x32xf32>
    %cst_44 = arith.constant 1.000000e+00 : f32
    %218 = vector.broadcast %cst_44 : f32 to vector<8x32xf32>
    %219 = arith.addf %218, %217 : vector<8x32xf32>
    %220 = arith.divf %218, %219 : vector<8x32xf32>
    %221 = vector.extract_strided_slice %214 {offsets = [0, 32], sizes = [8, 32], strides = [1, 1]} : vector<8x128xf32> to vector<8x32xf32>
    %222 = arith.negf %221 : vector<8x32xf32>
    %223 = math.exp %222 : vector<8x32xf32>
    %cst_45 = arith.constant 1.000000e+00 : f32
    %224 = vector.broadcast %cst_45 : f32 to vector<8x32xf32>
    %225 = arith.addf %224, %223 : vector<8x32xf32>
    %226 = arith.divf %224, %225 : vector<8x32xf32>
    %227 = vector.extract_strided_slice %214 {offsets = [0, 64], sizes = [8, 32], strides = [1, 1]} : vector<8x128xf32> to vector<8x32xf32>
    %228 = math.tanh %227 : vector<8x32xf32>
    %229 = vector.extract_strided_slice %214 {offsets = [0, 96], sizes = [8, 32], strides = [1, 1]} : vector<8x128xf32> to vector<8x32xf32>
    %230 = arith.negf %229 : vector<8x32xf32>
    %231 = math.exp %230 : vector<8x32xf32>
    %cst_46 = arith.constant 1.000000e+00 : f32
    %232 = vector.broadcast %cst_46 : f32 to vector<8x32xf32>
    %233 = arith.addf %232, %231 : vector<8x32xf32>
    %234 = arith.divf %232, %233 : vector<8x32xf32>
    %235 = arith.mulf %226, %169 : vector<8x32xf32>
    %236 = arith.mulf %220, %228 : vector<8x32xf32>
    %237 = arith.addf %235, %236 : vector<8x32xf32>
    %238 = math.tanh %237 : vector<8x32xf32>
    %239 = arith.mulf %234, %238 : vector<8x32xf32>
    %c2_i32 = arith.constant 2 : i32
    %240 = vector.broadcast %c2_i32 : i32 to vector<8x1xi32>
    %241 = arith.cmpi sgt, %8, %240 : vector<8x1xi32>
    %c5_i32 = arith.constant 5 : i32
    %242 = vector.broadcast %c5_i32 : i32 to vector<8x1xi32>
    %243 = arith.cmpi sgt, %8, %242 : vector<8x1xi32>
    %244 = vector.shape_cast %241 : vector<8x1xi1> to vector<8x1xi1>
    %245 = vector.broadcast %244 : vector<8x1xi1> to vector<8x32xi1>
    %246 = arith.select %245, %212, %160 : vector<8x32xi1>, vector<8x32xf32>
    %247 = vector.shape_cast %241 : vector<8x1xi1> to vector<8x1xi1>
    %248 = vector.broadcast %247 : vector<8x1xi1> to vector<8x32xi1>
    %249 = arith.select %248, %210, %163 : vector<8x32xi1>, vector<8x32xf32>
    %250 = vector.shape_cast %243 : vector<8x1xi1> to vector<8x1xi1>
    %251 = vector.broadcast %250 : vector<8x1xi1> to vector<8x32xi1>
    %252 = arith.select %251, %239, %166 : vector<8x32xi1>, vector<8x32xf32>
    %253 = vector.shape_cast %243 : vector<8x1xi1> to vector<8x1xi1>
    %254 = vector.broadcast %253 : vector<8x1xi1> to vector<8x32xi1>
    %255 = arith.select %254, %237, %169 : vector<8x32xi1>, vector<8x32xf32>
    %256 = vector.shape_cast %241 : vector<8x1xi1> to vector<8x1xi1>
    %257 = vector.broadcast %256 : vector<8x1xi1> to vector<8x32xi1>
    %258 = arith.select %257, %212, %9 : vector<8x32xi1>, vector<8x32xf32>
    %c2 = arith.constant 2 : index
    %c0_47 = arith.constant 0 : index
    %c0_48 = arith.constant 0 : index
    %259 = vector.load %arg6[%c2, %c0_47, %c0_48] : memref<8x8x64xf32, #tpu.memory_space<vmem>>, vector<1x8x32xf32>
    %260 = vector.shape_cast %259 : vector<1x8x32xf32> to vector<8x32xf32>
    %261 = vector.shape_cast %258 : vector<8x32xf32> to vector<1x8x32xf32>
    tpu.vector_store %arg6[%c2, %c0_47, %c0_48], %261 {strides = array<i32>} : memref<8x8x64xf32, #tpu.memory_space<vmem>>, vector<1x8x32xf32>,
    %262 = vector.shape_cast %243 : vector<8x1xi1> to vector<8x1xi1>
    %263 = vector.broadcast %262 : vector<8x1xi1> to vector<8x32xi1>
    %264 = arith.select %263, %239, %9 : vector<8x32xi1>, vector<8x32xf32>
    %c5 = arith.constant 5 : index
    %c0_49 = arith.constant 0 : index
    %c32_50 = arith.constant 32 : index
    %265 = vector.load %arg6[%c5, %c0_49, %c32_50] : memref<8x8x64xf32, #tpu.memory_space<vmem>>, vector<1x8x32xf32>
    %266 = vector.shape_cast %265 : vector<1x8x32xf32> to vector<8x32xf32>
    %267 = vector.shape_cast %264 : vector<8x32xf32> to vector<1x8x32xf32>
    tpu.vector_store %arg6[%c5, %c0_49, %c32_50], %267 {strides = array<i32>} : memref<8x8x64xf32, #tpu.memory_space<vmem>>, vector<1x8x32xf32>,
    %c24 = arith.constant 24 : index
    %c0_51 = arith.constant 0 : index
    %268 = vector.load %arg8[%c24, %c0_51] : memref<64x256xf32, #tpu.memory_space<vmem>>, vector<8x128xf32>
    %c32_52 = arith.constant 32 : index
    %c128_53 = arith.constant 128 : index
    %269 = vector.load %arg8[%c32_52, %c128_53] : memref<64x256xf32, #tpu.memory_space<vmem>>, vector<8x128xf32>
    %270 = tpu.concatenate %246, %252 in 1 : vector<8x32xf32>, vector<8x32xf32> -> vector<8x64xf32>
    %cst_54 = arith.constant dense<0.000000e+00> : vector<8x256xf32>
    %271 = tpu.matmul %270, %7, %cst_54 {dimension_numbers = #tpu.dot_dimension_numbers<[1], [0], [0], [1], [0, 0, 1, 1], [], []>} : vector<8x64xf32>, vector<64x256xf32>, vector<8x256xf32> -> vector<8x256xf32>
    %272 = vector.extract_strided_slice %271 {offsets = [0, 0], sizes = [8, 128], strides = [1, 1]} : vector<8x256xf32> to vector<8x128xf32>
    %273 = arith.addf %268, %272 : vector<8x128xf32>
    %274 = vector.extract_strided_slice %273 {offsets = [0, 0], sizes = [8, 32], strides = [1, 1]} : vector<8x128xf32> to vector<8x32xf32>
    %275 = arith.negf %274 : vector<8x32xf32>
    %276 = math.exp %275 : vector<8x32xf32>
    %cst_55 = arith.constant 1.000000e+00 : f32
    %277 = vector.broadcast %cst_55 : f32 to vector<8x32xf32>
    %278 = arith.addf %277, %276 : vector<8x32xf32>
    %279 = arith.divf %277, %278 : vector<8x32xf32>
    %280 = vector.extract_strided_slice %273 {offsets = [0, 32], sizes = [8, 32], strides = [1, 1]} : vector<8x128xf32> to vector<8x32xf32>
    %281 = arith.negf %280 : vector<8x32xf32>
    %282 = math.exp %281 : vector<8x32xf32>
    %cst_56 = arith.constant 1.000000e+00 : f32
    %283 = vector.broadcast %cst_56 : f32 to vector<8x32xf32>
    %284 = arith.addf %283, %282 : vector<8x32xf32>
    %285 = arith.divf %283, %284 : vector<8x32xf32>
    %286 = vector.extract_strided_slice %273 {offsets = [0, 64], sizes = [8, 32], strides = [1, 1]} : vector<8x128xf32> to vector<8x32xf32>
    %287 = math.tanh %286 : vector<8x32xf32>
    %288 = vector.extract_strided_slice %273 {offsets = [0, 96], sizes = [8, 32], strides = [1, 1]} : vector<8x128xf32> to vector<8x32xf32>
    %289 = arith.negf %288 : vector<8x32xf32>
    %290 = math.exp %289 : vector<8x32xf32>
    %cst_57 = arith.constant 1.000000e+00 : f32
    %291 = vector.broadcast %cst_57 : f32 to vector<8x32xf32>
    %292 = arith.addf %291, %290 : vector<8x32xf32>
    %293 = arith.divf %291, %292 : vector<8x32xf32>
    %294 = arith.mulf %285, %249 : vector<8x32xf32>
    %295 = arith.mulf %279, %287 : vector<8x32xf32>
    %296 = arith.addf %294, %295 : vector<8x32xf32>
    %297 = math.tanh %296 : vector<8x32xf32>
    %298 = arith.mulf %293, %297 : vector<8x32xf32>
    %299 = vector.extract_strided_slice %271 {offsets = [0, 128], sizes = [8, 128], strides = [1, 1]} : vector<8x256xf32> to vector<8x128xf32>
    %300 = arith.addf %269, %299 : vector<8x128xf32>
    %301 = vector.extract_strided_slice %300 {offsets = [0, 0], sizes = [8, 32], strides = [1, 1]} : vector<8x128xf32> to vector<8x32xf32>
    %302 = arith.negf %301 : vector<8x32xf32>
    %303 = math.exp %302 : vector<8x32xf32>
    %cst_58 = arith.constant 1.000000e+00 : f32
    %304 = vector.broadcast %cst_58 : f32 to vector<8x32xf32>
    %305 = arith.addf %304, %303 : vector<8x32xf32>
    %306 = arith.divf %304, %305 : vector<8x32xf32>
    %307 = vector.extract_strided_slice %300 {offsets = [0, 32], sizes = [8, 32], strides = [1, 1]} : vector<8x128xf32> to vector<8x32xf32>
    %308 = arith.negf %307 : vector<8x32xf32>
    %309 = math.exp %308 : vector<8x32xf32>
    %cst_59 = arith.constant 1.000000e+00 : f32
    %310 = vector.broadcast %cst_59 : f32 to vector<8x32xf32>
    %311 = arith.addf %310, %309 : vector<8x32xf32>
    %312 = arith.divf %310, %311 : vector<8x32xf32>
    %313 = vector.extract_strided_slice %300 {offsets = [0, 64], sizes = [8, 32], strides = [1, 1]} : vector<8x128xf32> to vector<8x32xf32>
    %314 = math.tanh %313 : vector<8x32xf32>
    %315 = vector.extract_strided_slice %300 {offsets = [0, 96], sizes = [8, 32], strides = [1, 1]} : vector<8x128xf32> to vector<8x32xf32>
    %316 = arith.negf %315 : vector<8x32xf32>
    %317 = math.exp %316 : vector<8x32xf32>
    %cst_60 = arith.constant 1.000000e+00 : f32
    %318 = vector.broadcast %cst_60 : f32 to vector<8x32xf32>
    %319 = arith.addf %318, %317 : vector<8x32xf32>
    %320 = arith.divf %318, %319 : vector<8x32xf32>
    %321 = arith.mulf %312, %255 : vector<8x32xf32>
    %322 = arith.mulf %306, %314 : vector<8x32xf32>
    %323 = arith.addf %321, %322 : vector<8x32xf32>
    %324 = math.tanh %323 : vector<8x32xf32>
    %325 = arith.mulf %320, %324 : vector<8x32xf32>
    %c3_i32 = arith.constant 3 : i32
    %326 = vector.broadcast %c3_i32 : i32 to vector<8x1xi32>
    %327 = arith.cmpi sgt, %8, %326 : vector<8x1xi32>
    %c4_i32 = arith.constant 4 : i32
    %328 = vector.broadcast %c4_i32 : i32 to vector<8x1xi32>
    %329 = arith.cmpi sgt, %8, %328 : vector<8x1xi32>
    %330 = vector.shape_cast %327 : vector<8x1xi1> to vector<8x1xi1>
    %331 = vector.broadcast %330 : vector<8x1xi1> to vector<8x32xi1>
    %332 = arith.select %331, %298, %246 : vector<8x32xi1>, vector<8x32xf32>
    %333 = vector.shape_cast %327 : vector<8x1xi1> to vector<8x1xi1>
    %334 = vector.broadcast %333 : vector<8x1xi1> to vector<8x32xi1>
    %335 = arith.select %334, %296, %249 : vector<8x32xi1>, vector<8x32xf32>
    %336 = vector.shape_cast %329 : vector<8x1xi1> to vector<8x1xi1>
    %337 = vector.broadcast %336 : vector<8x1xi1> to vector<8x32xi1>
    %338 = arith.select %337, %325, %252 : vector<8x32xi1>, vector<8x32xf32>
    %339 = vector.shape_cast %329 : vector<8x1xi1> to vector<8x1xi1>
    %340 = vector.broadcast %339 : vector<8x1xi1> to vector<8x32xi1>
    %341 = arith.select %340, %323, %255 : vector<8x32xi1>, vector<8x32xf32>
    %342 = vector.shape_cast %327 : vector<8x1xi1> to vector<8x1xi1>
    %343 = vector.broadcast %342 : vector<8x1xi1> to vector<8x32xi1>
    %344 = arith.select %343, %298, %9 : vector<8x32xi1>, vector<8x32xf32>
    %c3 = arith.constant 3 : index
    %c0_61 = arith.constant 0 : index
    %c0_62 = arith.constant 0 : index
    %345 = vector.load %arg6[%c3, %c0_61, %c0_62] : memref<8x8x64xf32, #tpu.memory_space<vmem>>, vector<1x8x32xf32>
    %346 = vector.shape_cast %345 : vector<1x8x32xf32> to vector<8x32xf32>
    %347 = vector.shape_cast %344 : vector<8x32xf32> to vector<1x8x32xf32>
    tpu.vector_store %arg6[%c3, %c0_61, %c0_62], %347 {strides = array<i32>} : memref<8x8x64xf32, #tpu.memory_space<vmem>>, vector<1x8x32xf32>,
    %348 = vector.shape_cast %329 : vector<8x1xi1> to vector<8x1xi1>
    %349 = vector.broadcast %348 : vector<8x1xi1> to vector<8x32xi1>
    %350 = arith.select %349, %325, %9 : vector<8x32xi1>, vector<8x32xf32>
    %c4 = arith.constant 4 : index
    %c0_63 = arith.constant 0 : index
    %c32_64 = arith.constant 32 : index
    %351 = vector.load %arg6[%c4, %c0_63, %c32_64] : memref<8x8x64xf32, #tpu.memory_space<vmem>>, vector<1x8x32xf32>
    %352 = vector.shape_cast %351 : vector<1x8x32xf32> to vector<8x32xf32>
    %353 = vector.shape_cast %350 : vector<8x32xf32> to vector<1x8x32xf32>
    tpu.vector_store %arg6[%c4, %c0_63, %c32_64], %353 {strides = array<i32>} : memref<8x8x64xf32, #tpu.memory_space<vmem>>, vector<1x8x32xf32>,
    %c32_65 = arith.constant 32 : index
    %c0_66 = arith.constant 0 : index
    %354 = vector.load %arg8[%c32_65, %c0_66] : memref<64x256xf32, #tpu.memory_space<vmem>>, vector<8x128xf32>
    %c24_67 = arith.constant 24 : index
    %c128_68 = arith.constant 128 : index
    %355 = vector.load %arg8[%c24_67, %c128_68] : memref<64x256xf32, #tpu.memory_space<vmem>>, vector<8x128xf32>
    %356 = tpu.concatenate %332, %338 in 1 : vector<8x32xf32>, vector<8x32xf32> -> vector<8x64xf32>
    %cst_69 = arith.constant dense<0.000000e+00> : vector<8x256xf32>
    %357 = tpu.matmul %356, %7, %cst_69 {dimension_numbers = #tpu.dot_dimension_numbers<[1], [0], [0], [1], [0, 0, 1, 1], [], []>} : vector<8x64xf32>, vector<64x256xf32>, vector<8x256xf32> -> vector<8x256xf32>
    %358 = vector.extract_strided_slice %357 {offsets = [0, 0], sizes = [8, 128], strides = [1, 1]} : vector<8x256xf32> to vector<8x128xf32>
    %359 = arith.addf %354, %358 : vector<8x128xf32>
    %360 = vector.extract_strided_slice %359 {offsets = [0, 0], sizes = [8, 32], strides = [1, 1]} : vector<8x128xf32> to vector<8x32xf32>
    %361 = arith.negf %360 : vector<8x32xf32>
    %362 = math.exp %361 : vector<8x32xf32>
    %cst_70 = arith.constant 1.000000e+00 : f32
    %363 = vector.broadcast %cst_70 : f32 to vector<8x32xf32>
    %364 = arith.addf %363, %362 : vector<8x32xf32>
    %365 = arith.divf %363, %364 : vector<8x32xf32>
    %366 = vector.extract_strided_slice %359 {offsets = [0, 32], sizes = [8, 32], strides = [1, 1]} : vector<8x128xf32> to vector<8x32xf32>
    %367 = arith.negf %366 : vector<8x32xf32>
    %368 = math.exp %367 : vector<8x32xf32>
    %cst_71 = arith.constant 1.000000e+00 : f32
    %369 = vector.broadcast %cst_71 : f32 to vector<8x32xf32>
    %370 = arith.addf %369, %368 : vector<8x32xf32>
    %371 = arith.divf %369, %370 : vector<8x32xf32>
    %372 = vector.extract_strided_slice %359 {offsets = [0, 64], sizes = [8, 32], strides = [1, 1]} : vector<8x128xf32> to vector<8x32xf32>
    %373 = math.tanh %372 : vector<8x32xf32>
    %374 = vector.extract_strided_slice %359 {offsets = [0, 96], sizes = [8, 32], strides = [1, 1]} : vector<8x128xf32> to vector<8x32xf32>
    %375 = arith.negf %374 : vector<8x32xf32>
    %376 = math.exp %375 : vector<8x32xf32>
    %cst_72 = arith.constant 1.000000e+00 : f32
    %377 = vector.broadcast %cst_72 : f32 to vector<8x32xf32>
    %378 = arith.addf %377, %376 : vector<8x32xf32>
    %379 = arith.divf %377, %378 : vector<8x32xf32>
    %380 = arith.mulf %371, %335 : vector<8x32xf32>
    %381 = arith.mulf %365, %373 : vector<8x32xf32>
    %382 = arith.addf %380, %381 : vector<8x32xf32>
    %383 = math.tanh %382 : vector<8x32xf32>
    %384 = arith.mulf %379, %383 : vector<8x32xf32>
    %385 = vector.extract_strided_slice %357 {offsets = [0, 128], sizes = [8, 128], strides = [1, 1]} : vector<8x256xf32> to vector<8x128xf32>
    %386 = arith.addf %355, %385 : vector<8x128xf32>
    %387 = vector.extract_strided_slice %386 {offsets = [0, 0], sizes = [8, 32], strides = [1, 1]} : vector<8x128xf32> to vector<8x32xf32>
    %388 = arith.negf %387 : vector<8x32xf32>
    %389 = math.exp %388 : vector<8x32xf32>
    %cst_73 = arith.constant 1.000000e+00 : f32
    %390 = vector.broadcast %cst_73 : f32 to vector<8x32xf32>
    %391 = arith.addf %390, %389 : vector<8x32xf32>
    %392 = arith.divf %390, %391 : vector<8x32xf32>
    %393 = vector.extract_strided_slice %386 {offsets = [0, 32], sizes = [8, 32], strides = [1, 1]} : vector<8x128xf32> to vector<8x32xf32>
    %394 = arith.negf %393 : vector<8x32xf32>
    %395 = math.exp %394 : vector<8x32xf32>
    %cst_74 = arith.constant 1.000000e+00 : f32
    %396 = vector.broadcast %cst_74 : f32 to vector<8x32xf32>
    %397 = arith.addf %396, %395 : vector<8x32xf32>
    %398 = arith.divf %396, %397 : vector<8x32xf32>
    %399 = vector.extract_strided_slice %386 {offsets = [0, 64], sizes = [8, 32], strides = [1, 1]} : vector<8x128xf32> to vector<8x32xf32>
    %400 = math.tanh %399 : vector<8x32xf32>
    %401 = vector.extract_strided_slice %386 {offsets = [0, 96], sizes = [8, 32], strides = [1, 1]} : vector<8x128xf32> to vector<8x32xf32>
    %402 = arith.negf %401 : vector<8x32xf32>
    %403 = math.exp %402 : vector<8x32xf32>
    %cst_75 = arith.constant 1.000000e+00 : f32
    %404 = vector.broadcast %cst_75 : f32 to vector<8x32xf32>
    %405 = arith.addf %404, %403 : vector<8x32xf32>
    %406 = arith.divf %404, %405 : vector<8x32xf32>
    %407 = arith.mulf %398, %341 : vector<8x32xf32>
    %408 = arith.mulf %392, %400 : vector<8x32xf32>
    %409 = arith.addf %407, %408 : vector<8x32xf32>
    %410 = math.tanh %409 : vector<8x32xf32>
    %411 = arith.mulf %406, %410 : vector<8x32xf32>
    %c4_i32_76 = arith.constant 4 : i32
    %412 = vector.broadcast %c4_i32_76 : i32 to vector<8x1xi32>
    %413 = arith.cmpi sgt, %8, %412 : vector<8x1xi32>
    %c3_i32_77 = arith.constant 3 : i32
    %414 = vector.broadcast %c3_i32_77 : i32 to vector<8x1xi32>
    %415 = arith.cmpi sgt, %8, %414 : vector<8x1xi32>
    %416 = vector.shape_cast %413 : vector<8x1xi1> to vector<8x1xi1>
    %417 = vector.broadcast %416 : vector<8x1xi1> to vector<8x32xi1>
    %418 = arith.select %417, %384, %332 : vector<8x32xi1>, vector<8x32xf32>
    %419 = vector.shape_cast %413 : vector<8x1xi1> to vector<8x1xi1>
    %420 = vector.broadcast %419 : vector<8x1xi1> to vector<8x32xi1>
    %421 = arith.select %420, %382, %335 : vector<8x32xi1>, vector<8x32xf32>
    %422 = vector.shape_cast %415 : vector<8x1xi1> to vector<8x1xi1>
    %423 = vector.broadcast %422 : vector<8x1xi1> to vector<8x32xi1>
    %424 = arith.select %423, %411, %338 : vector<8x32xi1>, vector<8x32xf32>
    %425 = vector.shape_cast %415 : vector<8x1xi1> to vector<8x1xi1>
    %426 = vector.broadcast %425 : vector<8x1xi1> to vector<8x32xi1>
    %427 = arith.select %426, %409, %341 : vector<8x32xi1>, vector<8x32xf32>
    %428 = vector.shape_cast %413 : vector<8x1xi1> to vector<8x1xi1>
    %429 = vector.broadcast %428 : vector<8x1xi1> to vector<8x32xi1>
    %430 = arith.select %429, %384, %9 : vector<8x32xi1>, vector<8x32xf32>
    %c4_78 = arith.constant 4 : index
    %c0_79 = arith.constant 0 : index
    %c0_80 = arith.constant 0 : index
    %431 = vector.load %arg6[%c4_78, %c0_79, %c0_80] : memref<8x8x64xf32, #tpu.memory_space<vmem>>, vector<1x8x32xf32>
    %432 = vector.shape_cast %431 : vector<1x8x32xf32> to vector<8x32xf32>
    %433 = vector.shape_cast %430 : vector<8x32xf32> to vector<1x8x32xf32>
    tpu.vector_store %arg6[%c4_78, %c0_79, %c0_80], %433 {strides = array<i32>} : memref<8x8x64xf32, #tpu.memory_space<vmem>>, vector<1x8x32xf32>,
    %434 = vector.shape_cast %415 : vector<8x1xi1> to vector<8x1xi1>
    %435 = vector.broadcast %434 : vector<8x1xi1> to vector<8x32xi1>
    %436 = arith.select %435, %411, %9 : vector<8x32xi1>, vector<8x32xf32>
    %c3_81 = arith.constant 3 : index
    %c0_82 = arith.constant 0 : index
    %c32_83 = arith.constant 32 : index
    %437 = vector.load %arg6[%c3_81, %c0_82, %c32_83] : memref<8x8x64xf32, #tpu.memory_space<vmem>>, vector<1x8x32xf32>
    %438 = vector.shape_cast %437 : vector<1x8x32xf32> to vector<8x32xf32>
    %439 = vector.shape_cast %436 : vector<8x32xf32> to vector<1x8x32xf32>
    tpu.vector_store %arg6[%c3_81, %c0_82, %c32_83], %439 {strides = array<i32>} : memref<8x8x64xf32, #tpu.memory_space<vmem>>, vector<1x8x32xf32>,
    %c40_84 = arith.constant 40 : index
    %c0_85 = arith.constant 0 : index
    %440 = vector.load %arg8[%c40_84, %c0_85] : memref<64x256xf32, #tpu.memory_space<vmem>>, vector<8x128xf32>
    %c16_86 = arith.constant 16 : index
    %c128_87 = arith.constant 128 : index
    %441 = vector.load %arg8[%c16_86, %c128_87] : memref<64x256xf32, #tpu.memory_space<vmem>>, vector<8x128xf32>
    %442 = tpu.concatenate %418, %424 in 1 : vector<8x32xf32>, vector<8x32xf32> -> vector<8x64xf32>
    %cst_88 = arith.constant dense<0.000000e+00> : vector<8x256xf32>
    %443 = tpu.matmul %442, %7, %cst_88 {dimension_numbers = #tpu.dot_dimension_numbers<[1], [0], [0], [1], [0, 0, 1, 1], [], []>} : vector<8x64xf32>, vector<64x256xf32>, vector<8x256xf32> -> vector<8x256xf32>
    %444 = vector.extract_strided_slice %443 {offsets = [0, 0], sizes = [8, 128], strides = [1, 1]} : vector<8x256xf32> to vector<8x128xf32>
    %445 = arith.addf %440, %444 : vector<8x128xf32>
    %446 = vector.extract_strided_slice %445 {offsets = [0, 0], sizes = [8, 32], strides = [1, 1]} : vector<8x128xf32> to vector<8x32xf32>
    %447 = arith.negf %446 : vector<8x32xf32>
    %448 = math.exp %447 : vector<8x32xf32>
    %cst_89 = arith.constant 1.000000e+00 : f32
    %449 = vector.broadcast %cst_89 : f32 to vector<8x32xf32>
    %450 = arith.addf %449, %448 : vector<8x32xf32>
    %451 = arith.divf %449, %450 : vector<8x32xf32>
    %452 = vector.extract_strided_slice %445 {offsets = [0, 32], sizes = [8, 32], strides = [1, 1]} : vector<8x128xf32> to vector<8x32xf32>
    %453 = arith.negf %452 : vector<8x32xf32>
    %454 = math.exp %453 : vector<8x32xf32>
    %cst_90 = arith.constant 1.000000e+00 : f32
    %455 = vector.broadcast %cst_90 : f32 to vector<8x32xf32>
    %456 = arith.addf %455, %454 : vector<8x32xf32>
    %457 = arith.divf %455, %456 : vector<8x32xf32>
    %458 = vector.extract_strided_slice %445 {offsets = [0, 64], sizes = [8, 32], strides = [1, 1]} : vector<8x128xf32> to vector<8x32xf32>
    %459 = math.tanh %458 : vector<8x32xf32>
    %460 = vector.extract_strided_slice %445 {offsets = [0, 96], sizes = [8, 32], strides = [1, 1]} : vector<8x128xf32> to vector<8x32xf32>
    %461 = arith.negf %460 : vector<8x32xf32>
    %462 = math.exp %461 : vector<8x32xf32>
    %cst_91 = arith.constant 1.000000e+00 : f32
    %463 = vector.broadcast %cst_91 : f32 to vector<8x32xf32>
    %464 = arith.addf %463, %462 : vector<8x32xf32>
    %465 = arith.divf %463, %464 : vector<8x32xf32>
    %466 = arith.mulf %457, %421 : vector<8x32xf32>
    %467 = arith.mulf %451, %459 : vector<8x32xf32>
    %468 = arith.addf %466, %467 : vector<8x32xf32>
    %469 = math.tanh %468 : vector<8x32xf32>
    %470 = arith.mulf %465, %469 : vector<8x32xf32>
    %471 = vector.extract_strided_slice %443 {offsets = [0, 128], sizes = [8, 128], strides = [1, 1]} : vector<8x256xf32> to vector<8x128xf32>
    %472 = arith.addf %441, %471 : vector<8x128xf32>
    %473 = vector.extract_strided_slice %472 {offsets = [0, 0], sizes = [8, 32], strides = [1, 1]} : vector<8x128xf32> to vector<8x32xf32>
    %474 = arith.negf %473 : vector<8x32xf32>
    %475 = math.exp %474 : vector<8x32xf32>
    %cst_92 = arith.constant 1.000000e+00 : f32
    %476 = vector.broadcast %cst_92 : f32 to vector<8x32xf32>
    %477 = arith.addf %476, %475 : vector<8x32xf32>
    %478 = arith.divf %476, %477 : vector<8x32xf32>
    %479 = vector.extract_strided_slice %472 {offsets = [0, 32], sizes = [8, 32], strides = [1, 1]} : vector<8x128xf32> to vector<8x32xf32>
    %480 = arith.negf %479 : vector<8x32xf32>
    %481 = math.exp %480 : vector<8x32xf32>
    %cst_93 = arith.constant 1.000000e+00 : f32
    %482 = vector.broadcast %cst_93 : f32 to vector<8x32xf32>
    %483 = arith.addf %482, %481 : vector<8x32xf32>
    %484 = arith.divf %482, %483 : vector<8x32xf32>
    %485 = vector.extract_strided_slice %472 {offsets = [0, 64], sizes = [8, 32], strides = [1, 1]} : vector<8x128xf32> to vector<8x32xf32>
    %486 = math.tanh %485 : vector<8x32xf32>
    %487 = vector.extract_strided_slice %472 {offsets = [0, 96], sizes = [8, 32], strides = [1, 1]} : vector<8x128xf32> to vector<8x32xf32>
    %488 = arith.negf %487 : vector<8x32xf32>
    %489 = math.exp %488 : vector<8x32xf32>
    %cst_94 = arith.constant 1.000000e+00 : f32
    %490 = vector.broadcast %cst_94 : f32 to vector<8x32xf32>
    %491 = arith.addf %490, %489 : vector<8x32xf32>
    %492 = arith.divf %490, %491 : vector<8x32xf32>
    %493 = arith.mulf %484, %427 : vector<8x32xf32>
    %494 = arith.mulf %478, %486 : vector<8x32xf32>
    %495 = arith.addf %493, %494 : vector<8x32xf32>
    %496 = math.tanh %495 : vector<8x32xf32>
    %497 = arith.mulf %492, %496 : vector<8x32xf32>
    %c5_i32_95 = arith.constant 5 : i32
    %498 = vector.broadcast %c5_i32_95 : i32 to vector<8x1xi32>
    %499 = arith.cmpi sgt, %8, %498 : vector<8x1xi32>
    %c2_i32_96 = arith.constant 2 : i32
    %500 = vector.broadcast %c2_i32_96 : i32 to vector<8x1xi32>
    %501 = arith.cmpi sgt, %8, %500 : vector<8x1xi32>
    %502 = vector.shape_cast %499 : vector<8x1xi1> to vector<8x1xi1>
    %503 = vector.broadcast %502 : vector<8x1xi1> to vector<8x32xi1>
    %504 = arith.select %503, %470, %418 : vector<8x32xi1>, vector<8x32xf32>
    %505 = vector.shape_cast %499 : vector<8x1xi1> to vector<8x1xi1>
    %506 = vector.broadcast %505 : vector<8x1xi1> to vector<8x32xi1>
    %507 = arith.select %506, %468, %421 : vector<8x32xi1>, vector<8x32xf32>
    %508 = vector.shape_cast %501 : vector<8x1xi1> to vector<8x1xi1>
    %509 = vector.broadcast %508 : vector<8x1xi1> to vector<8x32xi1>
    %510 = arith.select %509, %497, %424 : vector<8x32xi1>, vector<8x32xf32>
    %511 = vector.shape_cast %501 : vector<8x1xi1> to vector<8x1xi1>
    %512 = vector.broadcast %511 : vector<8x1xi1> to vector<8x32xi1>
    %513 = arith.select %512, %495, %427 : vector<8x32xi1>, vector<8x32xf32>
    %514 = vector.shape_cast %499 : vector<8x1xi1> to vector<8x1xi1>
    %515 = vector.broadcast %514 : vector<8x1xi1> to vector<8x32xi1>
    %516 = arith.select %515, %470, %9 : vector<8x32xi1>, vector<8x32xf32>
    %c5_97 = arith.constant 5 : index
    %c0_98 = arith.constant 0 : index
    %c0_99 = arith.constant 0 : index
    %517 = vector.load %arg6[%c5_97, %c0_98, %c0_99] : memref<8x8x64xf32, #tpu.memory_space<vmem>>, vector<1x8x32xf32>
    %518 = vector.shape_cast %517 : vector<1x8x32xf32> to vector<8x32xf32>
    %519 = vector.shape_cast %516 : vector<8x32xf32> to vector<1x8x32xf32>
    tpu.vector_store %arg6[%c5_97, %c0_98, %c0_99], %519 {strides = array<i32>} : memref<8x8x64xf32, #tpu.memory_space<vmem>>, vector<1x8x32xf32>,
    %520 = vector.shape_cast %501 : vector<8x1xi1> to vector<8x1xi1>
    %521 = vector.broadcast %520 : vector<8x1xi1> to vector<8x32xi1>
    %522 = arith.select %521, %497, %9 : vector<8x32xi1>, vector<8x32xf32>
    %c2_100 = arith.constant 2 : index
    %c0_101 = arith.constant 0 : index
    %c32_102 = arith.constant 32 : index
    %523 = vector.load %arg6[%c2_100, %c0_101, %c32_102] : memref<8x8x64xf32, #tpu.memory_space<vmem>>, vector<1x8x32xf32>
    %524 = vector.shape_cast %523 : vector<1x8x32xf32> to vector<8x32xf32>
    %525 = vector.shape_cast %522 : vector<8x32xf32> to vector<1x8x32xf32>
    tpu.vector_store %arg6[%c2_100, %c0_101, %c32_102], %525 {strides = array<i32>} : memref<8x8x64xf32, #tpu.memory_space<vmem>>, vector<1x8x32xf32>,
    %c48_103 = arith.constant 48 : index
    %c0_104 = arith.constant 0 : index
    %526 = vector.load %arg8[%c48_103, %c0_104] : memref<64x256xf32, #tpu.memory_space<vmem>>, vector<8x128xf32>
    %c8_105 = arith.constant 8 : index
    %c128_106 = arith.constant 128 : index
    %527 = vector.load %arg8[%c8_105, %c128_106] : memref<64x256xf32, #tpu.memory_space<vmem>>, vector<8x128xf32>
    %528 = tpu.concatenate %504, %510 in 1 : vector<8x32xf32>, vector<8x32xf32> -> vector<8x64xf32>
    %cst_107 = arith.constant dense<0.000000e+00> : vector<8x256xf32>
    %529 = tpu.matmul %528, %7, %cst_107 {dimension_numbers = #tpu.dot_dimension_numbers<[1], [0], [0], [1], [0, 0, 1, 1], [], []>} : vector<8x64xf32>, vector<64x256xf32>, vector<8x256xf32> -> vector<8x256xf32>
    %530 = vector.extract_strided_slice %529 {offsets = [0, 0], sizes = [8, 128], strides = [1, 1]} : vector<8x256xf32> to vector<8x128xf32>
    %531 = arith.addf %526, %530 : vector<8x128xf32>
    %532 = vector.extract_strided_slice %531 {offsets = [0, 0], sizes = [8, 32], strides = [1, 1]} : vector<8x128xf32> to vector<8x32xf32>
    %533 = arith.negf %532 : vector<8x32xf32>
    %534 = math.exp %533 : vector<8x32xf32>
    %cst_108 = arith.constant 1.000000e+00 : f32
    %535 = vector.broadcast %cst_108 : f32 to vector<8x32xf32>
    %536 = arith.addf %535, %534 : vector<8x32xf32>
    %537 = arith.divf %535, %536 : vector<8x32xf32>
    %538 = vector.extract_strided_slice %531 {offsets = [0, 32], sizes = [8, 32], strides = [1, 1]} : vector<8x128xf32> to vector<8x32xf32>
    %539 = arith.negf %538 : vector<8x32xf32>
    %540 = math.exp %539 : vector<8x32xf32>
    %cst_109 = arith.constant 1.000000e+00 : f32
    %541 = vector.broadcast %cst_109 : f32 to vector<8x32xf32>
    %542 = arith.addf %541, %540 : vector<8x32xf32>
    %543 = arith.divf %541, %542 : vector<8x32xf32>
    %544 = vector.extract_strided_slice %531 {offsets = [0, 64], sizes = [8, 32], strides = [1, 1]} : vector<8x128xf32> to vector<8x32xf32>
    %545 = math.tanh %544 : vector<8x32xf32>
    %546 = vector.extract_strided_slice %531 {offsets = [0, 96], sizes = [8, 32], strides = [1, 1]} : vector<8x128xf32> to vector<8x32xf32>
    %547 = arith.negf %546 : vector<8x32xf32>
    %548 = math.exp %547 : vector<8x32xf32>
    %cst_110 = arith.constant 1.000000e+00 : f32
    %549 = vector.broadcast %cst_110 : f32 to vector<8x32xf32>
    %550 = arith.addf %549, %548 : vector<8x32xf32>
    %551 = arith.divf %549, %550 : vector<8x32xf32>
    %552 = arith.mulf %543, %507 : vector<8x32xf32>
    %553 = arith.mulf %537, %545 : vector<8x32xf32>
    %554 = arith.addf %552, %553 : vector<8x32xf32>
    %555 = math.tanh %554 : vector<8x32xf32>
    %556 = arith.mulf %551, %555 : vector<8x32xf32>
    %557 = vector.extract_strided_slice %529 {offsets = [0, 128], sizes = [8, 128], strides = [1, 1]} : vector<8x256xf32> to vector<8x128xf32>
    %558 = arith.addf %527, %557 : vector<8x128xf32>
    %559 = vector.extract_strided_slice %558 {offsets = [0, 0], sizes = [8, 32], strides = [1, 1]} : vector<8x128xf32> to vector<8x32xf32>
    %560 = arith.negf %559 : vector<8x32xf32>
    %561 = math.exp %560 : vector<8x32xf32>
    %cst_111 = arith.constant 1.000000e+00 : f32
    %562 = vector.broadcast %cst_111 : f32 to vector<8x32xf32>
    %563 = arith.addf %562, %561 : vector<8x32xf32>
    %564 = arith.divf %562, %563 : vector<8x32xf32>
    %565 = vector.extract_strided_slice %558 {offsets = [0, 32], sizes = [8, 32], strides = [1, 1]} : vector<8x128xf32> to vector<8x32xf32>
    %566 = arith.negf %565 : vector<8x32xf32>
    %567 = math.exp %566 : vector<8x32xf32>
    %cst_112 = arith.constant 1.000000e+00 : f32
    %568 = vector.broadcast %cst_112 : f32 to vector<8x32xf32>
    %569 = arith.addf %568, %567 : vector<8x32xf32>
    %570 = arith.divf %568, %569 : vector<8x32xf32>
    %571 = vector.extract_strided_slice %558 {offsets = [0, 64], sizes = [8, 32], strides = [1, 1]} : vector<8x128xf32> to vector<8x32xf32>
    %572 = math.tanh %571 : vector<8x32xf32>
    %573 = vector.extract_strided_slice %558 {offsets = [0, 96], sizes = [8, 32], strides = [1, 1]} : vector<8x128xf32> to vector<8x32xf32>
    %574 = arith.negf %573 : vector<8x32xf32>
    %575 = math.exp %574 : vector<8x32xf32>
    %cst_113 = arith.constant 1.000000e+00 : f32
    %576 = vector.broadcast %cst_113 : f32 to vector<8x32xf32>
    %577 = arith.addf %576, %575 : vector<8x32xf32>
    %578 = arith.divf %576, %577 : vector<8x32xf32>
    %579 = arith.mulf %570, %513 : vector<8x32xf32>
    %580 = arith.mulf %564, %572 : vector<8x32xf32>
    %581 = arith.addf %579, %580 : vector<8x32xf32>
    %582 = math.tanh %581 : vector<8x32xf32>
    %583 = arith.mulf %578, %582 : vector<8x32xf32>
    %c6_i32_114 = arith.constant 6 : i32
    %584 = vector.broadcast %c6_i32_114 : i32 to vector<8x1xi32>
    %585 = arith.cmpi sgt, %8, %584 : vector<8x1xi32>
    %c1_i32_115 = arith.constant 1 : i32
    %586 = vector.broadcast %c1_i32_115 : i32 to vector<8x1xi32>
    %587 = arith.cmpi sgt, %8, %586 : vector<8x1xi32>
    %588 = vector.shape_cast %585 : vector<8x1xi1> to vector<8x1xi1>
    %589 = vector.broadcast %588 : vector<8x1xi1> to vector<8x32xi1>
    %590 = arith.select %589, %556, %504 : vector<8x32xi1>, vector<8x32xf32>
    %591 = vector.shape_cast %585 : vector<8x1xi1> to vector<8x1xi1>
    %592 = vector.broadcast %591 : vector<8x1xi1> to vector<8x32xi1>
    %593 = arith.select %592, %554, %507 : vector<8x32xi1>, vector<8x32xf32>
    %594 = vector.shape_cast %587 : vector<8x1xi1> to vector<8x1xi1>
    %595 = vector.broadcast %594 : vector<8x1xi1> to vector<8x32xi1>
    %596 = arith.select %595, %583, %510 : vector<8x32xi1>, vector<8x32xf32>
    %597 = vector.shape_cast %587 : vector<8x1xi1> to vector<8x1xi1>
    %598 = vector.broadcast %597 : vector<8x1xi1> to vector<8x32xi1>
    %599 = arith.select %598, %581, %513 : vector<8x32xi1>, vector<8x32xf32>
    %600 = vector.shape_cast %585 : vector<8x1xi1> to vector<8x1xi1>
    %601 = vector.broadcast %600 : vector<8x1xi1> to vector<8x32xi1>
    %602 = arith.select %601, %556, %9 : vector<8x32xi1>, vector<8x32xf32>
    %c6_116 = arith.constant 6 : index
    %c0_117 = arith.constant 0 : index
    %c0_118 = arith.constant 0 : index
    %603 = vector.load %arg6[%c6_116, %c0_117, %c0_118] : memref<8x8x64xf32, #tpu.memory_space<vmem>>, vector<1x8x32xf32>
    %604 = vector.shape_cast %603 : vector<1x8x32xf32> to vector<8x32xf32>
    %605 = vector.shape_cast %602 : vector<8x32xf32> to vector<1x8x32xf32>
    tpu.vector_store %arg6[%c6_116, %c0_117, %c0_118], %605 {strides = array<i32>} : memref<8x8x64xf32, #tpu.memory_space<vmem>>, vector<1x8x32xf32>,
    %606 = vector.shape_cast %587 : vector<8x1xi1> to vector<8x1xi1>
    %607 = vector.broadcast %606 : vector<8x1xi1> to vector<8x32xi1>
    %608 = arith.select %607, %583, %9 : vector<8x32xi1>, vector<8x32xf32>
    %c1_119 = arith.constant 1 : index
    %c0_120 = arith.constant 0 : index
    %c32_121 = arith.constant 32 : index
    %609 = vector.load %arg6[%c1_119, %c0_120, %c32_121] : memref<8x8x64xf32, #tpu.memory_space<vmem>>, vector<1x8x32xf32>
    %610 = vector.shape_cast %609 : vector<1x8x32xf32> to vector<8x32xf32>
    %611 = vector.shape_cast %608 : vector<8x32xf32> to vector<1x8x32xf32>
    tpu.vector_store %arg6[%c1_119, %c0_120, %c32_121], %611 {strides = array<i32>} : memref<8x8x64xf32, #tpu.memory_space<vmem>>, vector<1x8x32xf32>,
    %c56_122 = arith.constant 56 : index
    %c0_123 = arith.constant 0 : index
    %612 = vector.load %arg8[%c56_122, %c0_123] : memref<64x256xf32, #tpu.memory_space<vmem>>, vector<8x128xf32>
    %c0_124 = arith.constant 0 : index
    %c128_125 = arith.constant 128 : index
    %613 = vector.load %arg8[%c0_124, %c128_125] : memref<64x256xf32, #tpu.memory_space<vmem>>, vector<8x128xf32>
    %614 = tpu.concatenate %590, %596 in 1 : vector<8x32xf32>, vector<8x32xf32> -> vector<8x64xf32>
    %cst_126 = arith.constant dense<0.000000e+00> : vector<8x256xf32>
    %615 = tpu.matmul %614, %7, %cst_126 {dimension_numbers = #tpu.dot_dimension_numbers<[1], [0], [0], [1], [0, 0, 1, 1], [], []>} : vector<8x64xf32>, vector<64x256xf32>, vector<8x256xf32> -> vector<8x256xf32>
    %616 = vector.extract_strided_slice %615 {offsets = [0, 0], sizes = [8, 128], strides = [1, 1]} : vector<8x256xf32> to vector<8x128xf32>
    %617 = arith.addf %612, %616 : vector<8x128xf32>
    %618 = vector.extract_strided_slice %617 {offsets = [0, 0], sizes = [8, 32], strides = [1, 1]} : vector<8x128xf32> to vector<8x32xf32>
    %619 = arith.negf %618 : vector<8x32xf32>
    %620 = math.exp %619 : vector<8x32xf32>
    %cst_127 = arith.constant 1.000000e+00 : f32
    %621 = vector.broadcast %cst_127 : f32 to vector<8x32xf32>
    %622 = arith.addf %621, %620 : vector<8x32xf32>
    %623 = arith.divf %621, %622 : vector<8x32xf32>
    %624 = vector.extract_strided_slice %617 {offsets = [0, 32], sizes = [8, 32], strides = [1, 1]} : vector<8x128xf32> to vector<8x32xf32>
    %625 = arith.negf %624 : vector<8x32xf32>
    %626 = math.exp %625 : vector<8x32xf32>
    %cst_128 = arith.constant 1.000000e+00 : f32
    %627 = vector.broadcast %cst_128 : f32 to vector<8x32xf32>
    %628 = arith.addf %627, %626 : vector<8x32xf32>
    %629 = arith.divf %627, %628 : vector<8x32xf32>
    %630 = vector.extract_strided_slice %617 {offsets = [0, 64], sizes = [8, 32], strides = [1, 1]} : vector<8x128xf32> to vector<8x32xf32>
    %631 = math.tanh %630 : vector<8x32xf32>
    %632 = vector.extract_strided_slice %617 {offsets = [0, 96], sizes = [8, 32], strides = [1, 1]} : vector<8x128xf32> to vector<8x32xf32>
    %633 = arith.negf %632 : vector<8x32xf32>
    %634 = math.exp %633 : vector<8x32xf32>
    %cst_129 = arith.constant 1.000000e+00 : f32
    %635 = vector.broadcast %cst_129 : f32 to vector<8x32xf32>
    %636 = arith.addf %635, %634 : vector<8x32xf32>
    %637 = arith.divf %635, %636 : vector<8x32xf32>
    %638 = arith.mulf %629, %593 : vector<8x32xf32>
    %639 = arith.mulf %623, %631 : vector<8x32xf32>
    %640 = arith.addf %638, %639 : vector<8x32xf32>
    %641 = math.tanh %640 : vector<8x32xf32>
    %642 = arith.mulf %637, %641 : vector<8x32xf32>
    %643 = vector.extract_strided_slice %615 {offsets = [0, 128], sizes = [8, 128], strides = [1, 1]} : vector<8x256xf32> to vector<8x128xf32>
    %644 = arith.addf %613, %643 : vector<8x128xf32>
    %645 = vector.extract_strided_slice %644 {offsets = [0, 0], sizes = [8, 32], strides = [1, 1]} : vector<8x128xf32> to vector<8x32xf32>
    %646 = arith.negf %645 : vector<8x32xf32>
    %647 = math.exp %646 : vector<8x32xf32>
    %cst_130 = arith.constant 1.000000e+00 : f32
    %648 = vector.broadcast %cst_130 : f32 to vector<8x32xf32>
    %649 = arith.addf %648, %647 : vector<8x32xf32>
    %650 = arith.divf %648, %649 : vector<8x32xf32>
    %651 = vector.extract_strided_slice %644 {offsets = [0, 32], sizes = [8, 32], strides = [1, 1]} : vector<8x128xf32> to vector<8x32xf32>
    %652 = arith.negf %651 : vector<8x32xf32>
    %653 = math.exp %652 : vector<8x32xf32>
    %cst_131 = arith.constant 1.000000e+00 : f32
    %654 = vector.broadcast %cst_131 : f32 to vector<8x32xf32>
    %655 = arith.addf %654, %653 : vector<8x32xf32>
    %656 = arith.divf %654, %655 : vector<8x32xf32>
    %657 = vector.extract_strided_slice %644 {offsets = [0, 64], sizes = [8, 32], strides = [1, 1]} : vector<8x128xf32> to vector<8x32xf32>
    %658 = math.tanh %657 : vector<8x32xf32>
    %659 = vector.extract_strided_slice %644 {offsets = [0, 96], sizes = [8, 32], strides = [1, 1]} : vector<8x128xf32> to vector<8x32xf32>
    %660 = arith.negf %659 : vector<8x32xf32>
    %661 = math.exp %660 : vector<8x32xf32>
    %cst_132 = arith.constant 1.000000e+00 : f32
    %662 = vector.broadcast %cst_132 : f32 to vector<8x32xf32>
    %663 = arith.addf %662, %661 : vector<8x32xf32>
    %664 = arith.divf %662, %663 : vector<8x32xf32>
    %665 = arith.mulf %656, %599 : vector<8x32xf32>
    %666 = arith.mulf %650, %658 : vector<8x32xf32>
    %667 = arith.addf %665, %666 : vector<8x32xf32>
    %668 = math.tanh %667 : vector<8x32xf32>
    %669 = arith.mulf %664, %668 : vector<8x32xf32>
    %c7_i32_133 = arith.constant 7 : i32
    %670 = vector.broadcast %c7_i32_133 : i32 to vector<8x1xi32>
    %671 = arith.cmpi sgt, %8, %670 : vector<8x1xi32>
    %c0_i32_134 = arith.constant 0 : i32
    %672 = vector.broadcast %c0_i32_134 : i32 to vector<8x1xi32>
    %673 = arith.cmpi sgt, %8, %672 : vector<8x1xi32>
    %674 = vector.shape_cast %671 : vector<8x1xi1> to vector<8x1xi1>
    %675 = vector.broadcast %674 : vector<8x1xi1> to vector<8x32xi1>
    %676 = arith.select %675, %642, %590 : vector<8x32xi1>, vector<8x32xf32>
    %677 = vector.shape_cast %673 : vector<8x1xi1> to vector<8x1xi1>
    %678 = vector.broadcast %677 : vector<8x1xi1> to vector<8x32xi1>
    %679 = arith.select %678, %669, %596 : vector<8x32xi1>, vector<8x32xf32>
    %680 = vector.shape_cast %671 : vector<8x1xi1> to vector<8x1xi1>
    %681 = vector.broadcast %680 : vector<8x1xi1> to vector<8x32xi1>
    %682 = arith.select %681, %642, %9 : vector<8x32xi1>, vector<8x32xf32>
    %c7_135 = arith.constant 7 : index
    %c0_136 = arith.constant 0 : index
    %c0_137 = arith.constant 0 : index
    %683 = vector.load %arg6[%c7_135, %c0_136, %c0_137] : memref<8x8x64xf32, #tpu.memory_space<vmem>>, vector<1x8x32xf32>
    %684 = vector.shape_cast %683 : vector<1x8x32xf32> to vector<8x32xf32>
    %685 = vector.shape_cast %682 : vector<8x32xf32> to vector<1x8x32xf32>
    tpu.vector_store %arg6[%c7_135, %c0_136, %c0_137], %685 {strides = array<i32>} : memref<8x8x64xf32, #tpu.memory_space<vmem>>, vector<1x8x32xf32>,
    %686 = vector.shape_cast %673 : vector<8x1xi1> to vector<8x1xi1>
    %687 = vector.broadcast %686 : vector<8x1xi1> to vector<8x32xi1>
    %688 = arith.select %687, %669, %9 : vector<8x32xi1>, vector<8x32xf32>
    %c0_138 = arith.constant 0 : index
    %c0_139 = arith.constant 0 : index
    %c32_140 = arith.constant 32 : index
    %689 = vector.load %arg6[%c0_138, %c0_139, %c32_140] : memref<8x8x64xf32, #tpu.memory_space<vmem>>, vector<1x8x32xf32>
    %690 = vector.shape_cast %689 : vector<1x8x32xf32> to vector<8x32xf32>
    %691 = vector.shape_cast %688 : vector<8x32xf32> to vector<1x8x32xf32>
    tpu.vector_store %arg6[%c0_138, %c0_139, %c32_140], %691 {strides = array<i32>} : memref<8x8x64xf32, #tpu.memory_space<vmem>>, vector<1x8x32xf32>,
    %c0_141 = arith.constant 0 : index
    %c0_142 = arith.constant 0 : index
    %692 = vector.load %arg7[%c0_141, %c0_142] : memref<8x64xf32, #tpu.memory_space<vmem>>, vector<8x32xf32>
    tpu.vector_store %arg7[%c0_141, %c0_142], %676 {strides = array<i32>} : memref<8x64xf32, #tpu.memory_space<vmem>>, vector<8x32xf32>,
    %c0_143 = arith.constant 0 : index
    %c32_144 = arith.constant 32 : index
    %693 = vector.load %arg7[%c0_143, %c32_144] : memref<8x64xf32, #tpu.memory_space<vmem>>, vector<8x32xf32>
    tpu.vector_store %arg7[%c0_143, %c32_144], %679 {strides = array<i32>} : memref<8x64xf32, #tpu.memory_space<vmem>>, vector<8x32xf32>,
    return
  }
  func.func @transform_0(%arg0: i32) -> (i32, i32) {
    %c0_i32 = arith.constant 0 : i32
    %c0_i32_0 = arith.constant 0 : i32
    %c0_i32_1 = arith.constant 0 : i32
    return %c0_i32, %c0_i32_0 : i32, i32
  }
  func.func @transform_1(%arg0: i32) -> (i32, i32) {
    %c0_i32 = arith.constant 0 : i32
    %c0_i32_0 = arith.constant 0 : i32
    %c0_i32_1 = arith.constant 0 : i32
    return %c0_i32, %c0_i32_0 : i32, i32
  }
  func.func @transform_2(%arg0: i32) -> (i32, i32) {
    %c0_i32 = arith.constant 0 : i32
    %c0_i32_0 = arith.constant 0 : i32
    %c0_i32_1 = arith.constant 0 : i32
    return %c0_i32, %c0_i32_0 : i32, i32
  }
  func.func @transform_3(%arg0: i32) -> (i32, i32) {
    %c0_i32 = arith.constant 0 : i32
    %c0_i32_0 = arith.constant 0 : i32
    %c0_i32_1 = arith.constant 0 : i32
    return %c0_i32, %c0_i32_0 : i32, i32
  }
  func.func @transform_4(%arg0: i32) -> (i32, i32) {
    %c0_i32 = arith.constant 0 : i32
    %c0_i32_0 = arith.constant 0 : i32
    %c0_i32_1 = arith.constant 0 : i32
    return %c0_i32, %c0_i32_0 : i32, i32
  }
  func.func @transform_5(%arg0: i32) -> (i32, i32, i32) {
    %c0_i32 = arith.constant 0 : i32
    %c0_i32_0 = arith.constant 0 : i32
    %c0_i32_1 = arith.constant 0 : i32
    %c0_i32_2 = arith.constant 0 : i32
    return %c0_i32, %c0_i32_0, %c0_i32_1 : i32, i32, i32
  }
  func.func @transform_6(%arg0: i32) -> (i32, i32) {
    %c0_i32 = arith.constant 0 : i32
    %c0_i32_0 = arith.constant 0 : i32
    %c0_i32_1 = arith.constant 0 : i32
    return %c0_i32, %c0_i32_0 : i32, i32
  }
}

module attributes {stable_mosaic.version = 11 : i64} {
  func.func @_bilstm_layer_kernel(%arg0: i32, %arg1: memref<64x300xf32, #tpu.memory_space<vmem>>, %arg2: memref<8x1xi32, #tpu.memory_space<vmem>>, %arg3: memref<300x256xf32, #tpu.memory_space<vmem>>, %arg4: memref<64x256xf32, #tpu.memory_space<vmem>>, %arg5: memref<1x256xf32, #tpu.memory_space<vmem>>, %arg6: memref<8x8x64xf32, #tpu.memory_space<vmem>>, %arg7: memref<8x64xf32, #tpu.memory_space<vmem>>, %arg8: memref<64x256xf32, #tpu.memory_space<vmem>>) attributes {dimension_semantics = [#tpu.dimension_semantics<arbitrary>], iteration_bounds = array<i64: 1>, scalar_prefetch = 0 : i64, scratch_operands = 1 : i64, tpu.core_type = #tpu.core_type<tc>, window_params = [{pipeline_mode = #tpu.pipeline_mode<synchronous>, transform_indices = @transform_0, window_bounds = array<i64: 64, 300>}, {pipeline_mode = #tpu.pipeline_mode<synchronous>, transform_indices = @transform_1, window_bounds = array<i64: 8, 1>}, {pipeline_mode = #tpu.pipeline_mode<synchronous>, transform_indices = @transform_2, window_bounds = array<i64: 300, 256>}, {pipeline_mode = #tpu.pipeline_mode<synchronous>, transform_indices = @transform_3, window_bounds = array<i64: 64, 256>}, {pipeline_mode = #tpu.pipeline_mode<synchronous>, transform_indices = @transform_4, window_bounds = array<i64: 1, 256>}, {pipeline_mode = #tpu.pipeline_mode<synchronous>, transform_indices = @transform_5, window_bounds = array<i64: 8, 8, 64>}, {pipeline_mode = #tpu.pipeline_mode<synchronous>, transform_indices = @transform_6, window_bounds = array<i64: 8, 64>}]} {
    %c0 = arith.constant 0 : index
    %c0_0 = arith.constant 0 : index
    %0 = vector.load %arg1[%c0, %c0_0] : memref<64x300xf32, #tpu.memory_space<vmem>>, vector<64x300xf32>
    %c0_1 = arith.constant 0 : index
    %c0_2 = arith.constant 0 : index
    %1 = vector.load %arg3[%c0_1, %c0_2] : memref<300x256xf32, #tpu.memory_space<vmem>>, vector<300x256xf32>
    %cst = arith.constant dense<0.000000e+00> : vector<64x256xf32>
    %2 = tpu.matmul %0, %1, %cst {dimension_numbers = #tpu.dot_dimension_numbers<[1], [0], [0], [1], [0, 0, 1, 1], [], []>} : vector<64x300xf32>, vector<300x256xf32>, vector<64x256xf32> -> vector<64x256xf32>
    %c0_3 = arith.constant 0 : index
    %c0_4 = arith.constant 0 : index
    %3 = vector.load %arg5[%c0_3, %c0_4] : memref<1x256xf32, #tpu.memory_space<vmem>>, vector<1x256xf32>
    %4 = vector.broadcast %3 : vector<1x256xf32> to vector<64x256xf32>
    %5 = arith.addf %2, %4 : vector<64x256xf32>
    %c0_5 = arith.constant 0 : index
    %c0_6 = arith.constant 0 : index
    %6 = vector.load %arg8[%c0_5, %c0_6] : memref<64x256xf32, #tpu.memory_space<vmem>>, vector<64x256xf32>
    tpu.vector_store %arg8[%c0_5, %c0_6], %5 {strides = array<i32>} : memref<64x256xf32, #tpu.memory_space<vmem>>, vector<64x256xf32>,
    %c0_7 = arith.constant 0 : index
    %c0_8 = arith.constant 0 : index
    %7 = vector.load %arg4[%c0_7, %c0_8] : memref<64x256xf32, #tpu.memory_space<vmem>>, vector<64x256xf32>
    %c0_9 = arith.constant 0 : index
    %c0_10 = arith.constant 0 : index
    %8 = vector.load %arg2[%c0_9, %c0_10] : memref<8x1xi32, #tpu.memory_space<vmem>>, vector<8x1xi32>
    %cst_11 = arith.constant 0.000000e+00 : f32
    %9 = vector.broadcast %cst_11 : f32 to vector<8x32xf32>
    %c0_12 = arith.constant 0 : index
    %c0_13 = arith.constant 0 : index
    %10 = vector.load %arg8[%c0_12, %c0_13] : memref<64x256xf32, #tpu.memory_space<vmem>>, vector<8x128xf32>
    %c56 = arith.constant 56 : index
    %c128 = arith.constant 128 : index
    %11 = vector.load %arg8[%c56, %c128] : memref<64x256xf32, #tpu.memory_space<vmem>>, vector<8x128xf32>
    %12 = tpu.concatenate %9, %9 in 1 : vector<8x32xf32>, vector<8x32xf32> -> vector<8x64xf32>
    %cst_14 = arith.constant dense<0.000000e+00> : vector<8x256xf32>
    %13 = tpu.matmul %12, %7, %cst_14 {dimension_numbers = #tpu.dot_dimension_numbers<[1], [0], [0], [1], [0, 0, 1, 1], [], []>} : vector<8x64xf32>, vector<64x256xf32>, vector<8x256xf32> -> vector<8x256xf32>
    %14 = vector.extract_strided_slice %13 {offsets = [0, 0], sizes = [8, 128], strides = [1, 1]} : vector<8x256xf32> to vector<8x128xf32>
    %15 = arith.addf %10, %14 : vector<8x128xf32>
    %16 = vector.extract_strided_slice %15 {offsets = [0, 0], sizes = [8, 32], strides = [1, 1]} : vector<8x128xf32> to vector<8x32xf32>
    %17 = arith.negf %16 : vector<8x32xf32>
    %18 = math.exp %17 : vector<8x32xf32>
    %cst_15 = arith.constant 1.000000e+00 : f32
    %19 = vector.broadcast %cst_15 : f32 to vector<8x32xf32>
    %20 = arith.addf %19, %18 : vector<8x32xf32>
    %21 = arith.divf %19, %20 : vector<8x32xf32>
    %22 = vector.extract_strided_slice %15 {offsets = [0, 32], sizes = [8, 32], strides = [1, 1]} : vector<8x128xf32> to vector<8x32xf32>
    %23 = arith.negf %22 : vector<8x32xf32>
    %24 = math.exp %23 : vector<8x32xf32>
    %cst_16 = arith.constant 1.000000e+00 : f32
    %25 = vector.broadcast %cst_16 : f32 to vector<8x32xf32>
    %26 = arith.addf %25, %24 : vector<8x32xf32>
    %27 = arith.divf %25, %26 : vector<8x32xf32>
    %28 = vector.extract_strided_slice %15 {offsets = [0, 64], sizes = [8, 32], strides = [1, 1]} : vector<8x128xf32> to vector<8x32xf32>
    %29 = math.tanh %28 : vector<8x32xf32>
    %30 = vector.extract_strided_slice %15 {offsets = [0, 96], sizes = [8, 32], strides = [1, 1]} : vector<8x128xf32> to vector<8x32xf32>
    %31 = arith.negf %30 : vector<8x32xf32>
    %32 = math.exp %31 : vector<8x32xf32>
    %cst_17 = arith.constant 1.000000e+00 : f32
    %33 = vector.broadcast %cst_17 : f32 to vector<8x32xf32>
    %34 = arith.addf %33, %32 : vector<8x32xf32>
    %35 = arith.divf %33, %34 : vector<8x32xf32>
    %36 = arith.mulf %27, %9 : vector<8x32xf32>
    %37 = arith.mulf %21, %29 : vector<8x32xf32>
    %38 = arith.addf %36, %37 : vector<8x32xf32>
    %39 = math.tanh %38 : vector<8x32xf32>
    %40 = arith.mulf %35, %39 : vector<8x32xf32>
    %41 = vector.extract_strided_slice %13 {offsets = [0, 128], sizes = [8, 128], strides = [1, 1]} : vector<8x256xf32> to vector<8x128xf32>
    %42 = arith.addf %11, %41 : vector<8x128xf32>
    %43 = vector.extract_strided_slice %42 {offsets = [0, 0], sizes = [8, 32], strides = [1, 1]} : vector<8x128xf32> to vector<8x32xf32>
    %44 = arith.negf %43 : vector<8x32xf32>
    %45 = math.exp %44 : vector<8x32xf32>
    %cst_18 = arith.constant 1.000000e+00 : f32
    %46 = vector.broadcast %cst_18 : f32 to vector<8x32xf32>
    %47 = arith.addf %46, %45 : vector<8x32xf32>
    %48 = arith.divf %46, %47 : vector<8x32xf32>
    %49 = vector.extract_strided_slice %42 {offsets = [0, 32], sizes = [8, 32], strides = [1, 1]} : vector<8x128xf32> to vector<8x32xf32>
    %50 = arith.negf %49 : vector<8x32xf32>
    %51 = math.exp %50 : vector<8x32xf32>
    %cst_19 = arith.constant 1.000000e+00 : f32
    %52 = vector.broadcast %cst_19 : f32 to vector<8x32xf32>
    %53 = arith.addf %52, %51 : vector<8x32xf32>
    %54 = arith.divf %52, %53 : vector<8x32xf32>
    %55 = vector.extract_strided_slice %42 {offsets = [0, 64], sizes = [8, 32], strides = [1, 1]} : vector<8x128xf32> to vector<8x32xf32>
    %56 = math.tanh %55 : vector<8x32xf32>
    %57 = vector.extract_strided_slice %42 {offsets = [0, 96], sizes = [8, 32], strides = [1, 1]} : vector<8x128xf32> to vector<8x32xf32>
    %58 = arith.negf %57 : vector<8x32xf32>
    %59 = math.exp %58 : vector<8x32xf32>
    %cst_20 = arith.constant 1.000000e+00 : f32
    %60 = vector.broadcast %cst_20 : f32 to vector<8x32xf32>
    %61 = arith.addf %60, %59 : vector<8x32xf32>
    %62 = arith.divf %60, %61 : vector<8x32xf32>
    %63 = arith.mulf %54, %9 : vector<8x32xf32>
    %64 = arith.mulf %48, %56 : vector<8x32xf32>
    %65 = arith.addf %63, %64 : vector<8x32xf32>
    %66 = math.tanh %65 : vector<8x32xf32>
    %67 = arith.mulf %62, %66 : vector<8x32xf32>
    %c0_i32 = arith.constant 0 : i32
    %68 = vector.broadcast %c0_i32 : i32 to vector<8x1xi32>
    %69 = arith.cmpi sgt, %8, %68 : vector<8x1xi32>
    %c7_i32 = arith.constant 7 : i32
    %70 = vector.broadcast %c7_i32 : i32 to vector<8x1xi32>
    %71 = arith.cmpi sgt, %8, %70 : vector<8x1xi32>
    %72 = vector.shape_cast %69 : vector<8x1xi1> to vector<8x1xi1>
    %73 = vector.broadcast %72 : vector<8x1xi1> to vector<8x32xi1>
    %74 = arith.select %73, %40, %9 : vector<8x32xi1>, vector<8x32xf32>
    %75 = vector.shape_cast %69 : vector<8x1xi1> to vector<8x1xi1>
    %76 = vector.broadcast %75 : vector<8x1xi1> to vector<8x32xi1>
    %77 = arith.select %76, %38, %9 : vector<8x32xi1>, vector<8x32xf32>
    %78 = vector.shape_cast %71 : vector<8x1xi1> to vector<8x1xi1>
    %79 = vector.broadcast %78 : vector<8x1xi1> to vector<8x32xi1>
    %80 = arith.select %79, %67, %9 : vector<8x32xi1>, vector<8x32xf32>
    %81 = vector.shape_cast %71 : vector<8x1xi1> to vector<8x1xi1>
    %82 = vector.broadcast %81 : vector<8x1xi1> to vector<8x32xi1>
    %83 = arith.select %82, %65, %9 : vector<8x32xi1>, vector<8x32xf32>
    %84 = vector.shape_cast %69 : vector<8x1xi1> to vector<8x1xi1>
    %85 = vector.broadcast %84 : vector<8x1xi1> to vector<8x32xi1>
    %86 = arith.select %85, %40, %9 : vector<8x32xi1>, vector<8x32xf32>
    %c0_21 = arith.constant 0 : index
    %c0_22 = arith.constant 0 : index
    %c0_23 = arith.constant 0 : index
    %87 = vector.load %arg6[%c0_21, %c0_22, %c0_23] : memref<8x8x64xf32, #tpu.memory_space<vmem>>, vector<1x8x32xf32>
    %88 = vector.shape_cast %87 : vector<1x8x32xf32> to vector<8x32xf32>
    %89 = vector.shape_cast %86 : vector<8x32xf32> to vector<1x8x32xf32>
    tpu.vector_store %arg6[%c0_21, %c0_22, %c0_23], %89 {strides = array<i32>} : memref<8x8x64xf32, #tpu.memory_space<vmem>>, vector<1x8x32xf32>,
    %90 = vector.shape_cast %71 : vector<8x1xi1> to vector<8x1xi1>
    %91 = vector.broadcast %90 : vector<8x1xi1> to vector<8x32xi1>
    %92 = arith.select %91, %67, %9 : vector<8x32xi1>, vector<8x32xf32>
    %c7 = arith.constant 7 : index
    %c0_24 = arith.constant 0 : index
    %c32 = arith.constant 32 : index
    %93 = vector.load %arg6[%c7, %c0_24, %c32] : memref<8x8x64xf32, #tpu.memory_space<vmem>>, vector<1x8x32xf32>
    %94 = vector.shape_cast %93 : vector<1x8x32xf32> to vector<8x32xf32>
    %95 = vector.shape_cast %92 : vector<8x32xf32> to vector<1x8x32xf32>
    tpu.vector_store %arg6[%c7, %c0_24, %c32], %95 {strides = array<i32>} : memref<8x8x64xf32, #tpu.memory_space<vmem>>, vector<1x8x32xf32>,
    %c8 = arith.constant 8 : index
    %c0_25 = arith.constant 0 : index
    %96 = vector.load %arg8[%c8, %c0_25] : memref<64x256xf32, #tpu.memory_space<vmem>>, vector<8x128xf32>
    %c48 = arith.constant 48 : index
    %c128_26 = arith.constant 128 : index
    %97 = vector.load %arg8[%c48, %c128_26] : memref<64x256xf32, #tpu.memory_space<vmem>>, vector<8x128xf32>
    %98 = tpu.concatenate %74, %80 in 1 : vector<8x32xf32>, vector<8x32xf32> -> vector<8x64xf32>
    %cst_27 = arith.constant dense<0.000000e+00> : vector<8x256xf32>
    %99 = tpu.matmul %98, %7, %cst_27 {dimension_numbers = #tpu.dot_dimension_numbers<[1], [0], [0], [1], [0, 0, 1, 1], [], []>} : vector<8x64xf32>, vector<64x256xf32>, vector<8x256xf32> -> vector<8x256xf32>
    %100 = vector.extract_strided_slice %99 {offsets = [0, 0], sizes = [8, 128], strides = [1, 1]} : vector<8x256xf32> to vector<8x128xf32>
    %101 = arith.addf %96, %100 : vector<8x128xf32>
    %102 = vector.extract_strided_slice %101 {offsets = [0, 0], sizes = [8, 32], strides = [1, 1]} : vector<8x128xf32> to vector<8x32xf32>
    %103 = arith.negf %102 : vector<8x32xf32>
    %104 = math.exp %103 : vector<8x32xf32>
    %cst_28 = arith.constant 1.000000e+00 : f32
    %105 = vector.broadcast %cst_28 : f32 to vector<8x32xf32>
    %106 = arith.addf %105, %104 : vector<8x32xf32>
    %107 = arith.divf %105, %106 : vector<8x32xf32>
    %108 = vector.extract_strided_slice %101 {offsets = [0, 32], sizes = [8, 32], strides = [1, 1]} : vector<8x128xf32> to vector<8x32xf32>
    %109 = arith.negf %108 : vector<8x32xf32>
    %110 = math.exp %109 : vector<8x32xf32>
    %cst_29 = arith.constant 1.000000e+00 : f32
    %111 = vector.broadcast %cst_29 : f32 to vector<8x32xf32>
    %112 = arith.addf %111, %110 : vector<8x32xf32>
    %113 = arith.divf %111, %112 : vector<8x32xf32>
    %114 = vector.extract_strided_slice %101 {offsets = [0, 64], sizes = [8, 32], strides = [1, 1]} : vector<8x128xf32> to vector<8x32xf32>
    %115 = math.tanh %114 : vector<8x32xf32>
    %116 = vector.extract_strided_slice %101 {offsets = [0, 96], sizes = [8, 32], strides = [1, 1]} : vector<8x128xf32> to vector<8x32xf32>
    %117 = arith.negf %116 : vector<8x32xf32>
    %118 = math.exp %117 : vector<8x32xf32>
    %cst_30 = arith.constant 1.000000e+00 : f32
    %119 = vector.broadcast %cst_30 : f32 to vector<8x32xf32>
    %120 = arith.addf %119, %118 : vector<8x32xf32>
    %121 = arith.divf %119, %120 : vector<8x32xf32>
    %122 = arith.mulf %113, %77 : vector<8x32xf32>
    %123 = arith.mulf %107, %115 : vector<8x32xf32>
    %124 = arith.addf %122, %123 : vector<8x32xf32>
    %125 = math.tanh %124 : vector<8x32xf32>
    %126 = arith.mulf %121, %125 : vector<8x32xf32>
    %127 = vector.extract_strided_slice %99 {offsets = [0, 128], sizes = [8, 128], strides = [1, 1]} : vector<8x256xf32> to vector<8x128xf32>
    %128 = arith.addf %97, %127 : vector<8x128xf32>
    %129 = vector.extract_strided_slice %128 {offsets = [0, 0], sizes = [8, 32], strides = [1, 1]} : vector<8x128xf32> to vector<8x32xf32>
    %130 = arith.negf %129 : vector<8x32xf32>
    %131 = math.exp %130 : vector<8x32xf32>
    %cst_31 = arith.constant 1.000000e+00 : f32
    %132 = vector.broadcast %cst_31 : f32 to vector<8x32xf32>
    %133 = arith.addf %132, %131 : vector<8x32xf32>
    %134 = arith.divf %132, %133 : vector<8x32xf32>
    %135 = vector.extract_strided_slice %128 {offsets = [0, 32], sizes = [8, 32], strides = [1, 1]} : vector<8x128xf32> to vector<8x32xf32>
    %136 = arith.negf %135 : vector<8x32xf32>
    %137 = math.exp %136 : vector<8x32xf32>
    %cst_32 = arith.constant 1.000000e+00 : f32
    %138 = vector.broadcast %cst_32 : f32 to vector<8x32xf32>
    %139 = arith.addf %138, %137 : vector<8x32xf32>
    %140 = arith.divf %138, %139 : vector<8x32xf32>
    %141 = vector.extract_strided_slice %128 {offsets = [0, 64], sizes = [8, 32], strides = [1, 1]} : vector<8x128xf32> to vector<8x32xf32>
    %142 = math.tanh %141 : vector<8x32xf32>
    %143 = vector.extract_strided_slice %128 {offsets = [0, 96], sizes = [8, 32], strides = [1, 1]} : vector<8x128xf32> to vector<8x32xf32>
    %144 = arith.negf %143 : vector<8x32xf32>
    %145 = math.exp %144 : vector<8x32xf32>
    %cst_33 = arith.constant 1.000000e+00 : f32
    %146 = vector.broadcast %cst_33 : f32 to vector<8x32xf32>
    %147 = arith.addf %146, %145 : vector<8x32xf32>
    %148 = arith.divf %146, %147 : vector<8x32xf32>
    %149 = arith.mulf %140, %83 : vector<8x32xf32>
    %150 = arith.mulf %134, %142 : vector<8x32xf32>
    %151 = arith.addf %149, %150 : vector<8x32xf32>
    %152 = math.tanh %151 : vector<8x32xf32>
    %153 = arith.mulf %148, %152 : vector<8x32xf32>
    %c1_i32 = arith.constant 1 : i32
    %154 = vector.broadcast %c1_i32 : i32 to vector<8x1xi32>
    %155 = arith.cmpi sgt, %8, %154 : vector<8x1xi32>
    %c6_i32 = arith.constant 6 : i32
    %156 = vector.broadcast %c6_i32 : i32 to vector<8x1xi32>
    %157 = arith.cmpi sgt, %8, %156 : vector<8x1xi32>
    %158 = vector.shape_cast %155 : vector<8x1xi1> to vector<8x1xi1>
    %159 = vector.broadcast %158 : vector<8x1xi1> to vector<8x32xi1>
    %160 = arith.select %159, %126, %74 : vector<8x32xi1>, vector<8x32xf32>
    %161 = vector.shape_cast %155 : vector<8x1xi1> to vector<8x1xi1>
    %162 = vector.broadcast %161 : vector<8x1xi1> to vector<8x32xi1>
    %163 = arith.select %162, %124, %77 : vector<8x32xi1>, vector<8x32xf32>
    %164 = vector.shape_cast %157 : vector<8x1xi1> to vector<8x1xi1>
    %165 = vector.broadcast %164 : vector<8x1xi1> to vector<8x32xi1>
    %166 = arith.select %165, %153, %80 : vector<8x32xi1>, vector<8x32xf32>
    %167 = vector.shape_cast %157 : vector<8x1xi1> to vector<8x1xi1>
    %168 = vector.broadcast %167 : vector<8x1xi1> to vector<8x32xi1>
    %169 = arith.select %168, %151, %83 : vector<8x32xi1>, vector<8x32xf32>
    %170 = vector.shape_cast %155 : vector<8x1xi1> to vector<8x1xi1>
    %171 = vector.broadcast %170 : vector<8x1xi1> to vector<8x32xi1>
    %172 = arith.select %171, %126, %9 : vector<8x32xi1>, vector<8x32xf32>
    %c1 = arith.constant 1 : index
    %c0_34 = arith.constant 0 : index
    %c0_35 = arith.constant 0 : index
    %173 = vector.load %arg6[%c1, %c0_34, %c0_35] : memref<8x8x64xf32, #tpu.memory_space<vmem>>, vector<1x8x32xf32>
    %174 = vector.shape_cast %173 : vector<1x8x32xf32> to vector<8x32xf32>
    %175 = vector.shape_cast %172 : vector<8x32xf32> to vector<1x8x32xf32>
    tpu.vector_store %arg6[%c1, %c0_34, %c0_35], %175 {strides = array<i32>} : memref<8x8x64xf32, #tpu.memory_space<vmem>>, vector<1x8x32xf32>,
    %176 = vector.shape_cast %157 : vector<8x1xi1> to vector<8x1xi1>
    %177 = vector.broadcast %176 : vector<8x1xi1> to vector<8x32xi1>
    %178 = arith.select %177, %153, %9 : vector<8x32xi1>, vector<8x32xf32>
    %c6 = arith.constant 6 : index
    %c0_36 = arith.constant 0 : index
    %c32_37 = arith.constant 32 : index
    %179 = vector.load %arg6[%c6, %c0_36, %c32_37] : memref<8x8x64xf32, #tpu.memory_space<vmem>>, vector<1x8x32xf32>
    %180 = vector.shape_cast %179 : vector<1x8x32xf32> to vector<8x32xf32>
    %181 = vector.shape_cast %178 : vector<8x32xf32> to vector<1x8x32xf32>
    tpu.vector_store %arg6[%c6, %c0_36, %c32_37], %181 {strides = array<i32>} : memref<8x8x64xf32, #tpu.memory_space<vmem>>, vector<1x8x32xf32>,
    %c16 = arith.constant 16 : index
    %c0_38 = arith.constant 0 : index
    %182 = vector.load %arg8[%c16, %c0_38] : memref<64x256xf32, #tpu.memory_space<vmem>>, vector<8x128xf32>
    %c40 = arith.constant 40 : index
    %c128_39 = arith.constant 128 : index
    %183 = vector.load %arg8[%c40, %c128_39] : memref<64x256xf32, #tpu.memory_space<vmem>>, vector<8x128xf32>
    %184 = tpu.concatenate %160, %166 in 1 : vector<8x32xf32>, vector<8x32xf32> -> vector<8x64xf32>
    %cst_40 = arith.constant dense<0.000000e+00> : vector<8x256xf32>
    %185 = tpu.matmul %184, %7, %cst_40 {dimension_numbers = #tpu.dot_dimension_numbers<[1], [0], [0], [1], [0, 0, 1, 1], [], []>} : vector<8x64xf32>, vector<64x256xf32>, vector<8x256xf32> -> vector<8x256xf32>
    %186 = vector.extract_strided_slice %185 {offsets = [0, 0], sizes = [8, 128], strides = [1, 1]} : vector<8x256xf32> to vector<8x128xf32>
    %187 = arith.addf %182, %186 : vector<8x128xf32>
    %188 = vector.extract_strided_slice %187 {offsets = [0, 0], sizes = [8, 32], strides = [1, 1]} : vector<8x128xf32> to vector<8x32xf32>
    %189 = arith.negf %188 : vector<8x32xf32>
    %190 = math.exp %189 : vector<8x32xf32>
    %cst_41 = arith.constant 1.000000e+00 : f32
    %191 = vector.broadcast %cst_41 : f32 to vector<8x32xf32>
    %192 = arith.addf %191, %190 : vector<8x32xf32>
    %193 = arith.divf %191, %192 : vector<8x32xf32>
    %194 = vector.extract_strided_slice %187 {offsets = [0, 32], sizes = [8, 32], strides = [1, 1]} : vector<8x128xf32> to vector<8x32xf32>
    %195 = arith.negf %194 : vector<8x32xf32>
    %196 = math.exp %195 : vector<8x32xf32>
    %cst_42 = arith.constant 1.000000e+00 : f32
    %197 = vector.broadcast %cst_42 : f32 to vector<8x32xf32>
    %198 = arith.addf %197, %196 : vector<8x32xf32>
    %199 = arith.divf %197, %198 : vector<8x32xf32>
    %200 = vector.extract_strided_slice %187 {offsets = [0, 64], sizes = [8, 32], strides = [1, 1]} : vector<8x128xf32> to vector<8x32xf32>
    %201 = math.tanh %200 : vector<8x32xf32>
    %202 = vector.extract_strided_slice %187 {offsets = [0, 96], sizes = [8, 32], strides = [1, 1]} : vector<8x128xf32> to vector<8x32xf32>
    %203 = arith.negf %202 : vector<8x32xf32>
    %204 = math.exp %203 : vector<8x32xf32>
    %cst_43 = arith.constant 1.000000e+00 : f32
    %205 = vector.broadcast %cst_43 : f32 to vector<8x32xf32>
    %206 = arith.addf %205, %204 : vector<8x32xf32>
    %207 = arith.divf %205, %206 : vector<8x32xf32>
    %208 = arith.mulf %199, %163 : vector<8x32xf32>
    %209 = arith.mulf %193, %201 : vector<8x32xf32>
    %210 = arith.addf %208, %209 : vector<8x32xf32>
    %211 = math.tanh %210 : vector<8x32xf32>
    %212 = arith.mulf %207, %211 : vector<8x32xf32>
    %213 = vector.extract_strided_slice %185 {offsets = [0, 128], sizes = [8, 128], strides = [1, 1]} : vector<8x256xf32> to vector<8x128xf32>
    %214 = arith.addf %183, %213 : vector<8x128xf32>
    %215 = vector.extract_strided_slice %214 {offsets = [0, 0], sizes = [8, 32], strides = [1, 1]} : vector<8x128xf32> to vector<8x32xf32>
    %216 = arith.negf %215 : vector<8x32xf32>
    %217 = math.exp %216 : vector<8x32xf32>
    %cst_44 = arith.constant 1.000000e+00 : f32
    %218 = vector.broadcast %cst_44 : f32 to vector<8x32xf32>
    %219 = arith.addf %218, %217 : vector<8x32xf32>
    %220 = arith.divf %218, %219 : vector<8x32xf32>
    %221 = vector.extract_strided_slice %214 {offsets = [0, 32], sizes = [8, 32], strides = [1, 1]} : vector<8x128xf32> to vector<8x32xf32>
    %222 = arith.negf %221 : vector<8x32xf32>
    %223 = math.exp %222 : vector<8x32xf32>
    %cst_45 = arith.constant 1.000000e+00 : f32
    %224 = vector.broadcast %cst_45 : f32 to vector<8x32xf32>
    %225 = arith.addf %224, %223 : vector<8x32xf32>
    %226 = arith.divf %224, %225 : vector<8x32xf32>
    %227 = vector.extract_strided_slice %214 {offsets = [0, 64], sizes = [8, 32], strides = [1, 1]} : vector<8x128xf32> to vector<8x32xf32>
    %228 = math.tanh %227 : vector<8x32xf32>
    %229 = vector.extract_strided_slice %214 {offsets = [0, 96], sizes = [8, 32], strides = [1, 1]} : vector<8x128xf32> to vector<8x32xf32>
    %230 = arith.negf %229 : vector<8x32xf32>
    %231 = math.exp %230 : vector<8x32xf32>
    %cst_46 = arith.constant 1.000000e+00 : f32
    %232 = vector.broadcast %cst_46 : f32 to vector<8x32xf32>
    %233 = arith.addf %232, %231 : vector<8x32xf32>
    %234 = arith.divf %232, %233 : vector<8x32xf32>
    %235 = arith.mulf %226, %169 : vector<8x32xf32>
    %236 = arith.mulf %220, %228 : vector<8x32xf32>
    %237 = arith.addf %235, %236 : vector<8x32xf32>
    %238 = math.tanh %237 : vector<8x32xf32>
    %239 = arith.mulf %234, %238 : vector<8x32xf32>
    %c2_i32 = arith.constant 2 : i32
    %240 = vector.broadcast %c2_i32 : i32 to vector<8x1xi32>
    %241 = arith.cmpi sgt, %8, %240 : vector<8x1xi32>
    %c5_i32 = arith.constant 5 : i32
    %242 = vector.broadcast %c5_i32 : i32 to vector<8x1xi32>
    %243 = arith.cmpi sgt, %8, %242 : vector<8x1xi32>
    %244 = vector.shape_cast %241 : vector<8x1xi1> to vector<8x1xi1>
    %245 = vector.broadcast %244 : vector<8x1xi1> to vector<8x32xi1>
    %246 = arith.select %245, %212, %160 : vector<8x32xi1>, vector<8x32xf32>
    %247 = vector.shape_cast %241 : vector<8x1xi1> to vector<8x1xi1>
    %248 = vector.broadcast %247 : vector<8x1xi1> to vector<8x32xi1>
    %249 = arith.select %248, %210, %163 : vector<8x32xi1>, vector<8x32xf32>
    %250 = vector.shape_cast %243 : vector<8x1xi1> to vector<8x1xi1>
    %251 = vector.broadcast %250 : vector<8x1xi1> to vector<8x32xi1>
    %252 = arith.select %251, %239, %166 : vector<8x32xi1>, vector<8x32xf32>
    %253 = vector.shape_cast %243 : vector<8x1xi1> to vector<8x1xi1>
    %254 = vector.broadcast %253 : vector<8x1xi1> to vector<8x32xi1>
    %255 = arith.select %254, %237, %169 : vector<8x32xi1>, vector<8x32xf32>
    %256 = vector.shape_cast %241 : vector<8x1xi1> to vector<8x1xi1>
    %257 = vector.broadcast %256 : vector<8x1xi1> to vector<8x32xi1>
    %258 = arith.select %257, %212, %9 : vector<8x32xi1>, vector<8x32xf32>
    %c2 = arith.constant 2 : index
    %c0_47 = arith.constant 0 : index
    %c0_48 = arith.constant 0 : index
    %259 = vector.load %arg6[%c2, %c0_47, %c0_48] : memref<8x8x64xf32, #tpu.memory_space<vmem>>, vector<1x8x32xf32>
    %260 = vector.shape_cast %259 : vector<1x8x32xf32> to vector<8x32xf32>
    %261 = vector.shape_cast %258 : vector<8x32xf32> to vector<1x8x32xf32>
    tpu.vector_store %arg6[%c2, %c0_47, %c0_48], %261 {strides = array<i32>} : memref<8x8x64xf32, #tpu.memory_space<vmem>>, vector<1x8x32xf32>,
    %262 = vector.shape_cast %243 : vector<8x1xi1> to vector<8x1xi1>
    %263 = vector.broadcast %262 : vector<8x1xi1> to vector<8x32xi1>
    %264 = arith.select %263, %239, %9 : vector<8x32xi1>, vector<8x32xf32>
    %c5 = arith.constant 5 : index
    %c0_49 = arith.constant 0 : index
    %c32_50 = arith.constant 32 : index
    %265 = vector.load %arg6[%c5, %c0_49, %c32_50] : memref<8x8x64xf32, #tpu.memory_space<vmem>>, vector<1x8x32xf32>
    %266 = vector.shape_cast %265 : vector<1x8x32xf32> to vector<8x32xf32>
    %267 = vector.shape_cast %264 : vector<8x32xf32> to vector<1x8x32xf32>
    tpu.vector_store %arg6[%c5, %c0_49, %c32_50], %267 {strides = array<i32>} : memref<8x8x64xf32, #tpu.memory_space<vmem>>, vector<1x8x32xf32>,
    %c24 = arith.constant 24 : index
    %c0_51 = arith.constant 0 : index
    %268 = vector.load %arg8[%c24, %c0_51] : memref<64x256xf32, #tpu.memory_space<vmem>>, vector<8x128xf32>
    %c32_52 = arith.constant 32 : index
    %c128_53 = arith.constant 128 : index
    %269 = vector.load %arg8[%c32_52, %c128_53] : memref<64x256xf32, #tpu.memory_space<vmem>>, vector<8x128xf32>
    %270 = tpu.concatenate %246, %252 in 1 : vector<8x32xf32>, vector<8x32xf32> -> vector<8x64xf32>
    %cst_54 = arith.constant dense<0.000000e+00> : vector<8x256xf32>
    %271 = tpu.matmul %270, %7, %cst_54 {dimension_numbers = #tpu.dot_dimension_numbers<[1], [0], [0], [1], [0, 0, 1, 1], [], []>} : vector<8x64xf32>, vector<64x256xf32>, vector<8x256xf32> -> vector<8x256xf32>
    %272 = vector.extract_strided_slice %271 {offsets = [0, 0], sizes = [8, 128], strides = [1, 1]} : vector<8x256xf32> to vector<8x128xf32>
    %273 = arith.addf %268, %272 : vector<8x128xf32>
    %274 = vector.extract_strided_slice %273 {offsets = [0, 0], sizes = [8, 32], strides = [1, 1]} : vector<8x128xf32> to vector<8x32xf32>
    %275 = arith.negf %274 : vector<8x32xf32>
    %276 = math.exp %275 : vector<8x32xf32>
    %cst_55 = arith.constant 1.000000e+00 : f32
    %277 = vector.broadcast %cst_55 : f32 to vector<8x32xf32>
    %278 = arith.addf %277, %276 : vector<8x32xf32>
    %279 = arith.divf %277, %278 : vector<8x32xf32>
    %280 = vector.extract_strided_slice %273 {offsets = [0, 32], sizes = [8, 32], strides = [1, 1]} : vector<8x128xf32> to vector<8x32xf32>
    %281 = arith.negf %280 : vector<8x32xf32>
    %282 = math.exp %281 : vector<8x32xf32>
    %cst_56 = arith.constant 1.000000e+00 : f32
    %283 = vector.broadcast %cst_56 : f32 to vector<8x32xf32>
    %284 = arith.addf %283, %282 : vector<8x32xf32>
    %285 = arith.divf %283, %284 : vector<8x32xf32>
    %286 = vector.extract_strided_slice %273 {offsets = [0, 64], sizes = [8, 32], strides = [1, 1]} : vector<8x128xf32> to vector<8x32xf32>
    %287 = math.tanh %286 : vector<8x32xf32>
    %288 = vector.extract_strided_slice %273 {offsets = [0, 96], sizes = [8, 32], strides = [1, 1]} : vector<8x128xf32> to vector<8x32xf32>
    %289 = arith.negf %288 : vector<8x32xf32>
    %290 = math.exp %289 : vector<8x32xf32>
    %cst_57 = arith.constant 1.000000e+00 : f32
    %291 = vector.broadcast %cst_57 : f32 to vector<8x32xf32>
    %292 = arith.addf %291, %290 : vector<8x32xf32>
    %293 = arith.divf %291, %292 : vector<8x32xf32>
    %294 = arith.mulf %285, %249 : vector<8x32xf32>
    %295 = arith.mulf %279, %287 : vector<8x32xf32>
    %296 = arith.addf %294, %295 : vector<8x32xf32>
    %297 = math.tanh %296 : vector<8x32xf32>
    %298 = arith.mulf %293, %297 : vector<8x32xf32>
    %299 = vector.extract_strided_slice %271 {offsets = [0, 128], sizes = [8, 128], strides = [1, 1]} : vector<8x256xf32> to vector<8x128xf32>
    %300 = arith.addf %269, %299 : vector<8x128xf32>
    %301 = vector.extract_strided_slice %300 {offsets = [0, 0], sizes = [8, 32], strides = [1, 1]} : vector<8x128xf32> to vector<8x32xf32>
    %302 = arith.negf %301 : vector<8x32xf32>
    %303 = math.exp %302 : vector<8x32xf32>
    %cst_58 = arith.constant 1.000000e+00 : f32
    %304 = vector.broadcast %cst_58 : f32 to vector<8x32xf32>
    %305 = arith.addf %304, %303 : vector<8x32xf32>
    %306 = arith.divf %304, %305 : vector<8x32xf32>
    %307 = vector.extract_strided_slice %300 {offsets = [0, 32], sizes = [8, 32], strides = [1, 1]} : vector<8x128xf32> to vector<8x32xf32>
    %308 = arith.negf %307 : vector<8x32xf32>
    %309 = math.exp %308 : vector<8x32xf32>
    %cst_59 = arith.constant 1.000000e+00 : f32
    %310 = vector.broadcast %cst_59 : f32 to vector<8x32xf32>
    %311 = arith.addf %310, %309 : vector<8x32xf32>
    %312 = arith.divf %310, %311 : vector<8x32xf32>
    %313 = vector.extract_strided_slice %300 {offsets = [0, 64], sizes = [8, 32], strides = [1, 1]} : vector<8x128xf32> to vector<8x32xf32>
    %314 = math.tanh %313 : vector<8x32xf32>
    %315 = vector.extract_strided_slice %300 {offsets = [0, 96], sizes = [8, 32], strides = [1, 1]} : vector<8x128xf32> to vector<8x32xf32>
    %316 = arith.negf %315 : vector<8x32xf32>
    %317 = math.exp %316 : vector<8x32xf32>
    %cst_60 = arith.constant 1.000000e+00 : f32
    %318 = vector.broadcast %cst_60 : f32 to vector<8x32xf32>
    %319 = arith.addf %318, %317 : vector<8x32xf32>
    %320 = arith.divf %318, %319 : vector<8x32xf32>
    %321 = arith.mulf %312, %255 : vector<8x32xf32>
    %322 = arith.mulf %306, %314 : vector<8x32xf32>
    %323 = arith.addf %321, %322 : vector<8x32xf32>
    %324 = math.tanh %323 : vector<8x32xf32>
    %325 = arith.mulf %320, %324 : vector<8x32xf32>
    %c3_i32 = arith.constant 3 : i32
    %326 = vector.broadcast %c3_i32 : i32 to vector<8x1xi32>
    %327 = arith.cmpi sgt, %8, %326 : vector<8x1xi32>
    %c4_i32 = arith.constant 4 : i32
    %328 = vector.broadcast %c4_i32 : i32 to vector<8x1xi32>
    %329 = arith.cmpi sgt, %8, %328 : vector<8x1xi32>
    %330 = vector.shape_cast %327 : vector<8x1xi1> to vector<8x1xi1>
    %331 = vector.broadcast %330 : vector<8x1xi1> to vector<8x32xi1>
    %332 = arith.select %331, %298, %246 : vector<8x32xi1>, vector<8x32xf32>
    %333 = vector.shape_cast %327 : vector<8x1xi1> to vector<8x1xi1>
    %334 = vector.broadcast %333 : vector<8x1xi1> to vector<8x32xi1>
    %335 = arith.select %334, %296, %249 : vector<8x32xi1>, vector<8x32xf32>
    %336 = vector.shape_cast %329 : vector<8x1xi1> to vector<8x1xi1>
    %337 = vector.broadcast %336 : vector<8x1xi1> to vector<8x32xi1>
    %338 = arith.select %337, %325, %252 : vector<8x32xi1>, vector<8x32xf32>
    %339 = vector.shape_cast %329 : vector<8x1xi1> to vector<8x1xi1>
    %340 = vector.broadcast %339 : vector<8x1xi1> to vector<8x32xi1>
    %341 = arith.select %340, %323, %255 : vector<8x32xi1>, vector<8x32xf32>
    %342 = vector.shape_cast %327 : vector<8x1xi1> to vector<8x1xi1>
    %343 = vector.broadcast %342 : vector<8x1xi1> to vector<8x32xi1>
    %344 = arith.select %343, %298, %9 : vector<8x32xi1>, vector<8x32xf32>
    %c3 = arith.constant 3 : index
    %c0_61 = arith.constant 0 : index
    %c0_62 = arith.constant 0 : index
    %345 = vector.load %arg6[%c3, %c0_61, %c0_62] : memref<8x8x64xf32, #tpu.memory_space<vmem>>, vector<1x8x32xf32>
    %346 = vector.shape_cast %345 : vector<1x8x32xf32> to vector<8x32xf32>
    %347 = vector.shape_cast %344 : vector<8x32xf32> to vector<1x8x32xf32>
    tpu.vector_store %arg6[%c3, %c0_61, %c0_62], %347 {strides = array<i32>} : memref<8x8x64xf32, #tpu.memory_space<vmem>>, vector<1x8x32xf32>,
    %348 = vector.shape_cast %329 : vector<8x1xi1> to vector<8x1xi1>
    %349 = vector.broadcast %348 : vector<8x1xi1> to vector<8x32xi1>
    %350 = arith.select %349, %325, %9 : vector<8x32xi1>, vector<8x32xf32>
    %c4 = arith.constant 4 : index
    %c0_63 = arith.constant 0 : index
    %c32_64 = arith.constant 32 : index
    %351 = vector.load %arg6[%c4, %c0_63, %c32_64] : memref<8x8x64xf32, #tpu.memory_space<vmem>>, vector<1x8x32xf32>
    %352 = vector.shape_cast %351 : vector<1x8x32xf32> to vector<8x32xf32>
    %353 = vector.shape_cast %350 : vector<8x32xf32> to vector<1x8x32xf32>
    tpu.vector_store %arg6[%c4, %c0_63, %c32_64], %353 {strides = array<i32>} : memref<8x8x64xf32, #tpu.memory_space<vmem>>, vector<1x8x32xf32>,
    %c32_65 = arith.constant 32 : index
    %c0_66 = arith.constant 0 : index
    %354 = vector.load %arg8[%c32_65, %c0_66] : memref<64x256xf32, #tpu.memory_space<vmem>>, vector<8x128xf32>
    %c24_67 = arith.constant 24 : index
    %c128_68 = arith.constant 128 : index
    %355 = vector.load %arg8[%c24_67, %c128_68] : memref<64x256xf32, #tpu.memory_space<vmem>>, vector<8x128xf32>
    %356 = tpu.concatenate %332, %338 in 1 : vector<8x32xf32>, vector<8x32xf32> -> vector<8x64xf32>
    %cst_69 = arith.constant dense<0.000000e+00> : vector<8x256xf32>
    %357 = tpu.matmul %356, %7, %cst_69 {dimension_numbers = #tpu.dot_dimension_numbers<[1], [0], [0], [1], [0, 0, 1, 1], [], []>} : vector<8x64xf32>, vector<64x256xf32>, vector<8x256xf32> -> vector<8x256xf32>
    %358 = vector.extract_strided_slice %357 {offsets = [0, 0], sizes = [8, 128], strides = [1, 1]} : vector<8x256xf32> to vector<8x128xf32>
    %359 = arith.addf %354, %358 : vector<8x128xf32>
    %360 = vector.extract_strided_slice %359 {offsets = [0, 0], sizes = [8, 32], strides = [1, 1]} : vector<8x128xf32> to vector<8x32xf32>
    %361 = arith.negf %360 : vector<8x32xf32>
    %362 = math.exp %361 : vector<8x32xf32>
    %cst_70 = arith.constant 1.000000e+00 : f32
    %363 = vector.broadcast %cst_70 : f32 to vector<8x32xf32>
    %364 = arith.addf %363, %362 : vector<8x32xf32>
    %365 = arith.divf %363, %364 : vector<8x32xf32>
    %366 = vector.extract_strided_slice %359 {offsets = [0, 32], sizes = [8, 32], strides = [1, 1]} : vector<8x128xf32> to vector<8x32xf32>
    %367 = arith.negf %366 : vector<8x32xf32>
    %368 = math.exp %367 : vector<8x32xf32>
    %cst_71 = arith.constant 1.000000e+00 : f32
    %369 = vector.broadcast %cst_71 : f32 to vector<8x32xf32>
    %370 = arith.addf %369, %368 : vector<8x32xf32>
    %371 = arith.divf %369, %370 : vector<8x32xf32>
    %372 = vector.extract_strided_slice %359 {offsets = [0, 64], sizes = [8, 32], strides = [1, 1]} : vector<8x128xf32> to vector<8x32xf32>
    %373 = math.tanh %372 : vector<8x32xf32>
    %374 = vector.extract_strided_slice %359 {offsets = [0, 96], sizes = [8, 32], strides = [1, 1]} : vector<8x128xf32> to vector<8x32xf32>
    %375 = arith.negf %374 : vector<8x32xf32>
    %376 = math.exp %375 : vector<8x32xf32>
    %cst_72 = arith.constant 1.000000e+00 : f32
    %377 = vector.broadcast %cst_72 : f32 to vector<8x32xf32>
    %378 = arith.addf %377, %376 : vector<8x32xf32>
    %379 = arith.divf %377, %378 : vector<8x32xf32>
    %380 = arith.mulf %371, %335 : vector<8x32xf32>
    %381 = arith.mulf %365, %373 : vector<8x32xf32>
    %382 = arith.addf %380, %381 : vector<8x32xf32>
    %383 = math.tanh %382 : vector<8x32xf32>
    %384 = arith.mulf %379, %383 : vector<8x32xf32>
    %385 = vector.extract_strided_slice %357 {offsets = [0, 128], sizes = [8, 128], strides = [1, 1]} : vector<8x256xf32> to vector<8x128xf32>
    %386 = arith.addf %355, %385 : vector<8x128xf32>
    %387 = vector.extract_strided_slice %386 {offsets = [0, 0], sizes = [8, 32], strides = [1, 1]} : vector<8x128xf32> to vector<8x32xf32>
    %388 = arith.negf %387 : vector<8x32xf32>
    %389 = math.exp %388 : vector<8x32xf32>
    %cst_73 = arith.constant 1.000000e+00 : f32
    %390 = vector.broadcast %cst_73 : f32 to vector<8x32xf32>
    %391 = arith.addf %390, %389 : vector<8x32xf32>
    %392 = arith.divf %390, %391 : vector<8x32xf32>
    %393 = vector.extract_strided_slice %386 {offsets = [0, 32], sizes = [8, 32], strides = [1, 1]} : vector<8x128xf32> to vector<8x32xf32>
    %394 = arith.negf %393 : vector<8x32xf32>
    %395 = math.exp %394 : vector<8x32xf32>
    %cst_74 = arith.constant 1.000000e+00 : f32
    %396 = vector.broadcast %cst_74 : f32 to vector<8x32xf32>
    %397 = arith.addf %396, %395 : vector<8x32xf32>
    %398 = arith.divf %396, %397 : vector<8x32xf32>
    %399 = vector.extract_strided_slice %386 {offsets = [0, 64], sizes = [8, 32], strides = [1, 1]} : vector<8x128xf32> to vector<8x32xf32>
    %400 = math.tanh %399 : vector<8x32xf32>
    %401 = vector.extract_strided_slice %386 {offsets = [0, 96], sizes = [8, 32], strides = [1, 1]} : vector<8x128xf32> to vector<8x32xf32>
    %402 = arith.negf %401 : vector<8x32xf32>
    %403 = math.exp %402 : vector<8x32xf32>
    %cst_75 = arith.constant 1.000000e+00 : f32
    %404 = vector.broadcast %cst_75 : f32 to vector<8x32xf32>
    %405 = arith.addf %404, %403 : vector<8x32xf32>
    %406 = arith.divf %404, %405 : vector<8x32xf32>
    %407 = arith.mulf %398, %341 : vector<8x32xf32>
    %408 = arith.mulf %392, %400 : vector<8x32xf32>
    %409 = arith.addf %407, %408 : vector<8x32xf32>
    %410 = math.tanh %409 : vector<8x32xf32>
    %411 = arith.mulf %406, %410 : vector<8x32xf32>
    %c4_i32_76 = arith.constant 4 : i32
    %412 = vector.broadcast %c4_i32_76 : i32 to vector<8x1xi32>
    %413 = arith.cmpi sgt, %8, %412 : vector<8x1xi32>
    %c3_i32_77 = arith.constant 3 : i32
    %414 = vector.broadcast %c3_i32_77 : i32 to vector<8x1xi32>
    %415 = arith.cmpi sgt, %8, %414 : vector<8x1xi32>
    %416 = vector.shape_cast %413 : vector<8x1xi1> to vector<8x1xi1>
    %417 = vector.broadcast %416 : vector<8x1xi1> to vector<8x32xi1>
    %418 = arith.select %417, %384, %332 : vector<8x32xi1>, vector<8x32xf32>
    %419 = vector.shape_cast %413 : vector<8x1xi1> to vector<8x1xi1>
    %420 = vector.broadcast %419 : vector<8x1xi1> to vector<8x32xi1>
    %421 = arith.select %420, %382, %335 : vector<8x32xi1>, vector<8x32xf32>
    %422 = vector.shape_cast %415 : vector<8x1xi1> to vector<8x1xi1>
    %423 = vector.broadcast %422 : vector<8x1xi1> to vector<8x32xi1>
    %424 = arith.select %423, %411, %338 : vector<8x32xi1>, vector<8x32xf32>
    %425 = vector.shape_cast %415 : vector<8x1xi1> to vector<8x1xi1>
    %426 = vector.broadcast %425 : vector<8x1xi1> to vector<8x32xi1>
    %427 = arith.select %426, %409, %341 : vector<8x32xi1>, vector<8x32xf32>
    %428 = vector.shape_cast %413 : vector<8x1xi1> to vector<8x1xi1>
    %429 = vector.broadcast %428 : vector<8x1xi1> to vector<8x32xi1>
    %430 = arith.select %429, %384, %9 : vector<8x32xi1>, vector<8x32xf32>
    %c4_78 = arith.constant 4 : index
    %c0_79 = arith.constant 0 : index
    %c0_80 = arith.constant 0 : index
    %431 = vector.load %arg6[%c4_78, %c0_79, %c0_80] : memref<8x8x64xf32, #tpu.memory_space<vmem>>, vector<1x8x32xf32>
    %432 = vector.shape_cast %431 : vector<1x8x32xf32> to vector<8x32xf32>
    %433 = vector.shape_cast %430 : vector<8x32xf32> to vector<1x8x32xf32>
    tpu.vector_store %arg6[%c4_78, %c0_79, %c0_80], %433 {strides = array<i32>} : memref<8x8x64xf32, #tpu.memory_space<vmem>>, vector<1x8x32xf32>,
    %434 = vector.shape_cast %415 : vector<8x1xi1> to vector<8x1xi1>
    %435 = vector.broadcast %434 : vector<8x1xi1> to vector<8x32xi1>
    %436 = arith.select %435, %411, %9 : vector<8x32xi1>, vector<8x32xf32>
    %c3_81 = arith.constant 3 : index
    %c0_82 = arith.constant 0 : index
    %c32_83 = arith.constant 32 : index
    %437 = vector.load %arg6[%c3_81, %c0_82, %c32_83] : memref<8x8x64xf32, #tpu.memory_space<vmem>>, vector<1x8x32xf32>
    %438 = vector.shape_cast %437 : vector<1x8x32xf32> to vector<8x32xf32>
    %439 = vector.shape_cast %436 : vector<8x32xf32> to vector<1x8x32xf32>
    tpu.vector_store %arg6[%c3_81, %c0_82, %c32_83], %439 {strides = array<i32>} : memref<8x8x64xf32, #tpu.memory_space<vmem>>, vector<1x8x32xf32>,
    %c40_84 = arith.constant 40 : index
    %c0_85 = arith.constant 0 : index
    %440 = vector.load %arg8[%c40_84, %c0_85] : memref<64x256xf32, #tpu.memory_space<vmem>>, vector<8x128xf32>
    %c16_86 = arith.constant 16 : index
    %c128_87 = arith.constant 128 : index
    %441 = vector.load %arg8[%c16_86, %c128_87] : memref<64x256xf32, #tpu.memory_space<vmem>>, vector<8x128xf32>
    %442 = tpu.concatenate %418, %424 in 1 : vector<8x32xf32>, vector<8x32xf32> -> vector<8x64xf32>
    %cst_88 = arith.constant dense<0.000000e+00> : vector<8x256xf32>
    %443 = tpu.matmul %442, %7, %cst_88 {dimension_numbers = #tpu.dot_dimension_numbers<[1], [0], [0], [1], [0, 0, 1, 1], [], []>} : vector<8x64xf32>, vector<64x256xf32>, vector<8x256xf32> -> vector<8x256xf32>
    %444 = vector.extract_strided_slice %443 {offsets = [0, 0], sizes = [8, 128], strides = [1, 1]} : vector<8x256xf32> to vector<8x128xf32>
    %445 = arith.addf %440, %444 : vector<8x128xf32>
    %446 = vector.extract_strided_slice %445 {offsets = [0, 0], sizes = [8, 32], strides = [1, 1]} : vector<8x128xf32> to vector<8x32xf32>
    %447 = arith.negf %446 : vector<8x32xf32>
    %448 = math.exp %447 : vector<8x32xf32>
    %cst_89 = arith.constant 1.000000e+00 : f32
    %449 = vector.broadcast %cst_89 : f32 to vector<8x32xf32>
    %450 = arith.addf %449, %448 : vector<8x32xf32>
    %451 = arith.divf %449, %450 : vector<8x32xf32>
    %452 = vector.extract_strided_slice %445 {offsets = [0, 32], sizes = [8, 32], strides = [1, 1]} : vector<8x128xf32> to vector<8x32xf32>
    %453 = arith.negf %452 : vector<8x32xf32>
    %454 = math.exp %453 : vector<8x32xf32>
    %cst_90 = arith.constant 1.000000e+00 : f32
    %455 = vector.broadcast %cst_90 : f32 to vector<8x32xf32>
    %456 = arith.addf %455, %454 : vector<8x32xf32>
    %457 = arith.divf %455, %456 : vector<8x32xf32>
    %458 = vector.extract_strided_slice %445 {offsets = [0, 64], sizes = [8, 32], strides = [1, 1]} : vector<8x128xf32> to vector<8x32xf32>
    %459 = math.tanh %458 : vector<8x32xf32>
    %460 = vector.extract_strided_slice %445 {offsets = [0, 96], sizes = [8, 32], strides = [1, 1]} : vector<8x128xf32> to vector<8x32xf32>
    %461 = arith.negf %460 : vector<8x32xf32>
    %462 = math.exp %461 : vector<8x32xf32>
    %cst_91 = arith.constant 1.000000e+00 : f32
    %463 = vector.broadcast %cst_91 : f32 to vector<8x32xf32>
    %464 = arith.addf %463, %462 : vector<8x32xf32>
    %465 = arith.divf %463, %464 : vector<8x32xf32>
    %466 = arith.mulf %457, %421 : vector<8x32xf32>
    %467 = arith.mulf %451, %459 : vector<8x32xf32>
    %468 = arith.addf %466, %467 : vector<8x32xf32>
    %469 = math.tanh %468 : vector<8x32xf32>
    %470 = arith.mulf %465, %469 : vector<8x32xf32>
    %471 = vector.extract_strided_slice %443 {offsets = [0, 128], sizes = [8, 128], strides = [1, 1]} : vector<8x256xf32> to vector<8x128xf32>
    %472 = arith.addf %441, %471 : vector<8x128xf32>
    %473 = vector.extract_strided_slice %472 {offsets = [0, 0], sizes = [8, 32], strides = [1, 1]} : vector<8x128xf32> to vector<8x32xf32>
    %474 = arith.negf %473 : vector<8x32xf32>
    %475 = math.exp %474 : vector<8x32xf32>
    %cst_92 = arith.constant 1.000000e+00 : f32
    %476 = vector.broadcast %cst_92 : f32 to vector<8x32xf32>
    %477 = arith.addf %476, %475 : vector<8x32xf32>
    %478 = arith.divf %476, %477 : vector<8x32xf32>
    %479 = vector.extract_strided_slice %472 {offsets = [0, 32], sizes = [8, 32], strides = [1, 1]} : vector<8x128xf32> to vector<8x32xf32>
    %480 = arith.negf %479 : vector<8x32xf32>
    %481 = math.exp %480 : vector<8x32xf32>
    %cst_93 = arith.constant 1.000000e+00 : f32
    %482 = vector.broadcast %cst_93 : f32 to vector<8x32xf32>
    %483 = arith.addf %482, %481 : vector<8x32xf32>
    %484 = arith.divf %482, %483 : vector<8x32xf32>
    %485 = vector.extract_strided_slice %472 {offsets = [0, 64], sizes = [8, 32], strides = [1, 1]} : vector<8x128xf32> to vector<8x32xf32>
    %486 = math.tanh %485 : vector<8x32xf32>
    %487 = vector.extract_strided_slice %472 {offsets = [0, 96], sizes = [8, 32], strides = [1, 1]} : vector<8x128xf32> to vector<8x32xf32>
    %488 = arith.negf %487 : vector<8x32xf32>
    %489 = math.exp %488 : vector<8x32xf32>
    %cst_94 = arith.constant 1.000000e+00 : f32
    %490 = vector.broadcast %cst_94 : f32 to vector<8x32xf32>
    %491 = arith.addf %490, %489 : vector<8x32xf32>
    %492 = arith.divf %490, %491 : vector<8x32xf32>
    %493 = arith.mulf %484, %427 : vector<8x32xf32>
    %494 = arith.mulf %478, %486 : vector<8x32xf32>
    %495 = arith.addf %493, %494 : vector<8x32xf32>
    %496 = math.tanh %495 : vector<8x32xf32>
    %497 = arith.mulf %492, %496 : vector<8x32xf32>
    %c5_i32_95 = arith.constant 5 : i32
    %498 = vector.broadcast %c5_i32_95 : i32 to vector<8x1xi32>
    %499 = arith.cmpi sgt, %8, %498 : vector<8x1xi32>
    %c2_i32_96 = arith.constant 2 : i32
    %500 = vector.broadcast %c2_i32_96 : i32 to vector<8x1xi32>
    %501 = arith.cmpi sgt, %8, %500 : vector<8x1xi32>
    %502 = vector.shape_cast %499 : vector<8x1xi1> to vector<8x1xi1>
    %503 = vector.broadcast %502 : vector<8x1xi1> to vector<8x32xi1>
    %504 = arith.select %503, %470, %418 : vector<8x32xi1>, vector<8x32xf32>
    %505 = vector.shape_cast %499 : vector<8x1xi1> to vector<8x1xi1>
    %506 = vector.broadcast %505 : vector<8x1xi1> to vector<8x32xi1>
    %507 = arith.select %506, %468, %421 : vector<8x32xi1>, vector<8x32xf32>
    %508 = vector.shape_cast %501 : vector<8x1xi1> to vector<8x1xi1>
    %509 = vector.broadcast %508 : vector<8x1xi1> to vector<8x32xi1>
    %510 = arith.select %509, %497, %424 : vector<8x32xi1>, vector<8x32xf32>
    %511 = vector.shape_cast %501 : vector<8x1xi1> to vector<8x1xi1>
    %512 = vector.broadcast %511 : vector<8x1xi1> to vector<8x32xi1>
    %513 = arith.select %512, %495, %427 : vector<8x32xi1>, vector<8x32xf32>
    %514 = vector.shape_cast %499 : vector<8x1xi1> to vector<8x1xi1>
    %515 = vector.broadcast %514 : vector<8x1xi1> to vector<8x32xi1>
    %516 = arith.select %515, %470, %9 : vector<8x32xi1>, vector<8x32xf32>
    %c5_97 = arith.constant 5 : index
    %c0_98 = arith.constant 0 : index
    %c0_99 = arith.constant 0 : index
    %517 = vector.load %arg6[%c5_97, %c0_98, %c0_99] : memref<8x8x64xf32, #tpu.memory_space<vmem>>, vector<1x8x32xf32>
    %518 = vector.shape_cast %517 : vector<1x8x32xf32> to vector<8x32xf32>
    %519 = vector.shape_cast %516 : vector<8x32xf32> to vector<1x8x32xf32>
    tpu.vector_store %arg6[%c5_97, %c0_98, %c0_99], %519 {strides = array<i32>} : memref<8x8x64xf32, #tpu.memory_space<vmem>>, vector<1x8x32xf32>,
    %520 = vector.shape_cast %501 : vector<8x1xi1> to vector<8x1xi1>
    %521 = vector.broadcast %520 : vector<8x1xi1> to vector<8x32xi1>
    %522 = arith.select %521, %497, %9 : vector<8x32xi1>, vector<8x32xf32>
    %c2_100 = arith.constant 2 : index
    %c0_101 = arith.constant 0 : index
    %c32_102 = arith.constant 32 : index
    %523 = vector.load %arg6[%c2_100, %c0_101, %c32_102] : memref<8x8x64xf32, #tpu.memory_space<vmem>>, vector<1x8x32xf32>
    %524 = vector.shape_cast %523 : vector<1x8x32xf32> to vector<8x32xf32>
    %525 = vector.shape_cast %522 : vector<8x32xf32> to vector<1x8x32xf32>
    tpu.vector_store %arg6[%c2_100, %c0_101, %c32_102], %525 {strides = array<i32>} : memref<8x8x64xf32, #tpu.memory_space<vmem>>, vector<1x8x32xf32>,
    %c48_103 = arith.constant 48 : index
    %c0_104 = arith.constant 0 : index
    %526 = vector.load %arg8[%c48_103, %c0_104] : memref<64x256xf32, #tpu.memory_space<vmem>>, vector<8x128xf32>
    %c8_105 = arith.constant 8 : index
    %c128_106 = arith.constant 128 : index
    %527 = vector.load %arg8[%c8_105, %c128_106] : memref<64x256xf32, #tpu.memory_space<vmem>>, vector<8x128xf32>
    %528 = tpu.concatenate %504, %510 in 1 : vector<8x32xf32>, vector<8x32xf32> -> vector<8x64xf32>
    %cst_107 = arith.constant dense<0.000000e+00> : vector<8x256xf32>
    %529 = tpu.matmul %528, %7, %cst_107 {dimension_numbers = #tpu.dot_dimension_numbers<[1], [0], [0], [1], [0, 0, 1, 1], [], []>} : vector<8x64xf32>, vector<64x256xf32>, vector<8x256xf32> -> vector<8x256xf32>
    %530 = vector.extract_strided_slice %529 {offsets = [0, 0], sizes = [8, 128], strides = [1, 1]} : vector<8x256xf32> to vector<8x128xf32>
    %531 = arith.addf %526, %530 : vector<8x128xf32>
    %532 = vector.extract_strided_slice %531 {offsets = [0, 0], sizes = [8, 32], strides = [1, 1]} : vector<8x128xf32> to vector<8x32xf32>
    %533 = arith.negf %532 : vector<8x32xf32>
    %534 = math.exp %533 : vector<8x32xf32>
    %cst_108 = arith.constant 1.000000e+00 : f32
    %535 = vector.broadcast %cst_108 : f32 to vector<8x32xf32>
    %536 = arith.addf %535, %534 : vector<8x32xf32>
    %537 = arith.divf %535, %536 : vector<8x32xf32>
    %538 = vector.extract_strided_slice %531 {offsets = [0, 32], sizes = [8, 32], strides = [1, 1]} : vector<8x128xf32> to vector<8x32xf32>
    %539 = arith.negf %538 : vector<8x32xf32>
    %540 = math.exp %539 : vector<8x32xf32>
    %cst_109 = arith.constant 1.000000e+00 : f32
    %541 = vector.broadcast %cst_109 : f32 to vector<8x32xf32>
    %542 = arith.addf %541, %540 : vector<8x32xf32>
    %543 = arith.divf %541, %542 : vector<8x32xf32>
    %544 = vector.extract_strided_slice %531 {offsets = [0, 64], sizes = [8, 32], strides = [1, 1]} : vector<8x128xf32> to vector<8x32xf32>
    %545 = math.tanh %544 : vector<8x32xf32>
    %546 = vector.extract_strided_slice %531 {offsets = [0, 96], sizes = [8, 32], strides = [1, 1]} : vector<8x128xf32> to vector<8x32xf32>
    %547 = arith.negf %546 : vector<8x32xf32>
    %548 = math.exp %547 : vector<8x32xf32>
    %cst_110 = arith.constant 1.000000e+00 : f32
    %549 = vector.broadcast %cst_110 : f32 to vector<8x32xf32>
    %550 = arith.addf %549, %548 : vector<8x32xf32>
    %551 = arith.divf %549, %550 : vector<8x32xf32>
    %552 = arith.mulf %543, %507 : vector<8x32xf32>
    %553 = arith.mulf %537, %545 : vector<8x32xf32>
    %554 = arith.addf %552, %553 : vector<8x32xf32>
    %555 = math.tanh %554 : vector<8x32xf32>
    %556 = arith.mulf %551, %555 : vector<8x32xf32>
    %557 = vector.extract_strided_slice %529 {offsets = [0, 128], sizes = [8, 128], strides = [1, 1]} : vector<8x256xf32> to vector<8x128xf32>
    %558 = arith.addf %527, %557 : vector<8x128xf32>
    %559 = vector.extract_strided_slice %558 {offsets = [0, 0], sizes = [8, 32], strides = [1, 1]} : vector<8x128xf32> to vector<8x32xf32>
    %560 = arith.negf %559 : vector<8x32xf32>
    %561 = math.exp %560 : vector<8x32xf32>
    %cst_111 = arith.constant 1.000000e+00 : f32
    %562 = vector.broadcast %cst_111 : f32 to vector<8x32xf32>
    %563 = arith.addf %562, %561 : vector<8x32xf32>
    %564 = arith.divf %562, %563 : vector<8x32xf32>
    %565 = vector.extract_strided_slice %558 {offsets = [0, 32], sizes = [8, 32], strides = [1, 1]} : vector<8x128xf32> to vector<8x32xf32>
    %566 = arith.negf %565 : vector<8x32xf32>
    %567 = math.exp %566 : vector<8x32xf32>
    %cst_112 = arith.constant 1.000000e+00 : f32
    %568 = vector.broadcast %cst_112 : f32 to vector<8x32xf32>
    %569 = arith.addf %568, %567 : vector<8x32xf32>
    %570 = arith.divf %568, %569 : vector<8x32xf32>
    %571 = vector.extract_strided_slice %558 {offsets = [0, 64], sizes = [8, 32], strides = [1, 1]} : vector<8x128xf32> to vector<8x32xf32>
    %572 = math.tanh %571 : vector<8x32xf32>
    %573 = vector.extract_strided_slice %558 {offsets = [0, 96], sizes = [8, 32], strides = [1, 1]} : vector<8x128xf32> to vector<8x32xf32>
    %574 = arith.negf %573 : vector<8x32xf32>
    %575 = math.exp %574 : vector<8x32xf32>
    %cst_113 = arith.constant 1.000000e+00 : f32
    %576 = vector.broadcast %cst_113 : f32 to vector<8x32xf32>
    %577 = arith.addf %576, %575 : vector<8x32xf32>
    %578 = arith.divf %576, %577 : vector<8x32xf32>
    %579 = arith.mulf %570, %513 : vector<8x32xf32>
    %580 = arith.mulf %564, %572 : vector<8x32xf32>
    %581 = arith.addf %579, %580 : vector<8x32xf32>
    %582 = math.tanh %581 : vector<8x32xf32>
    %583 = arith.mulf %578, %582 : vector<8x32xf32>
    %c6_i32_114 = arith.constant 6 : i32
    %584 = vector.broadcast %c6_i32_114 : i32 to vector<8x1xi32>
    %585 = arith.cmpi sgt, %8, %584 : vector<8x1xi32>
    %c1_i32_115 = arith.constant 1 : i32
    %586 = vector.broadcast %c1_i32_115 : i32 to vector<8x1xi32>
    %587 = arith.cmpi sgt, %8, %586 : vector<8x1xi32>
    %588 = vector.shape_cast %585 : vector<8x1xi1> to vector<8x1xi1>
    %589 = vector.broadcast %588 : vector<8x1xi1> to vector<8x32xi1>
    %590 = arith.select %589, %556, %504 : vector<8x32xi1>, vector<8x32xf32>
    %591 = vector.shape_cast %585 : vector<8x1xi1> to vector<8x1xi1>
    %592 = vector.broadcast %591 : vector<8x1xi1> to vector<8x32xi1>
    %593 = arith.select %592, %554, %507 : vector<8x32xi1>, vector<8x32xf32>
    %594 = vector.shape_cast %587 : vector<8x1xi1> to vector<8x1xi1>
    %595 = vector.broadcast %594 : vector<8x1xi1> to vector<8x32xi1>
    %596 = arith.select %595, %583, %510 : vector<8x32xi1>, vector<8x32xf32>
    %597 = vector.shape_cast %587 : vector<8x1xi1> to vector<8x1xi1>
    %598 = vector.broadcast %597 : vector<8x1xi1> to vector<8x32xi1>
    %599 = arith.select %598, %581, %513 : vector<8x32xi1>, vector<8x32xf32>
    %600 = vector.shape_cast %585 : vector<8x1xi1> to vector<8x1xi1>
    %601 = vector.broadcast %600 : vector<8x1xi1> to vector<8x32xi1>
    %602 = arith.select %601, %556, %9 : vector<8x32xi1>, vector<8x32xf32>
    %c6_116 = arith.constant 6 : index
    %c0_117 = arith.constant 0 : index
    %c0_118 = arith.constant 0 : index
    %603 = vector.load %arg6[%c6_116, %c0_117, %c0_118] : memref<8x8x64xf32, #tpu.memory_space<vmem>>, vector<1x8x32xf32>
    %604 = vector.shape_cast %603 : vector<1x8x32xf32> to vector<8x32xf32>
    %605 = vector.shape_cast %602 : vector<8x32xf32> to vector<1x8x32xf32>
    tpu.vector_store %arg6[%c6_116, %c0_117, %c0_118], %605 {strides = array<i32>} : memref<8x8x64xf32, #tpu.memory_space<vmem>>, vector<1x8x32xf32>,
    %606 = vector.shape_cast %587 : vector<8x1xi1> to vector<8x1xi1>
    %607 = vector.broadcast %606 : vector<8x1xi1> to vector<8x32xi1>
    %608 = arith.select %607, %583, %9 : vector<8x32xi1>, vector<8x32xf32>
    %c1_119 = arith.constant 1 : index
    %c0_120 = arith.constant 0 : index
    %c32_121 = arith.constant 32 : index
    %609 = vector.load %arg6[%c1_119, %c0_120, %c32_121] : memref<8x8x64xf32, #tpu.memory_space<vmem>>, vector<1x8x32xf32>
    %610 = vector.shape_cast %609 : vector<1x8x32xf32> to vector<8x32xf32>
    %611 = vector.shape_cast %608 : vector<8x32xf32> to vector<1x8x32xf32>
    tpu.vector_store %arg6[%c1_119, %c0_120, %c32_121], %611 {strides = array<i32>} : memref<8x8x64xf32, #tpu.memory_space<vmem>>, vector<1x8x32xf32>,
    %c56_122 = arith.constant 56 : index
    %c0_123 = arith.constant 0 : index
    %612 = vector.load %arg8[%c56_122, %c0_123] : memref<64x256xf32, #tpu.memory_space<vmem>>, vector<8x128xf32>
    %c0_124 = arith.constant 0 : index
    %c128_125 = arith.constant 128 : index
    %613 = vector.load %arg8[%c0_124, %c128_125] : memref<64x256xf32, #tpu.memory_space<vmem>>, vector<8x128xf32>
    %614 = tpu.concatenate %590, %596 in 1 : vector<8x32xf32>, vector<8x32xf32> -> vector<8x64xf32>
    %cst_126 = arith.constant dense<0.000000e+00> : vector<8x256xf32>
    %615 = tpu.matmul %614, %7, %cst_126 {dimension_numbers = #tpu.dot_dimension_numbers<[1], [0], [0], [1], [0, 0, 1, 1], [], []>} : vector<8x64xf32>, vector<64x256xf32>, vector<8x256xf32> -> vector<8x256xf32>
    %616 = vector.extract_strided_slice %615 {offsets = [0, 0], sizes = [8, 128], strides = [1, 1]} : vector<8x256xf32> to vector<8x128xf32>
    %617 = arith.addf %612, %616 : vector<8x128xf32>
    %618 = vector.extract_strided_slice %617 {offsets = [0, 0], sizes = [8, 32], strides = [1, 1]} : vector<8x128xf32> to vector<8x32xf32>
    %619 = arith.negf %618 : vector<8x32xf32>
    %620 = math.exp %619 : vector<8x32xf32>
    %cst_127 = arith.constant 1.000000e+00 : f32
    %621 = vector.broadcast %cst_127 : f32 to vector<8x32xf32>
    %622 = arith.addf %621, %620 : vector<8x32xf32>
    %623 = arith.divf %621, %622 : vector<8x32xf32>
    %624 = vector.extract_strided_slice %617 {offsets = [0, 32], sizes = [8, 32], strides = [1, 1]} : vector<8x128xf32> to vector<8x32xf32>
    %625 = arith.negf %624 : vector<8x32xf32>
    %626 = math.exp %625 : vector<8x32xf32>
    %cst_128 = arith.constant 1.000000e+00 : f32
    %627 = vector.broadcast %cst_128 : f32 to vector<8x32xf32>
    %628 = arith.addf %627, %626 : vector<8x32xf32>
    %629 = arith.divf %627, %628 : vector<8x32xf32>
    %630 = vector.extract_strided_slice %617 {offsets = [0, 64], sizes = [8, 32], strides = [1, 1]} : vector<8x128xf32> to vector<8x32xf32>
    %631 = math.tanh %630 : vector<8x32xf32>
    %632 = vector.extract_strided_slice %617 {offsets = [0, 96], sizes = [8, 32], strides = [1, 1]} : vector<8x128xf32> to vector<8x32xf32>
    %633 = arith.negf %632 : vector<8x32xf32>
    %634 = math.exp %633 : vector<8x32xf32>
    %cst_129 = arith.constant 1.000000e+00 : f32
    %635 = vector.broadcast %cst_129 : f32 to vector<8x32xf32>
    %636 = arith.addf %635, %634 : vector<8x32xf32>
    %637 = arith.divf %635, %636 : vector<8x32xf32>
    %638 = arith.mulf %629, %593 : vector<8x32xf32>
    %639 = arith.mulf %623, %631 : vector<8x32xf32>
    %640 = arith.addf %638, %639 : vector<8x32xf32>
    %641 = math.tanh %640 : vector<8x32xf32>
    %642 = arith.mulf %637, %641 : vector<8x32xf32>
    %643 = vector.extract_strided_slice %615 {offsets = [0, 128], sizes = [8, 128], strides = [1, 1]} : vector<8x256xf32> to vector<8x128xf32>
    %644 = arith.addf %613, %643 : vector<8x128xf32>
    %645 = vector.extract_strided_slice %644 {offsets = [0, 0], sizes = [8, 32], strides = [1, 1]} : vector<8x128xf32> to vector<8x32xf32>
    %646 = arith.negf %645 : vector<8x32xf32>
    %647 = math.exp %646 : vector<8x32xf32>
    %cst_130 = arith.constant 1.000000e+00 : f32
    %648 = vector.broadcast %cst_130 : f32 to vector<8x32xf32>
    %649 = arith.addf %648, %647 : vector<8x32xf32>
    %650 = arith.divf %648, %649 : vector<8x32xf32>
    %651 = vector.extract_strided_slice %644 {offsets = [0, 32], sizes = [8, 32], strides = [1, 1]} : vector<8x128xf32> to vector<8x32xf32>
    %652 = arith.negf %651 : vector<8x32xf32>
    %653 = math.exp %652 : vector<8x32xf32>
    %cst_131 = arith.constant 1.000000e+00 : f32
    %654 = vector.broadcast %cst_131 : f32 to vector<8x32xf32>
    %655 = arith.addf %654, %653 : vector<8x32xf32>
    %656 = arith.divf %654, %655 : vector<8x32xf32>
    %657 = vector.extract_strided_slice %644 {offsets = [0, 64], sizes = [8, 32], strides = [1, 1]} : vector<8x128xf32> to vector<8x32xf32>
    %658 = math.tanh %657 : vector<8x32xf32>
    %659 = vector.extract_strided_slice %644 {offsets = [0, 96], sizes = [8, 32], strides = [1, 1]} : vector<8x128xf32> to vector<8x32xf32>
    %660 = arith.negf %659 : vector<8x32xf32>
    %661 = math.exp %660 : vector<8x32xf32>
    %cst_132 = arith.constant 1.000000e+00 : f32
    %662 = vector.broadcast %cst_132 : f32 to vector<8x32xf32>
    %663 = arith.addf %662, %661 : vector<8x32xf32>
    %664 = arith.divf %662, %663 : vector<8x32xf32>
    %665 = arith.mulf %656, %599 : vector<8x32xf32>
    %666 = arith.mulf %650, %658 : vector<8x32xf32>
    %667 = arith.addf %665, %666 : vector<8x32xf32>
    %668 = math.tanh %667 : vector<8x32xf32>
    %669 = arith.mulf %664, %668 : vector<8x32xf32>
    %c7_i32_133 = arith.constant 7 : i32
    %670 = vector.broadcast %c7_i32_133 : i32 to vector<8x1xi32>
    %671 = arith.cmpi sgt, %8, %670 : vector<8x1xi32>
    %c0_i32_134 = arith.constant 0 : i32
    %672 = vector.broadcast %c0_i32_134 : i32 to vector<8x1xi32>
    %673 = arith.cmpi sgt, %8, %672 : vector<8x1xi32>
    %674 = vector.shape_cast %671 : vector<8x1xi1> to vector<8x1xi1>
    %675 = vector.broadcast %674 : vector<8x1xi1> to vector<8x32xi1>
    %676 = arith.select %675, %642, %590 : vector<8x32xi1>, vector<8x32xf32>
    %677 = vector.shape_cast %673 : vector<8x1xi1> to vector<8x1xi1>
    %678 = vector.broadcast %677 : vector<8x1xi1> to vector<8x32xi1>
    %679 = arith.select %678, %669, %596 : vector<8x32xi1>, vector<8x32xf32>
    %680 = vector.shape_cast %671 : vector<8x1xi1> to vector<8x1xi1>
    %681 = vector.broadcast %680 : vector<8x1xi1> to vector<8x32xi1>
    %682 = arith.select %681, %642, %9 : vector<8x32xi1>, vector<8x32xf32>
    %c7_135 = arith.constant 7 : index
    %c0_136 = arith.constant 0 : index
    %c0_137 = arith.constant 0 : index
    %683 = vector.load %arg6[%c7_135, %c0_136, %c0_137] : memref<8x8x64xf32, #tpu.memory_space<vmem>>, vector<1x8x32xf32>
    %684 = vector.shape_cast %683 : vector<1x8x32xf32> to vector<8x32xf32>
    %685 = vector.shape_cast %682 : vector<8x32xf32> to vector<1x8x32xf32>
    tpu.vector_store %arg6[%c7_135, %c0_136, %c0_137], %685 {strides = array<i32>} : memref<8x8x64xf32, #tpu.memory_space<vmem>>, vector<1x8x32xf32>,
    %686 = vector.shape_cast %673 : vector<8x1xi1> to vector<8x1xi1>
    %687 = vector.broadcast %686 : vector<8x1xi1> to vector<8x32xi1>
    %688 = arith.select %687, %669, %9 : vector<8x32xi1>, vector<8x32xf32>
    %c0_138 = arith.constant 0 : index
    %c0_139 = arith.constant 0 : index
    %c32_140 = arith.constant 32 : index
    %689 = vector.load %arg6[%c0_138, %c0_139, %c32_140] : memref<8x8x64xf32, #tpu.memory_space<vmem>>, vector<1x8x32xf32>
    %690 = vector.shape_cast %689 : vector<1x8x32xf32> to vector<8x32xf32>
    %691 = vector.shape_cast %688 : vector<8x32xf32> to vector<1x8x32xf32>
    tpu.vector_store %arg6[%c0_138, %c0_139, %c32_140], %691 {strides = array<i32>} : memref<8x8x64xf32, #tpu.memory_space<vmem>>, vector<1x8x32xf32>,
    %c0_141 = arith.constant 0 : index
    %c0_142 = arith.constant 0 : index
    %692 = vector.load %arg7[%c0_141, %c0_142] : memref<8x64xf32, #tpu.memory_space<vmem>>, vector<8x32xf32>
    tpu.vector_store %arg7[%c0_141, %c0_142], %676 {strides = array<i32>} : memref<8x64xf32, #tpu.memory_space<vmem>>, vector<8x32xf32>,
    %c0_143 = arith.constant 0 : index
    %c32_144 = arith.constant 32 : index
    %693 = vector.load %arg7[%c0_143, %c32_144] : memref<8x64xf32, #tpu.memory_space<vmem>>, vector<8x32xf32>
    tpu.vector_store %arg7[%c0_143, %c32_144], %679 {strides = array<i32>} : memref<8x64xf32, #tpu.memory_space<vmem>>, vector<8x32xf32>,
    return
  }
  func.func @transform_0(%arg0: i32) -> (i32, i32) {
    %c0_i32 = arith.constant 0 : i32
    %c0_i32_0 = arith.constant 0 : i32
    %c0_i32_1 = arith.constant 0 : i32
    return %c0_i32, %c0_i32_0 : i32, i32
  }
  func.func @transform_1(%arg0: i32) -> (i32, i32) {
    %c0_i32 = arith.constant 0 : i32
    %c0_i32_0 = arith.constant 0 : i32
    %c0_i32_1 = arith.constant 0 : i32
    return %c0_i32, %c0_i32_0 : i32, i32
  }
  func.func @transform_2(%arg0: i32) -> (i32, i32) {
    %c0_i32 = arith.constant 0 : i32
    %c0_i32_0 = arith.constant 0 : i32
    %c0_i32_1 = arith.constant 0 : i32
    return %c0_i32, %c0_i32_0 : i32, i32
  }
  func.func @transform_3(%arg0: i32) -> (i32, i32) {
    %c0_i32 = arith.constant 0 : i32
    %c0_i32_0 = arith.constant 0 : i32
    %c0_i32_1 = arith.constant 0 : i32
    return %c0_i32, %c0_i32_0 : i32, i32
  }
  func.func @transform_4(%arg0: i32) -> (i32, i32) {
    %c0_i32 = arith.constant 0 : i32
    %c0_i32_0 = arith.constant 0 : i32
    %c0_i32_1 = arith.constant 0 : i32
    return %c0_i32, %c0_i32_0 : i32, i32
  }
  func.func @transform_5(%arg0: i32) -> (i32, i32, i32) {
    %c0_i32 = arith.constant 0 : i32
    %c0_i32_0 = arith.constant 0 : i32
    %c0_i32_1 = arith.constant 0 : i32
    %c0_i32_2 = arith.constant 0 : i32
    return %c0_i32, %c0_i32_0, %c0_i32_1 : i32, i32, i32
  }
  func.func @transform_6(%arg0: i32) -> (i32, i32) {
    %c0_i32 = arith.constant 0 : i32
    %c0_i32_0 = arith.constant 0 : i32
    %c0_i32_1 = arith.constant 0 : i32
    return %c0_i32, %c0_i32_0 : i32, i32
  }
}

</mosaic_0001>

<bundles_post_ra>
// kernel: _lambda_.3
= control target key start
LH: loop header
LB: loop body
LE: loop exit
PB: predicated region body
PF: predicated region fallthrough
CT: control target
= control target key end

     0   :  { %v1814_v3 = vmov 0.0   ;;  %vm58_vm0 = vcmask 523264   ;;  %v1815_v57 = vmov 0   ;;  %v48_v58 = vlaneseq  ;;  %s2574_s2 = inlined_call_operand.vmem [shape: f32[64,256], index: 2, kind: input, shape index: {}]   ;;  %s2575_s3 = inlined_call_operand.vmem [shape: f32[64,256], index: 3, kind: input, shape index: {}]   ;;  %s2576_s0 = inlined_call_operand.vmem [shape: f32[64,64], index: 0, kind: input, shape index: {}]   ;;  %s2577_s4 = inlined_call_operand.vmem [shape: f32[1,256], index: 4, kind: input, shape index: {}]   ;;  %s2578_s1 = inlined_call_operand.vmem [shape: s32[8,1], index: 1, kind: input, shape index: {}]   ;;  %s2579_s5 = inlined_call_operand.vmem [shape: f32[8,8,64], index: 5, kind: output, shape index: {0}]   ;;  %s2580_s6 = inlined_call_operand.vmem [shape: f32[8,64], index: 6, kind: output, shape index: {1}]  }
   0x1   :  { %v31_v0 = vld [vmem:[%s2574_s2 + $0x8] sm:$0xff]  ;;  %v33_v1 = vld [vmem:[%s2574_s2 + $0x18] sm:$0xff]  ;;  %v30_v2 = vld [vmem:[%s2574_s2] sm:$0xff]  ;;  %147 = vmatprep.mubr.f32.mxu0 %v1814_v3  ;;  %298 = vmatprep.mubr.f32.mxu1 %v1814_v3  ;;  %vm375_vm5 = vcmask 261120   ;;  %vm382_vm6 = vcmask 523520  }
   0x2   :  { %v1536_v4 = vpack.c.bf16 %v33_v1, %v31_v0  ;;  %v32_v5 = vld [vmem:[%s2574_s2 + $0x10] sm:$0xff]  ;;  %v213_v6 = vld [vmem:[%s2575_s3 + $0x8] sm:$0xff]  ;;  %v215_v7 = vld [vmem:[%s2575_s3 + $0x18] sm:$0xff]  ;;  %1684 = vset.pattern.permute.xlu0 %v1815_v57  ;;  %1685 = vset.pattern.permute.xlu1 %v1815_v57  ;;  %v49_v59 = vshrl.u32 %v48_v58, 7 }
   0x3   :  { %v1538_v8 = vpack.c.bf16 %v32_v5, %v30_v2  ;;  %v1873_v9 = vpack.c.bf16 %v215_v7, %v213_v6  ;;  %v212_v10 = vld [vmem:[%s2575_s3] sm:$0xff]  ;;  %v214_v11 = vld [vmem:[%s2575_s3 + $0x10] sm:$0xff]  ;;  %v35_v12 = vld [vmem:[%s2574_s2 + $0x28] sm:$0xff] }
   0x4   :  { %1537 = vmatprep.subr.bf16.mxu0 %v1536_v4  ;;  %v1884_v13 = vpack.c.bf16 %v214_v11, %v212_v10  ;;  %v37_v14 = vld [vmem:[%s2574_s2 + $0x38] sm:$0xff]  ;;  %v34_v15 = vld [vmem:[%s2574_s2 + $0x20] sm:$0xff]  ;;  %v36_v16 = vld [vmem:[%s2574_s2 + $0x30] sm:$0xff]  ;;  %v50_v60 = vsub.s32 0, %v49_v59  ;;  %v54_v62 = vsub.s32 1, %v49_v59 }
   0x5   :  { %1539 = vmatpush1.bf16.msra.mxu0 %v1538_v8  ;;  %1553 = vmatprep.subr.bf16.mxu1 %v1873_v9  ;;  %v1540_v17 = vpack.c.bf16 %v37_v14, %v35_v12  ;;  %v1542_v18 = vpack.c.bf16 %v36_v16, %v34_v15  ;;  %v217_v19 = vld [vmem:[%s2575_s3 + $0x28] sm:$0xff]  ;;  %v219_v20 = vld [vmem:[%s2575_s3 + $0x38] sm:$0xff]  ;;  %v216_v21 = vld [vmem:[%s2575_s3 + $0x20] sm:$0xff] }
   0x6   :  { %1555 = vmatpush1.bf16.msra.mxu1 %v1884_v13  ;;  %v1906_v22 = vpack.c.bf16 %v219_v20, %v217_v19  ;;  %v218_v23 = vld [vmem:[%s2575_s3 + $0x30] sm:$0xff]  ;;  %v39_v24 = vld [vmem:[%s2574_s2 + $0x48] sm:$0xff]  ;;  %v41_v25 = vld [vmem:[%s2574_s2 + $0x58] sm:$0xff] }
   0x7   :  { %1541 = vmatprep.subr.bf16.mxu0 %v1540_v17  ;;  %v1917_v26 = vpack.c.bf16 %v218_v23, %v216_v21  ;;  %v1544_v27 = vpack.c.bf16 %v41_v25, %v39_v24  ;;  %v38_v28 = vld [vmem:[%s2574_s2 + $0x40] sm:$0xff]  ;;  %v40_v29 = vld [vmem:[%s2574_s2 + $0x50] sm:$0xff]  ;;  %v221_v30 = vld [vmem:[%s2575_s3 + $0x48] sm:$0xff] }
   0x8   :  { %1557 = vmatprep.subr.bf16.mxu1 %v1906_v22  ;;  %v223_v31 = vld [vmem:[%s2575_s3 + $0x58] sm:$0xff]  ;;  %v220_v32 = vld [vmem:[%s2575_s3 + $0x40] sm:$0xff]  ;;  %v222_v33 = vld [vmem:[%s2575_s3 + $0x50] sm:$0xff]  ;;  %v1546_v34 = vpack.c.bf16 %v40_v29, %v38_v28 }
   0x9   :  { %1543 = vmatpush1.bf16.msra.mxu0 %v1542_v18  ;;  %v1938_v35 = vpack.c.bf16 %v223_v31, %v221_v30  ;;  %v43_v36 = vld [vmem:[%s2574_s2 + $0x68] sm:$0xff]  ;;  %v45_v37 = vld [vmem:[%s2574_s2 + $0x78] sm:$0xff]  ;;  %v42_v38 = vld [vmem:[%s2574_s2 + $0x60] sm:$0xff]  ;;  %v1950_v39 = vpack.c.bf16 %v222_v33, %v220_v32 }
   0xa   :  { %1559 = vmatpush1.bf16.msra.mxu1 %v1917_v26  ;;  %1545 = vmatprep.subr.bf16.mxu0 %v1544_v27  ;;  %v1548_v40 = vpack.c.bf16 %v45_v37, %v43_v36  ;;  %v44_v41 = vld [vmem:[%s2574_s2 + $0x70] sm:$0xff]  ;;  %v225_v42 = vld [vmem:[%s2575_s3 + $0x68] sm:$0xff]  ;;  %v227_v43 = vld [vmem:[%s2575_s3 + $0x78] sm:$0xff] }
   0xb   :  { %1561 = vmatprep.subr.bf16.mxu1 %v1938_v35  ;;  %v1962_v44 = vpack.c.bf16 %v227_v43, %v225_v42  ;;  %v224_v45 = vld [vmem:[%s2575_s3 + $0x60] sm:$0xff]  ;;  %v226_v46 = vld [vmem:[%s2575_s3 + $0x70] sm:$0xff]  ;;  %v1550_v47 = vpack.c.bf16 %v44_v41, %v42_v38  ;;  %v23_v50 = vld [vmem:[%s2576_s0 + $0x8] sm:$0xff] }
   0xc   :  { %v1971_v48 = vpack.c.bf16 %v226_v46, %v224_v45  ;;  %v22_v49 = vld [vmem:[%s2576_s0] sm:$0xff]  ;;  %v24_v51 = vld [vmem:[%s2576_s0 + $0x10] sm:$0xff]  ;;  %v25_v52 = vld [vmem:[%s2576_s0 + $0x18] sm:$0xff] }
   0xd   :  { %1547 = vmatpush1.bf16.msra.mxu0 %v1546_v34  ;;  %v26_v53 = vld [vmem:[%s2576_s0 + $0x20] sm:$0xff]  ;;  %v27_v54 = vld [vmem:[%s2576_s0 + $0x28] sm:$0xff]  ;;  %v28_v55 = vld [vmem:[%s2576_s0 + $0x30] sm:$0xff] }
   0xe   :  { %1563 = vmatpush1.bf16.msra.mxu1 %v1950_v39  ;;  %1549 = vmatprep.subr.bf16.mxu0 %v1548_v40  ;;  %v29_v56 = vld [vmem:[%s2576_s0 + $0x38] sm:$0xff]  ;;  %v46_v61 = vld [vmem:[%s2577_s4] sm:$0x3]  ;;  %s1816_s0 = smov 64  }
   0xf   :  { %1565 = vmatprep.subr.bf16.mxu1 %v1962_v44  ;;  %v51_v63 = vrot.slane %v46_v61, %v50_v60  ;;  %v55_v0 = vrot.slane %v46_v61, %v54_v62  ;;  %v2072_v46 = vld [vmem:[%s2578_s1] sm:$0xff]  ;;  %s1817_s1 = smov 32  }
  0x10   :  { %vm355_vm1 = vcmp.gt.s32.totalorder %v2072_v46, 0  ;;  %vm356_vm2 = vcmp.gt.s32.totalorder %v2072_v46, 7  ;;  %vm511_vm7 = vcmp.gt.s32.totalorder %v2072_v46, 1  ;;  %vm512_vm8 = vcmp.gt.s32.totalorder %v2072_v46, 6 }
  0x11   :  { %1551 = vmatpush1.bf16.msra.mxu0 %v1550_v47  ;;  %vm676_vm11 = vcmp.gt.s32.totalorder %v2072_v46, 2  ;;  %vm677_vm12 = vcmp.gt.s32.totalorder %v2072_v46, 5  ;;  %vm841_vm15 = vcmp.gt.s32.totalorder %v2072_v46, 3 }
  0x12   :  { %1567 = vmatpush1.bf16.msra.mxu1 %v1971_v48  ;;  %1585 = vmatprep.subr.bf16.mxu0 %v1873_v9 }
  0x13   :  { %1569 = vmatprep.subr.bf16.mxu1 %v1873_v9 }
  0x14   :  { %1491 = vmatmul.mubr.msk.f32.vlgmr.msra.gmra.mrb[0].mxu0 %vm58_vm0, %v22_v49  ;;  %v357_v49 = vsel %vm355_vm1, 1, %v1815_v57  ;;  %vm842_vm1 = vcmp.gt.s32.totalorder %v2072_v46, 4 }
  0x15   :  { %299 = vmatmul.mubr.f32.vlgmr.msra.gmra.mrb[0].mxu1 %v1814_v3  ;;  %153 = vmatprep.mubr.f32.mxu0 %v1814_v3 }
  0x16   :  { %1571 = vmatpush1.bf16.msra.mxu1 %v1884_v13  ;;  %454 = vmatprep.mubr.f32.mxu1 %v1814_v3 }
  0x17   :  { %1573 = vmatprep.subr.bf16.mxu1 %v1906_v22  ;;  %1587 = vmatpush1.bf16.msra.mxu0 %v1884_v13 }
  0x18   :  { %1492 = vmatmul.mubr.msk.f32.gmra.mrb[2].mxu0 %vm58_vm0, %v23_v50  ;;  %1589 = vmatprep.subr.bf16.mxu0 %v1906_v22 }
  0x19   :  { %159 = vmatprep.mubr.f32.mxu0 %v1814_v3 }
  0x1a   :  { %1575 = vmatpush1.bf16.msra.mxu1 %v1917_v26 }
  0x1b   :  { %1577 = vmatprep.subr.bf16.mxu1 %v1938_v35  ;;  %1591 = vmatpush1.bf16.msra.mxu0 %v1917_v26 }
  0x1c   :  { %1493 = vmatmul.mubr.msk.f32.gmra.mrb[4].mxu0 %vm58_vm0, %v24_v51  ;;  %1593 = vmatprep.subr.bf16.mxu0 %v1938_v35 }
  0x1d   :  { %165 = vmatprep.mubr.f32.mxu0 %v1814_v3 }
  0x1e   :  { %1579 = vmatpush1.bf16.msra.mxu1 %v1950_v39 }
  0x1f   :  { %1581 = vmatprep.subr.bf16.mxu1 %v1962_v44  ;;  %1595 = vmatpush1.bf16.msra.mxu0 %v1950_v39 }
  0x20   :  { %1494 = vmatmul.mubr.msk.f32.gmra.mrb[6].mxu0 %vm58_vm0, %v25_v52  ;;  %1597 = vmatprep.subr.bf16.mxu0 %v1962_v44 }
  0x21   :  { %171 = vmatprep.mubr.f32.mxu0 %v1814_v3 }
  0x22   :  { %1583 = vmatpush1.bf16.msra.mxu1 %v1971_v48 }
  0x23   :  { %1599 = vmatpush1.bf16.msra.mxu0 %v1971_v48  ;;  %1601 = vmatprep.subr.bf16.mxu1 %v1873_v9 }
  0x24   :  { %1495 = vmatmul.mubr.msk.f32.gmra.mrb[8].mxu0 %vm58_vm0, %v26_v53  ;;  %1617 = vmatprep.subr.bf16.mxu0 %v1873_v9 }
  0x25   :  { %177 = vmatprep.mubr.f32.mxu0 %v1814_v3 }
  0x28   :  { %1496 = vmatmul.mubr.msk.f32.gmra.mrb[10].mxu0 %vm58_vm0, %v27_v54 }
  0x29   :  { %183 = vmatprep.mubr.f32.mxu0 %v1814_v3 }
  0x2c   :  { %1497 = vmatmul.mubr.msk.f32.gmra.mrb[12].mxu0 %vm58_vm0, %v28_v55 }
  0x2d   :  { %189 = vmatprep.mubr.f32.mxu0 %v1814_v3 }
  0x30   :  { %1498 = vmatmul.mubr.msk.f32.gmra.mrb[14].mxu0 %vm58_vm0, %v29_v56 }
  0x31   :  { %619 = vmatprep.mubr.f32.mxu0 %v1814_v3 }
  0xe7   :  { %v149_v1 = vpop.f32.mrb[0].mxu0 }
  0xe8   :  { %v150_v2 = vadd.f32 %v149_v1, %v51_v63  ;;  %v151_v4 = vpop.f32.mrb[1].mxu0  ;;  %v300_v5 = vpop.f32.mrb[0].mxu1 }
  0xe9   :  { %v2040_v6 = vadd.f32 %v151_v4, %v55_v0  ;;  %v302_v7 = vpop.f32.mrb[1].mxu1 }
  0xea   :  { %v305_v8 = vadd.f32 %v300_v5, %v150_v2 }
  0xeb   :  { %v155_v10 = vpop.f32.mrb[2].mxu0 }
  0xec   :  { %1686 = vtanh.f32 %v305_v8  ;;  %v2042_v11 = vadd.f32 %v155_v10, %v51_v63  ;;  %v157_v12 = vpop.f32.mrb[3].mxu0  ;;  %v1499_v50 = vmul.f32 -1.442695, %v305_v8 }
  0xed   :  { %v2044_v14 = vadd.f32 %v157_v12, %v55_v0 }
  0xef   :  { %v161_v15 = vpop.f32.mrb[4].mxu0 }
  0xf0   :  { %v2046_v16 = vadd.f32 %v161_v15, %v51_v63  ;;  %v163_v17 = vpop.f32.mrb[5].mxu0 }
  0xf1   :  { %v2048_v18 = vadd.f32 %v163_v17, %v55_v0 }
  0xf3   :  { %v167_v19 = vpop.f32.mrb[6].mxu0 }
  0xf4   :  { %v2050_v20 = vadd.f32 %v167_v19, %v51_v63  ;;  %v169_v21 = vpop.f32.mrb[7].mxu0 }
  0xf5   :  { %v2052_v23 = vadd.f32 %v169_v21, %v55_v0 }
  0xf6   :  { %v1687_v24 = vpop.eup %1686 }
  0xf7   :  { %v173_v25 = vpop.f32.mrb[8].mxu0  ;;  %315 = vrot.lane.b32.xlu0 %v1687_v24, %s1816_s0 }
  0xf8   :  { %v2055_v27 = vadd.f32 %v173_v25, %v51_v63  ;;  %v175_v28 = vpop.f32.mrb[9].mxu0 }
  0xf9   :  { %v2057_v29 = vadd.f32 %v175_v28, %v55_v0 }
  0xfb   :  { %v179_v30 = vpop.f32.mrb[10].mxu0 }
  0xfc   :  { %v2059_v31 = vadd.f32 %v179_v30, %v51_v63  ;;  %v181_v32 = vpop.f32.mrb[11].mxu0 }
  0xfd   :  { %v2061_v33 = vadd.f32 %v181_v32, %v55_v0 }
  0xff   :  { %v185_v34 = vpop.f32.mrb[12].mxu0 }
 0x100   :  { %v2063_v36 = vadd.f32 %v185_v34, %v51_v63  ;;  %v187_v37 = vpop.f32.mrb[13].mxu0 }
 0x101   :  { %v2065_v38 = vadd.f32 %v187_v37, %v55_v0 }
 0x103   :  { %v191_v40 = vpop.f32.mrb[14].mxu0 }
 0x104   :  { %v2067_v41 = vadd.f32 %v191_v40, %v51_v63  ;;  %v193_v42 = vpop.f32.mrb[15].mxu0  ;;  %v364_v63 = vsel %vm356_vm2, 1, %v1815_v57 }
 0x105   :  { %v194_v43 = vadd.f32 %v193_v42, %v55_v0 }
 0x107   :  { %v330_v45 = vadd.f32 %v302_v7, %v194_v43 }
 0x109   :  { %1688 = vtanh.f32 %v330_v45  ;;  %v1500_v53 = vmul.f32 -1.442695, %v330_v45 }
 0x10a   :  { %1690 = vpow2.f32 %v1499_v50 }
 0x113   :  { %v1689_v47 = vpop.eup %1688 }
 0x114   :  { %340 = vrot.lane.b32.xlu0 %v1689_v47, %s1816_s0  ;;  %v1691_v51 = vpop.eup %1690 }
 0x115   :  { %v309_v52 = vadd.f32 1.0, %v1691_v51 }
 0x117   :  { %1692 = vrcp.f32 %v309_v52 }
 0x118   :  { %359 = vperm.xlu0 %1684, %v357_v49   ;;  %1694 = vpow2.f32 %v1500_v53 }
 0x121   :  { %v1693_v54 = vpop.eup %1692 }
 0x122   :  { %v1695_v58 = vpop.eup %1694  ;;  %v313_v0 = vmul.f32 0.0, %v1693_v54 }
 0x123   :  { %v334_v59 = vadd.f32 1.0, %v1695_v58 }
 0x125   :  { %1696 = vrcp.f32 %v334_v59 }
 0x12f   :  { %v1697_v60 = vpop.eup %1696 }
 0x130   :  { %v338_v5 = vmul.f32 0.0, %v1697_v60 }
 0x169   :  { %v316_v55 = vpop.permute.xlu0 %315 }
 0x16a   :  { %v318_v56 = vmul.f32 %v1693_v54, %v316_v55 }
 0x16c   :  { %320 = vrot.lane.b32.xlu1 %v318_v56, %s1817_s1 }
 0x186   :  { %v341_v61 = vpop.permute.xlu0 %340 }
 0x187   :  { %v343_v62 = vmul.f32 %v1697_v60, %v341_v61  ;;  %v520_v61 = vsel %vm512_vm8, 1, %v1815_v57 }
 0x189   :  { %345 = vrot.lane.b32.xlu1 %v343_v62, %s1817_s1 }
 0x18d   :  { %366 = vperm.xlu1 %1685, %v364_v63  }
 0x197   :  { %v2091_v15 = vpop.permute.xlu0 %359 }
 0x198   :  { %vm361_vm3 = vcmp.eq.s32.totalorder %v2091_v15, 1 }
 0x1de   :  { %v321_v1 = vpop.permute.xlu1 %320 }
 0x1df   :  { %v2081_v2 = vadd.f32 %v321_v1, %v313_v0 }
 0x1e1   :  { %1698 = vtanh.f32 %v2081_v2  ;;  %v2139_v62 = vsel %vm361_vm3, %v2081_v2, 0.0 }
 0x1eb   :  { %v1699_v4 = vpop.eup %1698 }
 0x1ec   :  { %326 = vrot.lane.b32.xlu1 %v1699_v4, %s1816_s0 }
 0x1fb   :  { %v346_v7 = vpop.permute.xlu1 %345 }
 0x1fc   :  { %v2085_v8 = vadd.f32 %v346_v7, %v338_v5 }
 0x1fe   :  { %1700 = vtanh.f32 %v2085_v8 }
 0x208   :  { %v1701_v10 = vpop.eup %1700 }
 0x209   :  { %351 = vrot.lane.b32.xlu0 %v1701_v10, %s1816_s0 }
 0x20c   :  { %v2089_v12 = vpop.permute.xlu1 %366 }
 0x20d   :  { %vm368_vm4 = vcmp.eq.s32.totalorder %v2089_v12, 1 }
 0x20e   :  { %v2145_v0 = vsel %vm368_vm4, %v2085_v8, 0.0 }
 0x25e   :  { %v327_v17 = vpop.permute.xlu1 %326 }
 0x25f   :  { %v329_v19 = vmul.f32 %v1693_v54, %v327_v17 }
 0x261   :  { %v2096_v21 = vsel %vm361_vm3, %v329_v19, 0.0 }
 0x262   :  { %372 = vrot.lane.b32.xlu1 %v2096_v21, %s1817_s1 }
 0x27b   :  { %v352_v24 = vpop.permute.xlu0 %351 }
 0x27c   :  { %v354_v25 = vmul.f32 %v1697_v60, %v352_v24  ;;  %v513_v60 = vsel %vm511_vm7, 1, %v1815_v57 }
 0x27e   :  { %v2103_v28 = vsel %vm368_vm4, %v354_v25, 0.0 }
 0x27f   :  { %378 = vrot.lane.b32.xlu0 %v2103_v28, %s1816_s0 }
 0x2d4   :  { %v373_v30 = vpop.permute.xlu1 %372 }
 0x2d5   :  { %376 = vst.msk [vmem:[%s2579_s5] sm:$0xff] %vm375_vm5, %v373_v30 }
 0x2f1   :  { %v379_v32 = vpop.permute.xlu0 %378 }
 0x2f2   :  { %1501 = vst.msk [vmem:[%s2579_s5 + $0x38] sm:$0xff] %vm382_vm6, %v379_v32  ;;  %v386_v34 = vsel %vm375_vm5, %v373_v30, %v379_v32 }
 0x2f3   :  { %1502 = vmatmul.mubr.msk.f32.vlgmr.msra.gmra.mrb[2].mxu1 %vm58_vm0, %v386_v34 }
 0x2f4   :  { %1603 = vmatpush1.bf16.msra.mxu1 %v1884_v13  ;;  %784 = vmatprep.mubr.f32.mxu1 %v1814_v3 }
 0x2f5   :  { %1605 = vmatprep.subr.bf16.mxu1 %v1906_v22 }
 0x2f8   :  { %1607 = vmatpush1.bf16.msra.mxu1 %v1917_v26 }
 0x2f9   :  { %1609 = vmatprep.subr.bf16.mxu1 %v1938_v35 }
 0x2fc   :  { %1611 = vmatpush1.bf16.msra.mxu1 %v1950_v39 }
 0x2fd   :  { %1613 = vmatprep.subr.bf16.mxu1 %v1962_v44 }
 0x300   :  { %1615 = vmatpush1.bf16.msra.mxu1 %v1971_v48 }
 0x301   :  { %1633 = vmatprep.subr.bf16.mxu1 %v1873_v9 }
 0x3c6   :  { %v456_v37 = vpop.f32.mrb[2].mxu1 }
 0x3c7   :  { %v461_v40 = vadd.f32 %v456_v37, %v2042_v11  ;;  %v458_v42 = vpop.f32.mrb[3].mxu1 }
 0x3c8   :  { %v486_v43 = vadd.f32 %v458_v42, %v2065_v38 }
 0x3c9   :  { %1702 = vtanh.f32 %v461_v40  ;;  %v1503_v49 = vmul.f32 -1.442695, %v461_v40 }
 0x3ca   :  { %1704 = vtanh.f32 %v486_v43  ;;  %v1504_v50 = vmul.f32 -1.442695, %v486_v43 }
 0x3cb   :  { %1706 = vpow2.f32 %v1503_v49 }
 0x3cc   :  { %1708 = vpow2.f32 %v1504_v50 }
 0x3d3   :  { %v1703_v45 = vpop.eup %1702 }
 0x3d4   :  { %v1705_v47 = vpop.eup %1704  ;;  %471 = vrot.lane.b32.xlu1 %v1703_v45, %s1816_s0 }
 0x3d5   :  { %496 = vrot.lane.b32.xlu0 %v1705_v47, %s1816_s0  ;;  %v1707_v51 = vpop.eup %1706 }
 0x3d6   :  { %v1709_v52 = vpop.eup %1708  ;;  %v465_v53 = vadd.f32 1.0, %v1707_v51 }
 0x3d7   :  { %v490_v54 = vadd.f32 1.0, %v1709_v52 }
 0x3d8   :  { %1710 = vrcp.f32 %v465_v53 }
 0x3d9   :  { %1712 = vrcp.f32 %v490_v54 }
 0x3e2   :  { %v1711_v11 = vpop.eup %1710 }
 0x3e3   :  { %v1713_v55 = vpop.eup %1712  ;;  %v469_v63 = vmul.f32 %v1711_v11, %v2139_v62 }
 0x3e4   :  { %v494_v4 = vmul.f32 %v1713_v55, %v2145_v0 }
 0x446   :  { %v472_v38 = vpop.permute.xlu1 %471 }
 0x447   :  { %v474_v56 = vmul.f32 %v1711_v11, %v472_v38  ;;  %v497_v58 = vpop.permute.xlu0 %496 }
 0x448   :  { %v499_v59 = vmul.f32 %v1713_v55, %v497_v58 }
 0x449   :  { %476 = vrot.lane.b32.xlu1 %v474_v56, %s1817_s1 }
 0x44a   :  { %501 = vrot.lane.b32.xlu0 %v499_v59, %s1817_s1 }
 0x44d   :  { %515 = vperm.xlu1 %1685, %v513_v60   ;;  %v678_v60 = vsel %vm676_vm11, 1, %v1815_v57 }
 0x44e   :  { %522 = vperm.xlu0 %1684, %v520_v61   ;;  %v685_v61 = vsel %vm677_vm12, 1, %v1815_v57 }
 0x4bb   :  { %v477_v1 = vpop.permute.xlu1 %476 }
 0x4bc   :  { %v2148_v5 = vadd.f32 %v477_v1, %v469_v63  ;;  %v502_v7 = vpop.permute.xlu0 %501 }
 0x4bd   :  { %v2150_v10 = vadd.f32 %v502_v7, %v494_v4 }
 0x4be   :  { %1714 = vtanh.f32 %v2148_v5 }
 0x4bf   :  { %1716 = vtanh.f32 %v2150_v10 }
 0x4c8   :  { %v1715_v2 = vpop.eup %1714 }
 0x4c9   :  { %v1717_v17 = vpop.eup %1716  ;;  %482 = vrot.lane.b32.xlu1 %v1715_v2, %s1816_s0 }
 0x4ca   :  { %507 = vrot.lane.b32.xlu0 %v1717_v17, %s1816_s0 }
 0x4cc   :  { %v2156_v8 = vpop.permute.xlu1 %515 }
 0x4cd   :  { %v2158_v19 = vpop.permute.xlu0 %522  ;;  %vm517_vm9 = vcmp.eq.s32.totalorder %v2156_v8, 1 }
 0x4ce   :  { %vm524_vm10 = vcmp.eq.s32.totalorder %v2158_v19, 1  ;;  %v2207_v63 = vsel %vm517_vm9, %v2148_v5, %v2139_v62 }
 0x4cf   :  { %v2214_v4 = vsel %vm524_vm10, %v2150_v10, %v2145_v0 }
 0x53b   :  { %v483_v24 = vpop.permute.xlu1 %482 }
 0x53c   :  { %v2160_v25 = vmul.f32 %v1711_v11, %v483_v24  ;;  %v508_v30 = vpop.permute.xlu0 %507 }
 0x53d   :  { %v2163_v32 = vmul.f32 %v1713_v55, %v508_v30 }
 0x53e   :  { %v2170_v34 = vsel %vm517_vm9, %v2160_v25, %v2096_v21 }
 0x53f   :  { %544 = vrot.lane.b32.xlu1 %v2170_v34, %s1817_s1  ;;  %v2178_v37 = vsel %vm524_vm10, %v2163_v32, %v2103_v28 }
 0x540   :  { %548 = vrot.lane.b32.xlu0 %v2178_v37, %s1816_s0 }
 0x5b1   :  { %v545_v40 = vpop.permute.xlu1 %544 }
 0x5b2   :  { %v549_v42 = vpop.permute.xlu0 %548 }
 0x5b3   :  { %v551_v43 = vsel %vm375_vm5, %v545_v40, %v549_v42 }
 0x5b4   :  { %1507 = vmatmul.mubr.msk.f32.vlgmr.msra.gmra.mrb[16].mxu0 %vm58_vm0, %v551_v43 }
 0x5b5   :  { %1619 = vmatpush1.bf16.msra.mxu0 %v1884_v13  ;;  %949 = vmatprep.mubr.f32.mxu0 %v1814_v3 }
 0x5b6   :  { %1621 = vmatprep.subr.bf16.mxu0 %v1906_v22 }
 0x5b9   :  { %1623 = vmatpush1.bf16.msra.mxu0 %v1917_v26 }
 0x5ba   :  { %1625 = vmatprep.subr.bf16.mxu0 %v1938_v35 }
 0x5bd   :  { %1627 = vmatpush1.bf16.msra.mxu0 %v1950_v39 }
 0x5be   :  { %1629 = vmatprep.subr.bf16.mxu0 %v1962_v44 }
 0x5c1   :  { %1631 = vmatpush1.bf16.msra.mxu0 %v1971_v48 }
 0x5c2   :  { %1649 = vmatprep.subr.bf16.mxu0 %v1873_v9 }
 0x687   :  { %v621_v21 = vpop.f32.mrb[16].mxu0 }
 0x688   :  { %v626_v28 = vadd.f32 %v621_v21, %v2046_v16  ;;  %v623_v45 = vpop.f32.mrb[17].mxu0 }
 0x689   :  { %v651_v47 = vadd.f32 %v623_v45, %v2061_v33 }
 0x68a   :  { %1718 = vtanh.f32 %v626_v28  ;;  %v1508_v51 = vmul.f32 -1.442695, %v626_v28 }
 0x68b   :  { %1720 = vtanh.f32 %v651_v47  ;;  %v1509_v52 = vmul.f32 -1.442695, %v651_v47 }
 0x68c   :  { %1722 = vpow2.f32 %v1508_v51 }
 0x68d   :  { %1724 = vpow2.f32 %v1509_v52 }
 0x694   :  { %v1719_v49 = vpop.eup %1718 }
 0x695   :  { %v1721_v50 = vpop.eup %1720  ;;  %636 = vrot.lane.b32.xlu1 %v1719_v49, %s1816_s0 }
 0x696   :  { %661 = vrot.lane.b32.xlu0 %v1721_v50, %s1816_s0  ;;  %v1723_v53 = vpop.eup %1722 }
 0x697   :  { %v1725_v54 = vpop.eup %1724  ;;  %v630_v11 = vadd.f32 1.0, %v1723_v53 }
 0x698   :  { %v655_v38 = vadd.f32 1.0, %v1725_v54 }
 0x699   :  { %1726 = vrcp.f32 %v630_v11 }
 0x69a   :  { %1728 = vrcp.f32 %v655_v38 }
 0x6a3   :  { %v1727_v16 = vpop.eup %1726 }
 0x6a4   :  { %v1729_v55 = vpop.eup %1728  ;;  %v634_v1 = vmul.f32 %v1727_v16, %v2207_v63 }
 0x6a5   :  { %v659_v2 = vmul.f32 %v1729_v55, %v2214_v4 }
 0x707   :  { %v637_v33 = vpop.permute.xlu1 %636 }
 0x708   :  { %v639_v56 = vmul.f32 %v1727_v16, %v637_v33  ;;  %v662_v58 = vpop.permute.xlu0 %661 }
 0x709   :  { %v664_v59 = vmul.f32 %v1729_v55, %v662_v58 }
 0x70a   :  { %641 = vrot.lane.b32.xlu1 %v639_v56, %s1817_s1 }
 0x70b   :  { %666 = vrot.lane.b32.xlu0 %v664_v59, %s1817_s1 }
 0x70e   :  { %680 = vperm.xlu1 %1685, %v678_v60  }
 0x70f   :  { %687 = vperm.xlu0 %1684, %v685_v61   ;;  %v843_v61 = vsel %vm841_vm15, 1, %v1815_v57 }
 0x77c   :  { %v642_v7 = vpop.permute.xlu1 %641 }
 0x77d   :  { %v2217_v17 = vadd.f32 %v642_v7, %v634_v1  ;;  %v667_v24 = vpop.permute.xlu0 %666  ;;  %v850_v1 = vsel %vm842_vm1, 1, %v1815_v57 }
 0x77e   :  { %v2219_v30 = vadd.f32 %v667_v24, %v659_v2 }
 0x77f   :  { %1730 = vtanh.f32 %v2217_v17 }
 0x780   :  { %1732 = vtanh.f32 %v2219_v30 }
 0x789   :  { %v1731_v62 = vpop.eup %1730 }
 0x78a   :  { %v1733_v5 = vpop.eup %1732  ;;  %647 = vrot.lane.b32.xlu1 %v1731_v62, %s1816_s0 }
 0x78b   :  { %672 = vrot.lane.b32.xlu0 %v1733_v5, %s1816_s0 }
 0x78d   :  { %v2225_v0 = vpop.permute.xlu1 %680 }
 0x78e   :  { %v2227_v10 = vpop.permute.xlu0 %687  ;;  %vm682_vm13 = vcmp.eq.s32.totalorder %v2225_v0, 1 }
 0x78f   :  { %vm689_vm14 = vcmp.eq.s32.totalorder %v2227_v10, 1  ;;  %v2276_v7 = vsel %vm682_vm13, %v2217_v17, %v2207_v63 }
 0x790   :  { %v2283_v46 = vsel %vm689_vm14, %v2219_v30, %v2214_v4 }
 0x7fc   :  { %v648_v40 = vpop.permute.xlu1 %647 }
 0x7fd   :  { %v2229_v42 = vmul.f32 %v1727_v16, %v648_v40  ;;  %v673_v43 = vpop.permute.xlu0 %672 }
 0x7fe   :  { %v2232_v21 = vmul.f32 %v1729_v55, %v673_v43 }
 0x7ff   :  { %v2239_v28 = vsel %vm682_vm13, %v2229_v42, %v2170_v34 }
 0x800   :  { %709 = vrot.lane.b32.xlu1 %v2239_v28, %s1817_s1  ;;  %v2247_v45 = vsel %vm689_vm14, %v2232_v21, %v2178_v37 }
 0x801   :  { %713 = vrot.lane.b32.xlu0 %v2247_v45, %s1816_s0 }
 0x872   :  { %v710_v47 = vpop.permute.xlu1 %709 }
 0x873   :  { %v714_v49 = vpop.permute.xlu0 %713 }
 0x874   :  { %v716_v50 = vsel %vm375_vm5, %v710_v47, %v714_v49 }
 0x875   :  { %1512 = vmatmul.mubr.msk.f32.vlgmr.msra.gmra.mrb[4].mxu1 %vm58_vm0, %v716_v50 }
 0x876   :  { %1635 = vmatpush1.bf16.msra.mxu1 %v1884_v13  ;;  %1100 = vmatprep.mubr.f32.mxu1 %v1814_v3 }
 0x877   :  { %1637 = vmatprep.subr.bf16.mxu1 %v1906_v22 }
 0x87a   :  { %1639 = vmatpush1.bf16.msra.mxu1 %v1917_v26 }
 0x87b   :  { %1641 = vmatprep.subr.bf16.mxu1 %v1938_v35 }
 0x87e   :  { %1643 = vmatpush1.bf16.msra.mxu1 %v1950_v39 }
 0x87f   :  { %1645 = vmatprep.subr.bf16.mxu1 %v1962_v44 }
 0x882   :  { %1647 = vmatpush1.bf16.msra.mxu1 %v1971_v48 }
 0x883   :  { %1665 = vmatprep.subr.bf16.mxu1 %v1873_v9 }
 0x948   :  { %v786_v34 = vpop.f32.mrb[4].mxu1 }
 0x949   :  { %v791_v37 = vadd.f32 %v786_v34, %v2050_v20  ;;  %v788_v51 = vpop.f32.mrb[5].mxu1 }
 0x94a   :  { %v816_v52 = vadd.f32 %v788_v51, %v2057_v29 }
 0x94b   :  { %1734 = vtanh.f32 %v791_v37  ;;  %v1513_v11 = vmul.f32 -1.442695, %v791_v37 }
 0x94c   :  { %1736 = vtanh.f32 %v816_v52  ;;  %v1514_v38 = vmul.f32 -1.442695, %v816_v52 }
 0x94d   :  { %1738 = vpow2.f32 %v1513_v11 }
 0x94e   :  { %1740 = vpow2.f32 %v1514_v38 }
 0x955   :  { %v1735_v53 = vpop.eup %1734 }
 0x956   :  { %v1737_v54 = vpop.eup %1736  ;;  %801 = vrot.lane.b32.xlu1 %v1735_v53, %s1816_s0 }
 0x957   :  { %826 = vrot.lane.b32.xlu0 %v1737_v54, %s1816_s0  ;;  %v1739_v16 = vpop.eup %1738 }
 0x958   :  { %v1741_v9 = vpop.eup %1740  ;;  %v795_v33 = vadd.f32 1.0, %v1739_v16 }
 0x959   :  { %v820_v55 = vadd.f32 1.0, %v1741_v9 }
 0x95a   :  { %1742 = vrcp.f32 %v795_v33 }
 0x95b   :  { %1744 = vrcp.f32 %v820_v55 }
 0x964   :  { %v1743_v20 = vpop.eup %1742 }
 0x965   :  { %v1745_v56 = vpop.eup %1744  ;;  %v799_v2 = vmul.f32 %v1743_v20, %v2276_v7 }
 0x966   :  { %v824_v62 = vmul.f32 %v1745_v56, %v2283_v46 }
 0x9c8   :  { %v802_v29 = vpop.permute.xlu1 %801 }
 0x9c9   :  { %v804_v58 = vmul.f32 %v1743_v20, %v802_v29  ;;  %v827_v59 = vpop.permute.xlu0 %826 }
 0x9ca   :  { %v829_v60 = vmul.f32 %v1745_v56, %v827_v59 }
 0x9cb   :  { %806 = vrot.lane.b32.xlu1 %v804_v58, %s1817_s1 }
 0x9cc   :  { %831 = vrot.lane.b32.xlu0 %v829_v60, %s1817_s1 }
 0x9cf   :  { %845 = vperm.xlu1 %1685, %v843_v61  }
 0x9d0   :  { %852 = vperm.xlu0 %1684, %v850_v1  }
 0xa3d   :  { %v807_v24 = vpop.permute.xlu1 %806 }
 0xa3e   :  { %v809_v57 = vadd.f32 %v807_v24, %v799_v2  ;;  %v832_v5 = vpop.permute.xlu0 %831 }
 0xa3f   :  { %v834_v40 = vadd.f32 %v832_v5, %v824_v62 }
 0xa40   :  { %1746 = vtanh.f32 %v809_v57 }
 0xa41   :  { %1748 = vtanh.f32 %v834_v40 }
 0xa4a   :  { %v1747_v43 = vpop.eup %1746 }
 0xa4b   :  { %v1749_v47 = vpop.eup %1748  ;;  %812 = vrot.lane.b32.xlu1 %v1747_v43, %s1816_s0 }
 0xa4c   :  { %837 = vrot.lane.b32.xlu0 %v1749_v47, %s1816_s0 }
 0xa4e   :  { %v2288_v63 = vpop.permute.xlu1 %845 }
 0xa4f   :  { %v2290_v17 = vpop.permute.xlu0 %852  ;;  %vm847_vm2 = vcmp.eq.s32.totalorder %v2288_v63, 1 }
 0xa50   :  { %vm854_vm7 = vcmp.eq.s32.totalorder %v2290_v17, 1  ;;  %v2333_v1 = vsel %vm847_vm2, %v809_v57, %v2276_v7 }
 0xa51   :  { %v2339_v24 = vsel %vm854_vm7, %v834_v40, %v2283_v46 }
 0xabd   :  { %v813_v4 = vpop.permute.xlu1 %812 }
 0xabe   :  { %v2292_v30 = vmul.f32 %v1743_v20, %v813_v4  ;;  %v838_v49 = vpop.permute.xlu0 %837 }
 0xabf   :  { %v2295_v50 = vmul.f32 %v1745_v56, %v838_v49 }
 0xac0   :  { %v2302_v34 = vsel %vm847_vm2, %v2292_v30, %v2239_v28 }
 0xac1   :  { %874 = vrot.lane.b32.xlu1 %v2302_v34, %s1817_s1  ;;  %v2310_v37 = vsel %vm854_vm7, %v2295_v50, %v2247_v45 }
 0xac2   :  { %878 = vrot.lane.b32.xlu0 %v2310_v37, %s1816_s0 }
 0xb33   :  { %v875_v51 = vpop.permute.xlu1 %874 }
 0xb34   :  { %v879_v52 = vpop.permute.xlu0 %878 }
 0xb35   :  { %v881_v53 = vsel %vm375_vm5, %v875_v51, %v879_v52 }
 0xb36   :  { %1517 = vmatmul.mubr.msk.f32.vlgmr.msra.gmra.mrb[18].mxu0 %vm58_vm0, %v881_v53 }
 0xb37   :  { %1651 = vmatpush1.bf16.msra.mxu0 %v1884_v13  ;;  %1251 = vmatprep.mubr.f32.mxu0 %v1814_v3 }
 0xb38   :  { %1653 = vmatprep.subr.bf16.mxu0 %v1906_v22 }
 0xb3b   :  { %1655 = vmatpush1.bf16.msra.mxu0 %v1917_v26 }
 0xb3c   :  { %1657 = vmatprep.subr.bf16.mxu0 %v1938_v35 }
 0xb3f   :  { %1659 = vmatpush1.bf16.msra.mxu0 %v1950_v39 }
 0xb40   :  { %1661 = vmatprep.subr.bf16.mxu0 %v1962_v44 }
 0xb43   :  { %1663 = vmatpush1.bf16.msra.mxu0 %v1971_v48 }
 0xc09   :  { %v951_v28 = vpop.f32.mrb[18].mxu0 }
 0xc0a   :  { %v956_v45 = vadd.f32 %v951_v28, %v2055_v27  ;;  %v953_v54 = vpop.f32.mrb[19].mxu0 }
 0xc0b   :  { %v981_v11 = vadd.f32 %v953_v54, %v2052_v23 }
 0xc0c   :  { %1750 = vtanh.f32 %v956_v45  ;;  %v1518_v9 = vmul.f32 -1.442695, %v956_v45 }
 0xc0d   :  { %1752 = vtanh.f32 %v981_v11  ;;  %v1519_v33 = vmul.f32 -1.442695, %v981_v11 }
 0xc0e   :  { %1754 = vpow2.f32 %v1518_v9 }
 0xc0f   :  { %1756 = vpow2.f32 %v1519_v33 }
 0xc16   :  { %v1751_v38 = vpop.eup %1750 }
 0xc17   :  { %v1753_v16 = vpop.eup %1752  ;;  %966 = vrot.lane.b32.xlu1 %v1751_v38, %s1816_s0 }
 0xc18   :  { %991 = vrot.lane.b32.xlu0 %v1753_v16, %s1816_s0  ;;  %v1755_v55 = vpop.eup %1754 }
 0xc19   :  { %v1757_v20 = vpop.eup %1756  ;;  %v960_v29 = vadd.f32 1.0, %v1755_v55 }
 0xc1a   :  { %v985_v56 = vadd.f32 1.0, %v1757_v20 }
 0xc1b   :  { %1758 = vrcp.f32 %v960_v29 }
 0xc1c   :  { %1760 = vrcp.f32 %v985_v56 }
 0xc25   :  { %v1759_v27 = vpop.eup %1758 }
 0xc26   :  { %v1761_v58 = vpop.eup %1760  ;;  %v964_v2 = vmul.f32 %v1759_v27, %v2333_v1 }
 0xc27   :  { %v989_v5 = vmul.f32 %v1761_v58, %v2339_v24 }
 0xc89   :  { %v967_v23 = vpop.permute.xlu1 %966 }
 0xc8a   :  { %v969_v59 = vmul.f32 %v1759_v27, %v967_v23  ;;  %v992_v60 = vpop.permute.xlu0 %991 }
 0xc8b   :  { %v994_v61 = vmul.f32 %v1761_v58, %v992_v60 }
 0xc8c   :  { %971 = vrot.lane.b32.xlu1 %v969_v59, %s1817_s1 }
 0xc8d   :  { %996 = vrot.lane.b32.xlu0 %v994_v61, %s1817_s1 }
 0xcfe   :  { %v972_v62 = vpop.permute.xlu1 %971 }
 0xcff   :  { %v974_v43 = vadd.f32 %v972_v62, %v964_v2  ;;  %v997_v47 = vpop.permute.xlu0 %996 }
 0xd00   :  { %v999_v4 = vadd.f32 %v997_v47, %v989_v5 }
 0xd01   :  { %1762 = vtanh.f32 %v974_v43  ;;  %v1007_v20 = vsel %vm854_vm7, %v974_v43, %v2333_v1 }
 0xd02   :  { %1764 = vtanh.f32 %v999_v4  ;;  %v1009_v56 = vsel %vm847_vm2, %v999_v4, %v2339_v24 }
 0xd0b   :  { %v1763_v49 = vpop.eup %1762 }
 0xd0c   :  { %v1765_v51 = vpop.eup %1764  ;;  %977 = vrot.lane.b32.xlu1 %v1763_v49, %s1816_s0 }
 0xd0d   :  { %1002 = vrot.lane.b32.xlu0 %v1765_v51, %s1816_s0 }
 0xd7e   :  { %v978_v7 = vpop.permute.xlu1 %977 }
 0xd7f   :  { %v2344_v57 = vmul.f32 %v1759_v27, %v978_v7  ;;  %v1003_v52 = vpop.permute.xlu0 %1002 }
 0xd80   :  { %v2346_v46 = vmul.f32 %v1761_v58, %v1003_v52 }
 0xd81   :  { %v2352_v40 = vsel %vm854_vm7, %v2344_v57, %v2302_v34 }
 0xd82   :  { %1025 = vrot.lane.b32.xlu1 %v2352_v40, %s1817_s1  ;;  %v2360_v53 = vsel %vm847_vm2, %v2346_v46, %v2310_v37 }
 0xd83   :  { %1029 = vrot.lane.b32.xlu0 %v2360_v53, %s1816_s0 }
 0xdf4   :  { %v1026_v28 = vpop.permute.xlu1 %1025 }
 0xdf5   :  { %v1030_v45 = vpop.permute.xlu0 %1029 }
 0xdf6   :  { %v1032_v54 = vsel %vm375_vm5, %v1026_v28, %v1030_v45 }
 0xdf7   :  { %1522 = vmatmul.mubr.msk.f32.vlgmr.msra.gmra.mrb[6].mxu1 %vm58_vm0, %v1032_v54 }
 0xdf8   :  { %1667 = vmatpush1.bf16.msra.mxu1 %v1884_v13  ;;  %1402 = vmatprep.mubr.f32.mxu1 %v1814_v3 }
 0xdf9   :  { %1669 = vmatprep.subr.bf16.mxu1 %v1906_v22 }
 0xdfc   :  { %1671 = vmatpush1.bf16.msra.mxu1 %v1917_v26 }
 0xdfd   :  { %1673 = vmatprep.subr.bf16.mxu1 %v1938_v35 }
 0xe00   :  { %1675 = vmatpush1.bf16.msra.mxu1 %v1950_v39 }
 0xe01   :  { %1677 = vmatprep.subr.bf16.mxu1 %v1962_v44 }
 0xe04   :  { %1679 = vmatpush1.bf16.msra.mxu1 %v1971_v48 }
 0xeca   :  { %v1102_v34 = vpop.f32.mrb[6].mxu1 }
 0xecb   :  { %v1107_v37 = vadd.f32 %v1102_v34, %v2059_v31  ;;  %v1104_v11 = vpop.f32.mrb[7].mxu1 }
 0xecc   :  { %v1132_v13 = vadd.f32 %v1104_v11, %v2048_v18 }
 0xecd   :  { %1766 = vtanh.f32 %v1107_v37  ;;  %v1523_v26 = vmul.f32 -1.442695, %v1107_v37 }
 0xece   :  { %1768 = vtanh.f32 %v1132_v13  ;;  %v1524_v35 = vmul.f32 -1.442695, %v1132_v13 }
 0xecf   :  { %1770 = vpow2.f32 %v1523_v26 }
 0xed0   :  { %1772 = vpow2.f32 %v1524_v35 }
 0xed7   :  { %v1767_v3 = vpop.eup %1766 }
 0xed8   :  { %v1769_v22 = vpop.eup %1768  ;;  %1117 = vrot.lane.b32.xlu1 %v1767_v3, %s1816_s0 }
 0xed9   :  { %1142 = vrot.lane.b32.xlu0 %v1769_v22, %s1816_s0  ;;  %v1771_v39 = vpop.eup %1770 }
 0xeda   :  { %v1773_v44 = vpop.eup %1772  ;;  %v1111_v48 = vadd.f32 1.0, %v1771_v39 }
 0xedb   :  { %v1136_v38 = vadd.f32 1.0, %v1773_v44 }
 0xedc   :  { %1774 = vrcp.f32 %v1111_v48 }
 0xedd   :  { %1776 = vrcp.f32 %v1136_v38 }
 0xee6   :  { %v1775_v31 = vpop.eup %1774 }
 0xee7   :  { %v1777_v16 = vpop.eup %1776  ;;  %v1115_v29 = vmul.f32 %v1775_v31, %v1007_v20 }
 0xee8   :  { %v1140_v23 = vmul.f32 %v1777_v16, %v1009_v56 }
 0xf4a   :  { %v1118_v18 = vpop.permute.xlu1 %1117 }
 0xf4b   :  { %v1120_v9 = vmul.f32 %v1775_v31, %v1118_v18  ;;  %v1143_v33 = vpop.permute.xlu0 %1142 }
 0xf4c   :  { %v1145_v55 = vmul.f32 %v1777_v16, %v1143_v33 }
 0xf4d   :  { %1122 = vrot.lane.b32.xlu1 %v1120_v9, %s1817_s1 }
 0xf4e   :  { %1147 = vrot.lane.b32.xlu0 %v1145_v55, %s1817_s1 }
 0xfbf   :  { %v1123_v27 = vpop.permute.xlu1 %1122 }
 0xfc0   :  { %v1125_v58 = vadd.f32 %v1123_v27, %v1115_v29  ;;  %v1148_v59 = vpop.permute.xlu0 %1147 }
 0xfc1   :  { %v1150_v60 = vadd.f32 %v1148_v59, %v1140_v23 }
 0xfc2   :  { %1778 = vtanh.f32 %v1125_v58  ;;  %v1158_v44 = vsel %vm689_vm14, %v1125_v58, %v1007_v20 }
 0xfc3   :  { %1780 = vtanh.f32 %v1150_v60  ;;  %v1160_v38 = vsel %vm682_vm13, %v1150_v60, %v1009_v56 }
 0xfcc   :  { %v1779_v61 = vpop.eup %1778 }
 0xfcd   :  { %v1781_v2 = vpop.eup %1780  ;;  %1128 = vrot.lane.b32.xlu1 %v1779_v61, %s1816_s0 }
 0xfce   :  { %1153 = vrot.lane.b32.xlu0 %v1781_v2, %s1816_s0 }
0x103f   :  { %v1129_v62 = vpop.permute.xlu1 %1128 }
0x1040   :  { %v2388_v1 = vmul.f32 %v1775_v31, %v1129_v62  ;;  %v1154_v5 = vpop.permute.xlu0 %1153 }
0x1041   :  { %v2390_v43 = vmul.f32 %v1777_v16, %v1154_v5 }
0x1042   :  { %v1157_v24 = vsel %vm689_vm14, %v2388_v1, %v2352_v40 }
0x1043   :  { %1176 = vrot.lane.b32.xlu1 %v1157_v24, %s1817_s1  ;;  %v1159_v47 = vsel %vm682_vm13, %v2390_v43, %v2360_v53 }
0x1044   :  { %1180 = vrot.lane.b32.xlu0 %v1159_v47, %s1816_s0 }
0x10b5   :  { %v1177_v4 = vpop.permute.xlu1 %1176 }
0x10b6   :  { %v1181_v49 = vpop.permute.xlu0 %1180 }
0x10b7   :  { %v1183_v51 = vsel %vm375_vm5, %v1177_v4, %v1181_v49 }
0x10b8   :  { %1527 = vmatmul.mubr.msk.f32.vlgmr.msra.gmra.mrb[20].mxu0 %vm58_vm0, %v1183_v51 }
0x118b   :  { %v1253_v7 = vpop.f32.mrb[20].mxu0 }
0x118c   :  { %v1258_v52 = vadd.f32 %v1253_v7, %v2063_v36  ;;  %v1255_v28 = vpop.f32.mrb[21].mxu0 }
0x118d   :  { %v1283_v40 = vadd.f32 %v1255_v28, %v2044_v14 }
0x118e   :  { %1782 = vtanh.f32 %v1258_v52  ;;  %v1528_v53 = vmul.f32 -1.442695, %v1258_v52 }
0x118f   :  { %1784 = vtanh.f32 %v1283_v40  ;;  %v1529_v34 = vmul.f32 -1.442695, %v1283_v40 }
0x1190   :  { %1786 = vpow2.f32 %v1528_v53 }
0x1191   :  { %1788 = vpow2.f32 %v1529_v34 }
0x1198   :  { %v1783_v45 = vpop.eup %1782 }
0x1199   :  { %v1785_v54 = vpop.eup %1784  ;;  %1268 = vrot.lane.b32.xlu1 %v1783_v45, %s1816_s0 }
0x119a   :  { %1293 = vrot.lane.b32.xlu0 %v1785_v54, %s1816_s0  ;;  %v1787_v37 = vpop.eup %1786 }
0x119b   :  { %v1789_v11 = vpop.eup %1788  ;;  %v1262_v13 = vadd.f32 1.0, %v1787_v37 }
0x119c   :  { %v1287_v3 = vadd.f32 1.0, %v1789_v11 }
0x119d   :  { %1790 = vrcp.f32 %v1262_v13 }
0x119e   :  { %1792 = vrcp.f32 %v1287_v3 }
0x11a7   :  { %v1791_v36 = vpop.eup %1790 }
0x11a8   :  { %v1793_v22 = vpop.eup %1792  ;;  %v1266_v48 = vmul.f32 %v1791_v36, %v1158_v44 }
0x11a9   :  { %v1291_v18 = vmul.f32 %v1793_v22, %v1160_v38 }
0x120b   :  { %v1269_v14 = vpop.permute.xlu1 %1268 }
0x120c   :  { %v1271_v26 = vmul.f32 %v1791_v36, %v1269_v14  ;;  %v1294_v35 = vpop.permute.xlu0 %1293 }
0x120d   :  { %v1296_v39 = vmul.f32 %v1793_v22, %v1294_v35 }
0x120e   :  { %1273 = vrot.lane.b32.xlu1 %v1271_v26, %s1817_s1 }
0x120f   :  { %1298 = vrot.lane.b32.xlu0 %v1296_v39, %s1817_s1 }
0x1280   :  { %v1274_v31 = vpop.permute.xlu1 %1273 }
0x1281   :  { %v1276_v16 = vadd.f32 %v1274_v31, %v1266_v48  ;;  %v1299_v9 = vpop.permute.xlu0 %1298  ;;  %v692_v31 = vsel %vm682_vm13, %v2229_v42, 0.0  ;;  %v1016_v42 = vsel %vm847_vm2, %v2346_v46, 0.0 }
0x1282   :  { %v1301_v33 = vadd.f32 %v1299_v9, %v1291_v18  ;;  %v699_v18 = vsel %vm689_vm14, %v2232_v21, 0.0  ;;  %v1010_v21 = vsel %vm854_vm7, %v2344_v57, 0.0 }
0x1283   :  { %1794 = vtanh.f32 %v1276_v16  ;;  %v1309_v11 = vsel %vm524_vm10, %v1276_v16, %v1158_v44  ;;  %v527_v44 = vsel %vm517_vm9, %v2160_v25, 0.0  ;;  %v857_v25 = vsel %vm847_vm2, %v2292_v30, 0.0 }
0x1284   :  { %1796 = vtanh.f32 %v1301_v33  ;;  %v1311_v3 = vsel %vm517_vm9, %v1301_v33, %v1160_v38  ;;  %v534_v38 = vsel %vm524_vm10, %v2163_v32, 0.0  ;;  %v864_v32 = vsel %vm854_vm7, %v2295_v50, 0.0 }
0x1285   :  { %v1167_v30 = vsel %vm682_vm13, %v2390_v43, 0.0  ;;  %v1161_v50 = vsel %vm689_vm14, %v2388_v1, 0.0 }
0x128d   :  { %v1795_v55 = vpop.eup %1794 }
0x128e   :  { %v1797_v29 = vpop.eup %1796  ;;  %1279 = vrot.lane.b32.xlu1 %v1795_v55, %s1816_s0 }
0x128f   :  { %1304 = vrot.lane.b32.xlu0 %v1797_v29, %s1816_s0 }
0x1300   :  { %v1280_v27 = vpop.permute.xlu1 %1279 }
0x1301   :  { %v2416_v23 = vmul.f32 %v1791_v36, %v1280_v27  ;;  %v1305_v20 = vpop.permute.xlu0 %1304 }
0x1302   :  { %v2418_v58 = vmul.f32 %v1793_v22, %v1305_v20 }
0x1303   :  { %v2423_v56 = vsel %vm524_vm10, %v2416_v23, %v1157_v24  ;;  %v1312_v17 = vsel %vm524_vm10, %v2416_v23, 0.0 }
0x1304   :  { %1327 = vrot.lane.b32.xlu1 %v2423_v56, %s1817_s1  ;;  %v2430_v59 = vsel %vm517_vm9, %v2418_v58, %v1159_v47  ;;  %v1318_v63 = vsel %vm517_vm9, %v2418_v58, 0.0 }
0x1305   :  { %1331 = vrot.lane.b32.xlu0 %v2430_v59, %s1816_s0 }
0x1376   :  { %v1328_v60 = vpop.permute.xlu1 %1327 }
0x1377   :  { %v1332_v61 = vpop.permute.xlu0 %1331 }
0x1378   :  { %v1334_v2 = vsel %vm375_vm5, %v1328_v60, %v1332_v61 }
0x1379   :  { %1532 = vmatmul.mubr.msk.f32.vlgmr.msra.gmra.mrb[8].mxu1 %vm58_vm0, %v1334_v2 }
0x144c   :  { %v1404_v62 = vpop.f32.mrb[8].mxu1 }
0x144d   :  { %v1409_v5 = vadd.f32 %v1404_v62, %v2067_v41  ;;  %v1406_v24 = vpop.f32.mrb[9].mxu1 }
0x144e   :  { %v1434_v4 = vadd.f32 %v1406_v24, %v2040_v6 }
0x144f   :  { %1798 = vtanh.f32 %v1409_v5  ;;  %v1533_v51 = vmul.f32 -1.442695, %v1409_v5 }
0x1450   :  { %1800 = vtanh.f32 %v1434_v4  ;;  %v1534_v7 = vmul.f32 -1.442695, %v1434_v4 }
0x1451   :  { %1802 = vpow2.f32 %v1533_v51 }
0x1452   :  { %1804 = vpow2.f32 %v1534_v7 }
0x1459   :  { %v1799_v49 = vpop.eup %1798 }
0x145a   :  { %v1801_v47 = vpop.eup %1800  ;;  %1419 = vrot.lane.b32.xlu1 %v1799_v49, %s1816_s0 }
0x145b   :  { %1444 = vrot.lane.b32.xlu0 %v1801_v47, %s1816_s0  ;;  %v1803_v52 = vpop.eup %1802 }
0x145c   :  { %v1805_v28 = vpop.eup %1804  ;;  %v1413_v40 = vadd.f32 1.0, %v1803_v52 }
0x145d   :  { %v1438_v45 = vadd.f32 1.0, %v1805_v28 }
0x145e   :  { %1806 = vrcp.f32 %v1413_v40 }
0x145f   :  { %1808 = vrcp.f32 %v1438_v45 }
0x1468   :  { %v1807_v41 = vpop.eup %1806 }
0x1469   :  { %v1809_v54 = vpop.eup %1808  ;;  %v1417_v13 = vmul.f32 %v1807_v41, %v1309_v11 }
0x146a   :  { %v1442_v14 = vmul.f32 %v1809_v54, %v1311_v3 }
0x14cc   :  { %v1420_v6 = vpop.permute.xlu1 %1419 }
0x14cd   :  { %v1422_v53 = vmul.f32 %v1807_v41, %v1420_v6  ;;  %v1445_v34 = vpop.permute.xlu0 %1444 }
0x14ce   :  { %v1447_v37 = vmul.f32 %v1809_v54, %v1445_v34 }
0x14cf   :  { %1424 = vrot.lane.b32.xlu1 %v1422_v53, %s1817_s1 }
0x14d0   :  { %1449 = vrot.lane.b32.xlu0 %v1447_v37, %s1817_s1 }
0x1541   :  { %v1425_v36 = vpop.permute.xlu1 %1424 }
0x1542   :  { %v1427_v22 = vadd.f32 %v1425_v36, %v1417_v13  ;;  %v1450_v26 = vpop.permute.xlu0 %1449 }
0x1543   :  { %v1452_v35 = vadd.f32 %v1450_v26, %v1442_v14 }
0x1544   :  { %1810 = vtanh.f32 %v1427_v22 }
0x1545   :  { %1812 = vtanh.f32 %v1452_v35 }
0x154e   :  { %v1811_v39 = vpop.eup %1810 }
0x154f   :  { %v1813_v48 = vpop.eup %1812  ;;  %1430 = vrot.lane.b32.xlu1 %v1811_v39, %s1816_s0 }
0x1550   :  { %1455 = vrot.lane.b32.xlu0 %v1813_v48, %s1816_s0 }
0x1553   :  { %529 = vrot.lane.b32.xlu1 %v527_v44, %s1817_s1 }
0x1554   :  { %536 = vrot.lane.b32.xlu0 %v534_v38, %s1816_s0 }
0x1557   :  { %694 = vrot.lane.b32.xlu1 %v692_v31, %s1817_s1 }
0x1558   :  { %701 = vrot.lane.b32.xlu0 %v699_v18, %s1816_s0 }
0x155b   :  { %859 = vrot.lane.b32.xlu1 %v857_v25, %s1817_s1 }
0x155c   :  { %866 = vrot.lane.b32.xlu0 %v864_v32, %s1816_s0 }
0x155f   :  { %1018 = vrot.lane.b32.xlu1 %v1016_v42, %s1816_s0 }
0x1560   :  { %1012 = vrot.lane.b32.xlu0 %v1010_v21, %s1817_s1 }
0x1563   :  { %1169 = vrot.lane.b32.xlu1 %v1167_v30, %s1816_s0 }
0x1564   :  { %1163 = vrot.lane.b32.xlu0 %v1161_v50, %s1817_s1 }
0x1567   :  { %1320 = vrot.lane.b32.xlu1 %v1318_v63, %s1816_s0 }
0x1568   :  { %1314 = vrot.lane.b32.xlu0 %v1312_v17, %s1817_s1 }
0x15c1   :  { %v1431_v0 = vpop.permute.xlu1 %1430 }
0x15c2   :  { %v1433_v57 = vmul.f32 %v1807_v41, %v1431_v0  ;;  %v1456_v46 = vpop.permute.xlu0 %1455 }
0x15c3   :  { %v1458_v43 = vmul.f32 %v1809_v54, %v1456_v46 }
0x15c4   :  { %v1459_v10 = vsel %vm368_vm4, %v1433_v57, %v2423_v56  ;;  %v1461_v8 = vsel %vm368_vm4, %v1433_v57, 0.0 }
0x15c5   :  { %1474 = vrot.lane.b32.xlu1 %v1459_v10, %s1817_s1  ;;  %v530_v1 = vpop.permute.xlu1 %529  ;;  %1463 = vrot.lane.b32.xlu0 %v1461_v8, %s1817_s1  ;;  %v1467_v12 = vsel %vm361_vm3, %v1458_v43, 0.0  ;;  %v1460_v16 = vsel %vm361_vm3, %v1458_v43, %v2430_v59 }
0x15c6   :  { %1505 = vst.msk [vmem:[%s2579_s5 + $0x8] sm:$0xff] %vm375_vm5, %v530_v1  ;;  %v537_v19 = vpop.permute.xlu0 %536 }
0x15c7   :  { %1506 = vst.msk [vmem:[%s2579_s5 + $0x30] sm:$0xff] %vm382_vm6, %v537_v19 }
0x15c9   :  { %v695_v9 = vpop.permute.xlu1 %694  ;;  %1469 = vrot.lane.b32.xlu1 %v1467_v12, %s1816_s0  ;;  %1479 = vrot.lane.b32.xlu0 %v1460_v16, %s1816_s0 }
0x15ca   :  { %1510 = vst.msk [vmem:[%s2579_s5 + $0x10] sm:$0xff] %vm375_vm5, %v695_v9  ;;  %v702_v33 = vpop.permute.xlu0 %701 }
0x15cb   :  { %1511 = vst.msk [vmem:[%s2579_s5 + $0x28] sm:$0xff] %vm382_vm6, %v702_v33 }
0x15cd   :  { %v860_v55 = vpop.permute.xlu1 %859 }
0x15ce   :  { %1515 = vst.msk [vmem:[%s2579_s5 + $0x18] sm:$0xff] %vm375_vm5, %v860_v55  ;;  %v867_v15 = vpop.permute.xlu0 %866 }
0x15cf   :  { %1516 = vst.msk [vmem:[%s2579_s5 + $0x20] sm:$0xff] %vm382_vm6, %v867_v15 }
0x15d1   :  { %v1019_v29 = vpop.permute.xlu1 %1018 }
0x15d2   :  { %1521 = vst.msk [vmem:[%s2579_s5 + $0x18] sm:$0xff] %vm382_vm6, %v1019_v29  ;;  %v1013_v27 = vpop.permute.xlu0 %1012 }
0x15d3   :  { %1520 = vst.msk [vmem:[%s2579_s5 + $0x20] sm:$0xff] %vm375_vm5, %v1013_v27 }
0x15d5   :  { %v1170_v23 = vpop.permute.xlu1 %1169 }
0x15d6   :  { %1526 = vst.msk [vmem:[%s2579_s5 + $0x10] sm:$0xff] %vm382_vm6, %v1170_v23  ;;  %v1164_v20 = vpop.permute.xlu0 %1163 }
0x15d7   :  { %1525 = vst.msk [vmem:[%s2579_s5 + $0x28] sm:$0xff] %vm375_vm5, %v1164_v20 }
0x15d9   :  { %v1321_v58 = vpop.permute.xlu1 %1320 }
0x15da   :  { %1531 = vst.msk [vmem:[%s2579_s5 + $0x8] sm:$0xff] %vm382_vm6, %v1321_v58  ;;  %v1315_v56 = vpop.permute.xlu0 %1314 }
0x15db   :  { %1530 = vst.msk [vmem:[%s2579_s5 + $0x30] sm:$0xff] %vm375_vm5, %v1315_v56 }
0x1637   :  { %v1475_v59 = vpop.permute.xlu1 %1474  ;;  %v1464_v60 = vpop.permute.xlu0 %1463 }
0x1638   :  { %1477 = vst.msk [vmem:[%s2580_s6] sm:$0xff] %vm375_vm5, %v1475_v59  ;;  %1535 = vst.msk [vmem:[%s2579_s5 + $0x38] sm:$0xff] %vm375_vm5, %v1464_v60 }
0x163b   :  { %v1470_v61 = vpop.permute.xlu1 %1469  ;;  %v1480_v2 = vpop.permute.xlu0 %1479 }
0x163c   :  { %1472 = vst.msk [vmem:[%s2579_s5] sm:$0xff] %vm382_vm6, %v1470_v61  ;;  %1482 = vst.msk [vmem:[%s2580_s6] sm:$0xff] %vm382_vm6, %v1480_v2 }

// kernel: _lambda_.2
= control target key start
LH: loop header
LB: loop body
LE: loop exit
PB: predicated region body
PF: predicated region fallthrough
CT: control target
= control target key end

     0   :  { %v2150_v7 = vmov 0.0   ;;  %vm160_vm0 = vcmask 1043456   ;;  %vm2151_vm1 = vmmov 1   ;;  %vm135_vm3 = vcmask 359424   ;;  %s3191_s0 = inlined_call_operand.vmem [shape: f32[64,300], index: 0, kind: input, shape index: {}]   ;;  %s3192_s1 = inlined_call_operand.vmem [shape: s32[8,1], index: 1, kind: input, shape index: {}]   ;;  %s3193_s2 = inlined_call_operand.vmem [shape: f32[300,256], index: 2, kind: input, shape index: {}]   ;;  %s3194_s3 = inlined_call_operand.vmem [shape: f32[64,256], index: 3, kind: input, shape index: {}]   ;;  %s3195_s4 = inlined_call_operand.vmem [shape: f32[1,256], index: 4, kind: input, shape index: {}]   ;;  %s3196_s5 = inlined_call_operand.vmem [shape: f32[8,8,64], index: 5, kind: output, shape index: {0}]   ;;  %s3197_s6 = inlined_call_operand.hbm [shape: f32[8,64], index: 6, kind: output, shape index: {1}]  }
   0x1   :  { %v48_v0 = vld [vmem:[%s3193_s2 + $0x8] sm:$0xff]  ;;  %v50_v1 = vld [vmem:[%s3193_s2 + $0x18] sm:$0xff]  ;;  %v47_v2 = vld [vmem:[%s3193_s2] sm:$0xff]  ;;  %368 = vmatprep.mubr.f32.mxu1 %v2150_v7 }
   0x2   :  { %v1746_v3 = vpack.c.bf16 %v50_v1, %v48_v0  ;;  %v49_v4 = vld [vmem:[%s3193_s2 + $0x10] sm:$0xff]  ;;  %v52_v5 = vld [vmem:[%s3193_s2 + $0x28] sm:$0xff]  ;;  %v54_v6 = vld [vmem:[%s3193_s2 + $0x38] sm:$0xff] }
   0x3   :  { %v1748_v8 = vpack.c.bf16 %v49_v4, %v47_v2  ;;  %v1750_v9 = vpack.c.bf16 %v54_v6, %v52_v5  ;;  %v51_v10 = vld [vmem:[%s3193_s2 + $0x20] sm:$0xff]  ;;  %v53_v11 = vld [vmem:[%s3193_s2 + $0x30] sm:$0xff]  ;;  %v56_v12 = vld [vmem:[%s3193_s2 + $0x48] sm:$0xff] }
   0x4   :  { %1747 = vmatprep.subr.bf16.mxu0 %v1746_v3  ;;  %v58_v13 = vld [vmem:[%s3193_s2 + $0x58] sm:$0xff]  ;;  %v1752_v14 = vpack.c.bf16 %v53_v11, %v51_v10  ;;  %v55_v16 = vld [vmem:[%s3193_s2 + $0x40] sm:$0xff]  ;;  %v57_v17 = vld [vmem:[%s3193_s2 + $0x50] sm:$0xff] }
   0x5   :  { %1749 = vmatpush1.bf16.msra.mxu0 %v1748_v8  ;;  %v1754_v15 = vpack.c.bf16 %v58_v13, %v56_v12  ;;  %v60_v18 = vld [vmem:[%s3193_s2 + $0x68] sm:$0xff]  ;;  %v62_v19 = vld [vmem:[%s3193_s2 + $0x78] sm:$0xff]  ;;  %v1756_v20 = vpack.c.bf16 %v57_v17, %v55_v16  ;;  %v59_v22 = vld [vmem:[%s3193_s2 + $0x60] sm:$0xff] }
   0x6   :  { %1751 = vmatprep.subr.bf16.mxu0 %v1750_v9  ;;  %v1758_v21 = vpack.c.bf16 %v62_v19, %v60_v18  ;;  %v61_v23 = vld [vmem:[%s3193_s2 + $0x70] sm:$0xff]  ;;  %v64_v24 = vld [vmem:[%s3193_s2 + $0x88] sm:$0xff]  ;;  %v66_v25 = vld [vmem:[%s3193_s2 + $0x98] sm:$0xff] }
   0x7   :  { %v1760_v26 = vpack.c.bf16 %v61_v23, %v59_v22  ;;  %v1762_v27 = vpack.c.bf16 %v66_v25, %v64_v24  ;;  %v63_v28 = vld [vmem:[%s3193_s2 + $0x80] sm:$0xff]  ;;  %v65_v29 = vld [vmem:[%s3193_s2 + $0x90] sm:$0xff]  ;;  %v68_v30 = vld [vmem:[%s3193_s2 + $0xa8] sm:$0xff] }
   0x8   :  { %v70_v31 = vld [vmem:[%s3193_s2 + $0xb8] sm:$0xff]  ;;  %v1764_v32 = vpack.c.bf16 %v65_v29, %v63_v28  ;;  %v67_v34 = vld [vmem:[%s3193_s2 + $0xa0] sm:$0xff]  ;;  %v69_v35 = vld [vmem:[%s3193_s2 + $0xb0] sm:$0xff] }
   0x9   :  { %1753 = vmatpush1.bf16.msra.mxu0 %v1752_v14  ;;  %v1766_v33 = vpack.c.bf16 %v70_v31, %v68_v30  ;;  %v72_v36 = vld [vmem:[%s3193_s2 + $0xc8] sm:$0xff]  ;;  %v74_v37 = vld [vmem:[%s3193_s2 + $0xd8] sm:$0xff]  ;;  %v1768_v38 = vpack.c.bf16 %v69_v35, %v67_v34  ;;  %v71_v39 = vld [vmem:[%s3193_s2 + $0xc0] sm:$0xff] }
   0xa   :  { %1755 = vmatprep.subr.bf16.mxu0 %v1754_v15  ;;  %v73_v40 = vld [vmem:[%s3193_s2 + $0xd0] sm:$0xff]  ;;  %v1770_v41 = vpack.c.bf16 %v74_v37, %v72_v36  ;;  %v76_v42 = vld [vmem:[%s3193_s2 + $0xe8] sm:$0xff]  ;;  %v78_v43 = vld [vmem:[%s3193_s2 + $0xf8] sm:$0xff] }
   0xb   :  { %v24_v44 = vld [vmem:[%s3191_s0 + $0x8] sm:$0xff]  ;;  %v114_v46 = vld [vmem:[%s3193_s2 + $0x218] sm:$0xff]  ;;  %v111_v47 = vld [vmem:[%s3193_s2 + $0x200] sm:$0xff]  ;;  %v1772_v50 = vpack.c.bf16 %v73_v40, %v71_v39  ;;  %v1774_v55 = vpack.c.bf16 %v78_v43, %v76_v42 }
   0xc   :  { %231 = vmatprep.mubr.f32.mxu0 %v24_v44  ;;  %v112_v45 = vld [vmem:[%s3193_s2 + $0x208] sm:$0xff]  ;;  %v113_v49 = vld [vmem:[%s3193_s2 + $0x210] sm:$0xff]  ;;  %v75_v51 = vld [vmem:[%s3193_s2 + $0xe0] sm:$0xff] }
   0xd   :  { %1757 = vmatpush1.bf16.msra.mxu0 %v1756_v20  ;;  %v2294_v48 = vpack.c.bf16 %v114_v46, %v112_v45  ;;  %v77_v52 = vld [vmem:[%s3193_s2 + $0xf0] sm:$0xff]  ;;  %v2305_v53 = vpack.c.bf16 %v113_v49, %v111_v47  ;;  %v116_v54 = vld [vmem:[%s3193_s2 + $0x228] sm:$0xff]  ;;  %v118_v56 = vld [vmem:[%s3193_s2 + $0x238] sm:$0xff] }
   0xe   :  { %1759 = vmatprep.subr.bf16.mxu0 %v1758_v21  ;;  %v115_v57 = vld [vmem:[%s3193_s2 + $0x220] sm:$0xff]  ;;  %v117_v58 = vld [vmem:[%s3193_s2 + $0x230] sm:$0xff]  ;;  %v80_v59 = vld [vmem:[%s3193_s2 + $0x108] sm:$0xff]  ;;  %v2327_v61 = vpack.c.bf16 %v118_v56, %v116_v54  ;;  %v1776_v2 = vpack.c.bf16 %v77_v52, %v75_v51 }
   0xf   :  { %1952 = vmatprep.subr.bf16.mxu1 %v2294_v48  ;;  %v82_v60 = vld [vmem:[%s3193_s2 + $0x118] sm:$0xff]  ;;  %v2329_v62 = vpack.c.bf16 %v117_v58, %v115_v57  ;;  %v120_v63 = vld [vmem:[%s3193_s2 + $0x248] sm:$0xff]  ;;  %v119_v1 = vld [vmem:[%s3193_s2 + $0x240] sm:$0xff] }
  0x10   :  { %1955 = vmatpush1.bf16.msra.mxu1 %v2305_v53  ;;  %v122_v0 = vld [vmem:[%s3193_s2 + $0x258] sm:$0xf]  ;;  %v79_v3 = vld [vmem:[%s3193_s2 + $0x100] sm:$0xff]  ;;  %vm2347_vm2 = vmpackc.low %vm160_vm0, %vm2151_vm1  ;;  %v1778_v8 = vpack.c.bf16 %v82_v60, %v80_v59 }
  0x11   :  { %1761 = vmatpush1.bf16.msra.mxu0 %v1760_v26  ;;  %1953 = vmatprep.subr.bf16.mxu1 %v2327_v61  ;;  %v2344_v4 = vpack.c.bf16 %v122_v0, %v120_v63  ;;  %v121_v6 = vld [vmem:[%s3193_s2 + $0x250] sm:$0xf]  ;;  %v410_v10 = vld [vmem:[%s3194_s3 + $0x8] sm:$0xff]  ;;  %v412_v11 = vld [vmem:[%s3194_s3 + $0x18] sm:$0xff] }
  0x12   :  { %1763 = vmatprep.subr.bf16.mxu0 %v1762_v27  ;;  %v81_v9 = vld [vmem:[%s3193_s2 + $0x110] sm:$0xff]  ;;  %v84_v12 = vld [vmem:[%s3193_s2 + $0x128] sm:$0xff]  ;;  %v86_v13 = vld [vmem:[%s3193_s2 + $0x138] sm:$0xff]  ;;  %v2370_v14 = vpack.c.bf16 %v121_v6, %v119_v1  ;;  %v2375_v15 = vpack.c.bf16 %v412_v11, %v410_v10 }
  0x13   :  { %v409_v16 = vld [vmem:[%s3194_s3] sm:$0xff]  ;;  %v411_v17 = vld [vmem:[%s3194_s3 + $0x10] sm:$0xff]  ;;  %v1780_v18 = vpack.c.bf16 %v81_v9, %v79_v3  ;;  %v414_v19 = vld [vmem:[%s3194_s3 + $0x28] sm:$0xff]  ;;  %v1782_v21 = vpack.c.bf16 %v86_v13, %v84_v12 }
  0x14   :  { %1956 = vmatpush1.bf16.msra.mxu1 %v2329_v62  ;;  %v416_v20 = vld [vmem:[%s3194_s3 + $0x38] sm:$0xff]  ;;  %v83_v22 = vld [vmem:[%s3193_s2 + $0x120] sm:$0xff]  ;;  %v85_v23 = vld [vmem:[%s3193_s2 + $0x130] sm:$0xff]  ;;  %v2407_v27 = vpack.c.bf16 %v411_v17, %v409_v16 }
  0x15   :  { %1765 = vmatpush1.bf16.msra.mxu0 %v1764_v32  ;;  %1954 = vmatprep.subr.msk.bf16.mxu1 %vm2347_vm2, %v2344_v4  ;;  %v88_v24 = vld [vmem:[%s3193_s2 + $0x148] sm:$0xff]  ;;  %v90_v25 = vld [vmem:[%s3193_s2 + $0x158] sm:$0xff]  ;;  %v37_v26 = vld [vmem:[%s3191_s0 + $0x70] sm:$0xff]  ;;  %v2410_v28 = vpack.c.bf16 %v416_v20, %v414_v19  ;;  %v1784_v31 = vpack.c.bf16 %v85_v23, %v83_v22 }
  0x16   :  { %1767 = vmatprep.subr.bf16.mxu0 %v1766_v33  ;;  %v413_v29 = vld [vmem:[%s3194_s3 + $0x20] sm:$0xff]  ;;  %v415_v30 = vld [vmem:[%s3194_s3 + $0x30] sm:$0xff]  ;;  %v418_v32 = vld [vmem:[%s3194_s3 + $0x48] sm:$0xff]  ;;  %v1786_v34 = vpack.c.bf16 %v90_v25, %v88_v24 }
  0x17   :  { %v420_v33 = vld [vmem:[%s3194_s3 + $0x58] sm:$0xff]  ;;  %v87_v35 = vld [vmem:[%s3193_s2 + $0x140] sm:$0xff]  ;;  %v89_v36 = vld [vmem:[%s3193_s2 + $0x150] sm:$0xff]  ;;  %v2442_v40 = vpack.c.bf16 %v415_v30, %v413_v29 }
  0x18   :  { %1957 = vmatpush1.bf16.msk.msra.mxu1 %vm2347_vm2, %v2370_v14  ;;  %v92_v37 = vld [vmem:[%s3193_s2 + $0x168] sm:$0xff]  ;;  %v417_v42 = vld [vmem:[%s3194_s3 + $0x40] sm:$0xff]  ;;  %v419_v43 = vld [vmem:[%s3194_s3 + $0x50] sm:$0xff] }
  0x19   :  { %1769 = vmatpush1.bf16.msra.mxu0 %v1768_v38  ;;  %1825 = vmatprep.subr.bf16.mxu1 %v2375_v15  ;;  %v94_v38 = vld [vmem:[%s3193_s2 + $0x178] sm:$0xff]  ;;  %v40_v39 = vld [vmem:[%s3191_s0 + $0x88] sm:$0xff] }
  0x1a   :  { %1771 = vmatprep.subr.bf16.mxu0 %v1770_v41  ;;  %v2445_v41 = vpack.c.bf16 %v420_v33, %v418_v32 }
  0x1b   :  { %1705 = vmatmul.mubr.msk.f32.vlgmr.msra.gmra.mrb[0].mxu1 %vm135_vm3, %v37_v26 }
  0x1c   :  { %1827 = vmatpush1.bf16.msra.mxu1 %v2407_v27  ;;  %374 = vmatprep.mubr.f32.mxu1 %v2150_v7 }
  0x1d   :  { %1773 = vmatpush1.bf16.msra.mxu0 %v1772_v50  ;;  %1829 = vmatprep.subr.bf16.mxu1 %v2410_v28 }
  0x1e   :  { %1775 = vmatprep.subr.bf16.mxu0 %v1774_v55 }
  0x21   :  { %1777 = vmatpush1.bf16.msra.mxu0 %v1776_v2 }
  0x22   :  { %1779 = vmatprep.subr.bf16.mxu0 %v1778_v8 }
  0x25   :  { %1781 = vmatpush1.bf16.msra.mxu0 %v1780_v18 }
  0x26   :  { %1783 = vmatprep.subr.bf16.mxu0 %v1782_v21 }
  0x27   :  { %12 = vsyncpa [#allocation4], 0  ;;  %v1788_v44 = vpack.c.bf16 %v89_v36, %v87_v35  ;;  %v422_v45 = vld [vmem:[%s3194_s3 + $0x68] sm:$0xff]  ;;  %v424_v46 = vld [vmem:[%s3194_s3 + $0x78] sm:$0xff]  ;;  %v1790_v47 = vpack.c.bf16 %v94_v38, %v92_v37  ;;  %1706 = vmatmul.mubr.msk.f32.gmra.mrb[2].mxu1 %vm135_vm3, %v40_v39  ;;  %v2477_v55 = vpack.c.bf16 %v419_v43, %v417_v42  ;;  %v2152_v43 = vmov 0   ;;  %s2153_s10 = smov 64  }
  0x28   :  { %v91_v49 = vld [vmem:[%s3193_s2 + $0x160] sm:$0xff]  ;;  %v93_v50 = vld [vmem:[%s3193_s2 + $0x170] sm:$0xff]  ;;  %v96_v51 = vld [vmem:[%s3193_s2 + $0x188] sm:$0xff]  ;;  %1831 = vmatpush1.bf16.msra.mxu1 %v2442_v40  ;;  %380 = vmatprep.mubr.f32.mxu1 %v2150_v7  ;;  %v2480_v56 = vpack.c.bf16 %v424_v46, %v422_v45  ;;  %vm573_vm8 = vcmask 261120   ;;  %vm580_vm9 = vcmask 523520   ;;  %vm428_vm10 = vcmask 523264  }
  0x29   :  { %1785 = vmatpush1.bf16.msra.mxu0 %v1784_v31  ;;  %v98_v52 = vld [vmem:[%s3193_s2 + $0x198] sm:$0xff]  ;;  %v43_v54 = vld [vmem:[%s3191_s0 + $0xa0] sm:$0xff]  ;;  %1833 = vmatprep.subr.bf16.mxu1 %v2445_v41  ;;  %v423_v58 = vld [vmem:[%s3194_s3 + $0x70] sm:$0xff]  ;;  %v1792_v59 = vpack.c.bf16 %v93_v50, %v91_v49 }
  0x2a   :  { %1787 = vmatprep.subr.bf16.mxu0 %v1786_v34  ;;  %v421_v57 = vld [vmem:[%s3194_s3 + $0x60] sm:$0xff]  ;;  %v1794_v60 = vpack.c.bf16 %v98_v52, %v96_v51  ;;  %v97_v0 = vld [vmem:[%s3193_s2 + $0x190] sm:$0xff]  ;;  %v100_v1 = vld [vmem:[%s3193_s2 + $0x1a8] sm:$0xff]  ;;  %1996 = vset.pattern.permute.xlu0 %v2152_v43 }
  0x2b   :  { %v95_v63 = vld [vmem:[%s3193_s2 + $0x180] sm:$0xff]  ;;  %1707 = vmatmul.mubr.msk.f32.gmra.mrb[4].mxu1 %vm135_vm3, %v43_v54  ;;  %v102_v2 = vld [vmem:[%s3193_s2 + $0x1b8] sm:$0xff]  ;;  %v2506_v6 = vpack.c.bf16 %v423_v58, %v421_v57  ;;  %v101_v11 = vld [vmem:[%s3193_s2 + $0x1b0] sm:$0xff]  ;;  %1997 = vset.pattern.permute.xlu1 %v2152_v43  ;;  %v125_v58 = vlaneseq }
  0x2c   :  { %1835 = vmatpush1.bf16.msra.mxu1 %v2477_v55  ;;  %386 = vmatprep.mubr.f32.mxu1 %v2150_v7  ;;  %v46_v3 = vld [vmem:[%s3191_s0 + $0xb8] sm:$0xff]  ;;  %v1796_v8 = vpack.c.bf16 %v97_v0, %v95_v63  ;;  %v1798_v9 = vpack.c.bf16 %v102_v2, %v100_v1  ;;  %v99_v10 = vld [vmem:[%s3193_s2 + $0x1a0] sm:$0xff]  ;;  %v104_v12 = vld [vmem:[%s3193_s2 + $0x1c8] sm:$0xff] }
  0x2d   :  { %1789 = vmatpush1.bf16.msra.mxu0 %v1788_v44  ;;  %1837 = vmatprep.subr.bf16.mxu1 %v2480_v56  ;;  %v106_v13 = vld [vmem:[%s3193_s2 + $0x1d8] sm:$0xff]  ;;  %v1800_v16 = vpack.c.bf16 %v101_v11, %v99_v10  ;;  %v103_v18 = vld [vmem:[%s3193_s2 + $0x1c0] sm:$0xff]  ;;  %v105_v19 = vld [vmem:[%s3193_s2 + $0x1d0] sm:$0xff] }
  0x2e   :  { %1791 = vmatprep.subr.bf16.mxu0 %v1790_v47  ;;  %v1802_v17 = vpack.c.bf16 %v106_v13, %v104_v12  ;;  %v108_v20 = vld [vmem:[%s3193_s2 + $0x1e8] sm:$0xff]  ;;  %v110_v21 = vld [vmem:[%s3193_s2 + $0x1f8] sm:$0xff]  ;;  %v1804_v22 = vpack.c.bf16 %v105_v19, %v103_v18  ;;  %v107_v24 = vld [vmem:[%s3193_s2 + $0x1e0] sm:$0xff] }
  0x2f   :  { %1708 = vmatmul.mubr.msk.f32.gmra.mrb[6].mxu1 %vm135_vm3, %v46_v3  ;;  %v1806_v23 = vpack.c.bf16 %v110_v21, %v108_v20  ;;  %v109_v25 = vld [vmem:[%s3193_s2 + $0x1f0] sm:$0xff]  ;;  %v23_v29 = vld [vmem:[%s3191_s0] sm:$0xff]  ;;  %v26_v31 = vld [vmem:[%s3191_s0 + $0x18] sm:$0xff] }
  0x30   :  { %1839 = vmatpush1.bf16.msra.mxu1 %v2506_v6  ;;  %496 = vmatprep.mubr.f32.mxu1 %v2150_v7  ;;  %v1808_v26 = vpack.c.bf16 %v109_v25, %v107_v24  ;;  %v27_v30 = vld [vmem:[%s3191_s0 + $0x20] sm:$0xff]  ;;  %v29_v32 = vld [vmem:[%s3191_s0 + $0x30] sm:$0xff]  ;;  %v38_v5 = vld [vmem:[%s3191_s0 + $0x78] sm:$0xff] }
  0x31   :  { %1793 = vmatpush1.bf16.msra.mxu0 %v1792_v59  ;;  %1841 = vmatprep.subr.bf16.mxu1 %v2375_v15  ;;  %v39_v33 = vld [vmem:[%s3191_s0 + $0x80] sm:$0xff]  ;;  %v41_v34 = vld [vmem:[%s3191_s0 + $0x90] sm:$0xff]  ;;  %v44_v36 = vld [vmem:[%s3191_s0 + $0xa8] sm:$0xff]  ;;  %v126_v59 = vshrl.u32 %v125_v58, 7 }
  0x32   :  { %1795 = vmatprep.subr.bf16.mxu0 %v1794_v60  ;;  %v45_v35 = vld [vmem:[%s3191_s0 + $0xb0] sm:$0xff]  ;;  %v28_v38 = vld [vmem:[%s3191_s0 + $0x28] sm:$0xff]  ;;  %v31_v39 = vld [vmem:[%s3191_s0 + $0x40] sm:$0xff] }
  0x33   :  { %497 = vmatmul.mubr.f32.vlgmr.msra.gmra.mrb[8].mxu1 %v2150_v7  ;;  %v25_v37 = vld [vmem:[%s3191_s0 + $0x10] sm:$0xff]  ;;  %v34_v42 = vld [vmem:[%s3191_s0 + $0x58] sm:$0xff]  ;;  %v127_v60 = vsub.s32 0, %v126_v59  ;;  %v123_v63 = vld [vmem:[%s3195_s4] sm:$0x3]  ;;  %v131_v0 = vsub.s32 1, %v126_v59 }
  0x34   :  { %1843 = vmatpush1.bf16.msra.mxu1 %v2407_v27  ;;  %652 = vmatprep.mubr.f32.mxu1 %v2150_v7 }
  0x35   :  { %1797 = vmatpush1.bf16.msra.mxu0 %v1796_v8  ;;  %1845 = vmatprep.subr.bf16.mxu1 %v2410_v28  ;;  %v128_v1 = vrot.slane %v123_v63, %v127_v60  ;;  %v132_v2 = vrot.slane %v123_v63, %v131_v0 }
  0x36   :  { %1799 = vmatprep.subr.bf16.mxu0 %v1798_v9 }
  0x38   :  { %1847 = vmatpush1.bf16.msra.mxu1 %v2442_v40 }
  0x39   :  { %1801 = vmatpush1.bf16.msra.mxu0 %v1800_v16  ;;  %1849 = vmatprep.subr.bf16.mxu1 %v2445_v41 }
  0x3a   :  { %1803 = vmatprep.subr.bf16.mxu0 %v1802_v17 }
  0x3c   :  { %1851 = vmatpush1.bf16.msra.mxu1 %v2477_v55 }
  0x3d   :  { %1805 = vmatpush1.bf16.msra.mxu0 %v1804_v22  ;;  %1853 = vmatprep.subr.bf16.mxu1 %v2480_v56 }
  0x3e   :  { %1807 = vmatprep.subr.bf16.mxu0 %v1806_v23 }
  0x40   :  { %1855 = vmatpush1.bf16.msra.mxu1 %v2506_v6 }
  0x41   :  { %1809 = vmatpush1.bf16.msra.mxu0 %v1808_v26  ;;  %1857 = vmatprep.subr.bf16.mxu1 %v2375_v15 }
  0x42   :  { %1811 = vmatprep.subr.bf16.mxu0 %v2294_v48  ;;  %v30_v48 = vld [vmem:[%s3191_s0 + $0x38] sm:$0xff] }
  0x44   :  { %232 = vmatmul.mubr.f32.vlgmr.msra.gmra.mrb[0].mxu0 %v23_v29 }
  0x45   :  { %1813 = vmatpush1.bf16.msra.mxu0 %v2305_v53  ;;  %237 = vmatprep.mubr.f32.mxu0 %v27_v30  ;;  %v33_v53 = vld [vmem:[%s3191_s0 + $0x50] sm:$0xff] }
  0x46   :  { %1815 = vmatprep.subr.bf16.mxu0 %v2327_v61  ;;  %v32_v61 = vld [vmem:[%s3191_s0 + $0x48] sm:$0xff] }
  0x48   :  { %238 = vmatmul.mubr.f32.gmra.mrb[2].mxu0 %v26_v31 }
  0x49   :  { %243 = vmatprep.mubr.f32.mxu0 %v30_v48  ;;  %1817 = vmatpush1.bf16.msra.mxu0 %v2329_v62  ;;  %v36_v62 = vld [vmem:[%s3191_s0 + $0x68] sm:$0xff] }
  0x4a   :  { %1820 = vmatprep.subr.msk.bf16.mxu0 %vm2347_vm2, %v2344_v4  ;;  %v35_v4 = vld [vmem:[%s3191_s0 + $0x60] sm:$0xff] }
  0x4c   :  { %244 = vmatmul.mubr.f32.gmra.mrb[4].mxu0 %v29_v32 }
  0x4d   :  { %249 = vmatprep.mubr.f32.mxu0 %v33_v53  ;;  %1823 = vmatpush1.bf16.msk.msra.mxu0 %vm2347_vm2, %v2370_v14  ;;  %v42_v14 = vld [vmem:[%s3191_s0 + $0x98] sm:$0xff] }
  0x4e   :  { %1937 = vmatprep.subr.bf16.mxu0 %v2375_v15 }
  0x50   :  { %250 = vmatmul.mubr.f32.gmra.mrb[6].mxu0 %v32_v61 }
  0x51   :  { %255 = vmatprep.mubr.f32.mxu0 %v36_v62 }
  0x54   :  { %256 = vmatmul.mubr.f32.gmra.mrb[8].mxu0 %v35_v4 }
  0x55   :  { %261 = vmatprep.mubr.f32.mxu0 %v39_v33 }
  0x58   :  { %262 = vmatmul.mubr.f32.gmra.mrb[10].mxu0 %v38_v5 }
  0x59   :  { %267 = vmatprep.mubr.f32.mxu0 %v42_v14 }
  0x5c   :  { %268 = vmatmul.mubr.f32.gmra.mrb[12].mxu0 %v41_v34 }
  0x5d   :  { %273 = vmatprep.mubr.f32.mxu0 %v45_v35 }
  0x60   :  { %274 = vmatmul.mubr.f32.gmra.mrb[14].mxu0 %v44_v36 }
  0x61   :  { %344 = vmatprep.mubr.f32.mxu0 %v2150_v7 }
  0x64   :  { %1701 = vmatmul.mubr.msk.f32.vlgmr.msra.gmra.mrb[0].mxu0 %vm135_vm3, %v25_v37 }
  0x65   :  { %350 = vmatprep.mubr.f32.mxu0 %v2150_v7  ;;  %1939 = vmatpush1.bf16.msra.mxu0 %v2407_v27 }
  0x66   :  { %1941 = vmatprep.subr.bf16.mxu0 %v2410_v28 }
  0x68   :  { %1702 = vmatmul.mubr.msk.f32.gmra.mrb[2].mxu0 %vm135_vm3, %v28_v38 }
  0x69   :  { %356 = vmatprep.mubr.f32.mxu0 %v2150_v7  ;;  %1943 = vmatpush1.bf16.msra.mxu0 %v2442_v40 }
  0x6a   :  { %1945 = vmatprep.subr.bf16.mxu0 %v2445_v41 }
  0x6c   :  { %1703 = vmatmul.mubr.msk.f32.gmra.mrb[4].mxu0 %vm135_vm3, %v31_v39 }
  0x6d   :  { %362 = vmatprep.mubr.f32.mxu0 %v2150_v7  ;;  %1947 = vmatpush1.bf16.msra.mxu0 %v2477_v55 }
  0x6e   :  { %1949 = vmatprep.subr.bf16.mxu0 %v2480_v56 }
  0x70   :  { %1704 = vmatmul.mubr.msk.f32.gmra.mrb[6].mxu0 %vm135_vm3, %v34_v42 }
  0x71   :  { %1951 = vmatpush1.bf16.msra.mxu0 %v2506_v6  ;;  %1600 = vmatprep.mubr.f32.mxu0 %v2150_v7 }
  0xee   :  { %v370_v44 = vpop.f32.mrb[0].mxu1 }
  0xef   :  { %v372_v45 = vpop.f32.mrb[1].mxu1 }
  0xfa   :  { %v376_v46 = vpop.f32.mrb[2].mxu1 }
  0xfb   :  { %v378_v47 = vpop.f32.mrb[3].mxu1 }
  0xfe   :  { %v382_v49 = vpop.f32.mrb[4].mxu1 }
  0xff   :  { %v384_v50 = vpop.f32.mrb[5].mxu1 }
 0x102   :  { %v388_v51 = vpop.f32.mrb[6].mxu1 }
 0x103   :  { %v390_v52 = vpop.f32.mrb[7].mxu1 }
 0x106   :  { %v498_v54 = vpop.f32.mrb[8].mxu1 }
 0x107   :  { %v500_v57 = vpop.f32.mrb[9].mxu1 }
 0x127   :  { %v257_v3 = vpop.f32.mrb[8].mxu0 }
 0x128   :  { %v258_v8 = vadd.f32 %v257_v3, %v128_v1  ;;  %v259_v9 = vpop.f32.mrb[9].mxu0 }
 0x129   :  { %v260_v10 = vadd.f32 %v259_v9, %v132_v2 }
 0x12a   :  { %v2642_v11 = vadd.f32 %v370_v44, %v258_v8 }
 0x12b   :  { %v2644_v12 = vadd.f32 %v372_v45, %v260_v10  ;;  %v263_v13 = vpop.f32.mrb[10].mxu0 }
 0x12c   :  { %v264_v16 = vadd.f32 %v263_v13, %v128_v1  ;;  %v265_v17 = vpop.f32.mrb[11].mxu0 }
 0x12d   :  { %v266_v18 = vadd.f32 %v265_v17, %v132_v2 }
 0x12e   :  { %v2646_v19 = vadd.f32 %v376_v46, %v264_v16 }
 0x12f   :  { %v2648_v20 = vadd.f32 %v378_v47, %v266_v18  ;;  %v269_v21 = vpop.f32.mrb[12].mxu0 }
 0x130   :  { %v270_v22 = vadd.f32 %v269_v21, %v128_v1  ;;  %v271_v23 = vpop.f32.mrb[13].mxu0 }
 0x131   :  { %v272_v24 = vadd.f32 %v271_v23, %v132_v2 }
 0x132   :  { %v2650_v25 = vadd.f32 %v382_v49, %v270_v22 }
 0x133   :  { %v2652_v26 = vadd.f32 %v384_v50, %v272_v24  ;;  %v275_v29 = vpop.f32.mrb[14].mxu0 }
 0x134   :  { %v276_v30 = vadd.f32 %v275_v29, %v128_v1  ;;  %v277_v31 = vpop.f32.mrb[15].mxu0 }
 0x135   :  { %v278_v48 = vadd.f32 %v277_v31, %v132_v2 }
 0x136   :  { %v2654_v32 = vadd.f32 %v388_v51, %v276_v30  ;;  %v2673_v51 = vld [vmem:[%s3192_s1] sm:$0xff]  ;;  %s2154_s1 = smov 32  }
 0x137   :  { %v391_v53 = vadd.f32 %v390_v52, %v278_v48  ;;  %v346_v61 = vpop.f32.mrb[0].mxu0  ;;  %vm553_vm4 = vcmp.gt.s32.totalorder %v2673_v51, 0  ;;  %vm554_vm5 = vcmp.gt.s32.totalorder %v2673_v51, 7  ;;  %vm709_vm11 = vcmp.gt.s32.totalorder %v2673_v51, 1 }
 0x138   :  { %v1958_v62 = vadd.f32 %v346_v61, %v128_v1  ;;  %v348_v4 = vpop.f32.mrb[1].mxu0  ;;  %v562_v13 = vsel %vm554_vm5, 1, %v2152_v43  ;;  %vm710_vm12 = vcmp.gt.s32.totalorder %v2673_v51, 6  ;;  %vm874_vm15 = vcmp.gt.s32.totalorder %v2673_v51, 2 }
 0x139   :  { %v2656_v33 = vadd.f32 %v348_v4, %v132_v2  ;;  %v528_v5 = vadd.f32 %v500_v57, %v391_v53  ;;  %vm875_vm0 = vcmp.gt.s32.totalorder %v2673_v51, 5  ;;  %vm1039_vm3 = vcmp.gt.s32.totalorder %v2673_v51, 3 }
 0x13a   :  { %v503_v14 = vadd.f32 %v1958_v62, %v498_v54  ;;  %v555_v54 = vsel %vm553_vm4, 1, %v2152_v43  ;;  %vm1040_vm4 = vcmp.gt.s32.totalorder %v2673_v51, 4 }
 0x13b   :  { %v352_v34 = vpop.f32.mrb[2].mxu0  ;;  %v1710_v58 = vmul.f32 -1.442695, %v528_v5 }
 0x13c   :  { %1998 = vtanh.f32 %v503_v14  ;;  %v2658_v35 = vadd.f32 %v352_v34, %v128_v1  ;;  %v354_v36 = vpop.f32.mrb[3].mxu0  ;;  %v1709_v57 = vmul.f32 -1.442695, %v503_v14 }
 0x13d   :  { %v2660_v37 = vadd.f32 %v354_v36, %v132_v2  ;;  %2000 = vtanh.f32 %v528_v5 }
 0x13e   :  { %2002 = vpow2.f32 %v1709_v57 }
 0x13f   :  { %v358_v38 = vpop.f32.mrb[4].mxu0  ;;  %2004 = vpow2.f32 %v1710_v58 }
 0x140   :  { %v2662_v39 = vadd.f32 %v358_v38, %v128_v1  ;;  %v360_v42 = vpop.f32.mrb[5].mxu0 }
 0x141   :  { %v2664_v44 = vadd.f32 %v360_v42, %v132_v2 }
 0x143   :  { %v364_v45 = vpop.f32.mrb[6].mxu0 }
 0x144   :  { %v2666_v46 = vadd.f32 %v364_v45, %v128_v1  ;;  %v366_v47 = vpop.f32.mrb[7].mxu0 }
 0x145   :  { %v2668_v49 = vadd.f32 %v366_v47, %v132_v2 }
 0x146   :  { %v1999_v50 = vpop.eup %1998 }
 0x147   :  { %513 = vrot.lane.b32.xlu0 %v1999_v50, %s2153_s10  ;;  %v2001_v52 = vpop.eup %2000 }
 0x148   :  { %v2003_v59 = vpop.eup %2002 }
 0x149   :  { %v507_v60 = vadd.f32 1.0, %v2003_v59  ;;  %v2005_v63 = vpop.eup %2004 }
 0x14a   :  { %v532_v0 = vadd.f32 1.0, %v2005_v63 }
 0x14b   :  { %538 = vrot.lane.b32.xlu0 %v2001_v52, %s2153_s10  ;;  %2006 = vrcp.f32 %v507_v60 }
 0x14c   :  { %2008 = vrcp.f32 %v532_v0 }
 0x14f   :  { %557 = vperm.xlu0 %1996, %v555_v54  }
 0x155   :  { %v2007_v1 = vpop.eup %2006 }
 0x156   :  { %v2009_v8 = vpop.eup %2008  ;;  %v511_v16 = vmul.f32 0.0, %v2007_v1 }
 0x157   :  { %v536_v21 = vmul.f32 0.0, %v2009_v8 }
 0x1b9   :  { %v514_v2 = vpop.permute.xlu0 %513 }
 0x1ba   :  { %v516_v3 = vmul.f32 %v2007_v1, %v514_v2 }
 0x1bc   :  { %518 = vrot.lane.b32.xlu1 %v516_v3, %s2154_s1 }
 0x1bd   :  { %v539_v9 = vpop.permute.xlu0 %538 }
 0x1be   :  { %v541_v10 = vmul.f32 %v2009_v8, %v539_v9  ;;  %v718_v9 = vsel %vm710_vm12, 1, %v2152_v43 }
 0x1c0   :  { %543 = vrot.lane.b32.xlu1 %v541_v10, %s2154_s1 }
 0x1c4   :  { %564 = vperm.xlu1 %1997, %v562_v13  }
 0x1ce   :  { %v2693_v31 = vpop.permute.xlu0 %557 }
 0x1cf   :  { %vm559_vm6 = vcmp.eq.s32.totalorder %v2693_v31, 1 }
 0x22e   :  { %v519_v17 = vpop.permute.xlu1 %518 }
 0x22f   :  { %v2683_v18 = vadd.f32 %v519_v17, %v511_v16 }
 0x231   :  { %2010 = vtanh.f32 %v2683_v18  ;;  %v2741_v10 = vsel %vm559_vm6, %v2683_v18, 0.0 }
 0x232   :  { %v544_v22 = vpop.permute.xlu1 %543 }
 0x233   :  { %v2686_v23 = vadd.f32 %v544_v22, %v536_v21 }
 0x235   :  { %2012 = vtanh.f32 %v2686_v23 }
 0x23b   :  { %v2011_v24 = vpop.eup %2010 }
 0x23c   :  { %524 = vrot.lane.b32.xlu1 %v2011_v24, %s2153_s10 }
 0x23f   :  { %v2013_v29 = vpop.eup %2012 }
 0x240   :  { %549 = vrot.lane.b32.xlu0 %v2013_v29, %s2153_s10 }
 0x243   :  { %v2691_v30 = vpop.permute.xlu1 %564 }
 0x244   :  { %vm566_vm7 = vcmp.eq.s32.totalorder %v2691_v30, 1 }
 0x245   :  { %v2747_v16 = vsel %vm566_vm7, %v2686_v23, 0.0 }
 0x2ae   :  { %v525_v48 = vpop.permute.xlu1 %524 }
 0x2af   :  { %v527_v53 = vmul.f32 %v2007_v1, %v525_v48 }
 0x2b1   :  { %v2698_v61 = vsel %vm559_vm6, %v527_v53, 0.0 }
 0x2b2   :  { %570 = vrot.lane.b32.xlu1 %v2698_v61, %s2154_s1  ;;  %v550_v62 = vpop.permute.xlu0 %549 }
 0x2b3   :  { %v552_v4 = vmul.f32 %v2009_v8, %v550_v62  ;;  %v711_v8 = vsel %vm709_vm11, 1, %v2152_v43 }
 0x2b5   :  { %v2705_v5 = vsel %vm566_vm7, %v552_v4, 0.0 }
 0x2b6   :  { %576 = vrot.lane.b32.xlu0 %v2705_v5, %s2153_s10 }
 0x324   :  { %v571_v14 = vpop.permute.xlu1 %570 }
 0x325   :  { %574 = vst.msk [vmem:[%s3196_s5] sm:$0xff] %vm573_vm8, %v571_v14 }
 0x328   :  { %v577_v34 = vpop.permute.xlu0 %576 }
 0x329   :  { %1711 = vst.msk [vmem:[%s3196_s5 + $0x38] sm:$0xff] %vm580_vm9, %v577_v34  ;;  %v584_v36 = vsel %vm573_vm8, %v571_v14, %v577_v34 }
 0x32a   :  { %1712 = vmatmul.mubr.msk.f32.vlgmr.msra.gmra.mrb[10].mxu1 %vm428_vm10, %v584_v36 }
 0x32b   :  { %1859 = vmatpush1.bf16.msra.mxu1 %v2407_v27  ;;  %817 = vmatprep.mubr.f32.mxu1 %v2150_v7 }
 0x32c   :  { %1861 = vmatprep.subr.bf16.mxu1 %v2410_v28 }
 0x32f   :  { %1863 = vmatpush1.bf16.msra.mxu1 %v2442_v40 }
 0x330   :  { %1865 = vmatprep.subr.bf16.mxu1 %v2445_v41 }
 0x333   :  { %1867 = vmatpush1.bf16.msra.mxu1 %v2477_v55 }
 0x334   :  { %1869 = vmatprep.subr.bf16.mxu1 %v2480_v56 }
 0x337   :  { %1871 = vmatpush1.bf16.msra.mxu1 %v2506_v6 }
 0x338   :  { %1873 = vmatprep.subr.bf16.mxu1 %v2375_v15 }
 0x3fd   :  { %v654_v38 = vpop.f32.mrb[10].mxu1 }
 0x3fe   :  { %v659_v42 = vadd.f32 %v2658_v35, %v654_v38  ;;  %v656_v45 = vpop.f32.mrb[11].mxu1 }
 0x3ff   :  { %v684_v47 = vadd.f32 %v656_v45, %v2652_v26 }
 0x400   :  { %2014 = vtanh.f32 %v659_v42  ;;  %v1713_v54 = vmul.f32 -1.442695, %v659_v42 }
 0x401   :  { %2016 = vtanh.f32 %v684_v47  ;;  %v1714_v57 = vmul.f32 -1.442695, %v684_v47 }
 0x402   :  { %2018 = vpow2.f32 %v1713_v54 }
 0x403   :  { %2020 = vpow2.f32 %v1714_v57 }
 0x40a   :  { %v2015_v50 = vpop.eup %2014 }
 0x40b   :  { %v2017_v52 = vpop.eup %2016  ;;  %669 = vrot.lane.b32.xlu1 %v2015_v50, %s2153_s10 }
 0x40c   :  { %694 = vrot.lane.b32.xlu0 %v2017_v52, %s2153_s10  ;;  %v2019_v58 = vpop.eup %2018 }
 0x40d   :  { %v2021_v59 = vpop.eup %2020  ;;  %v663_v60 = vadd.f32 1.0, %v2019_v58 }
 0x40e   :  { %v688_v63 = vadd.f32 1.0, %v2021_v59 }
 0x40f   :  { %2022 = vrcp.f32 %v663_v60 }
 0x410   :  { %2024 = vrcp.f32 %v688_v63 }
 0x419   :  { %v2023_v35 = vpop.eup %2022 }
 0x41a   :  { %v2025_v0 = vpop.eup %2024  ;;  %v667_v13 = vmul.f32 %v2023_v35, %v2741_v10 }
 0x41b   :  { %v692_v21 = vmul.f32 %v2025_v0, %v2747_v16 }
 0x47d   :  { %v670_v26 = vpop.permute.xlu1 %669 }
 0x47e   :  { %v672_v1 = vmul.f32 %v2023_v35, %v670_v26  ;;  %v695_v2 = vpop.permute.xlu0 %694 }
 0x47f   :  { %v697_v3 = vmul.f32 %v2025_v0, %v695_v2 }
 0x480   :  { %674 = vrot.lane.b32.xlu1 %v672_v1, %s2154_s1 }
 0x481   :  { %699 = vrot.lane.b32.xlu0 %v697_v3, %s2154_s1 }
 0x484   :  { %713 = vperm.xlu1 %1997, %v711_v8   ;;  %v876_v8 = vsel %vm874_vm15, 1, %v2152_v43 }
 0x485   :  { %720 = vperm.xlu0 %1996, %v718_v9   ;;  %v883_v9 = vsel %vm875_vm0, 1, %v2152_v43 }
 0x4f2   :  { %v675_v17 = vpop.permute.xlu1 %674 }
 0x4f3   :  { %v2750_v22 = vadd.f32 %v675_v17, %v667_v13  ;;  %v700_v24 = vpop.permute.xlu0 %699 }
 0x4f4   :  { %v2752_v29 = vadd.f32 %v700_v24, %v692_v21 }
 0x4f5   :  { %2026 = vtanh.f32 %v2750_v22 }
 0x4f6   :  { %2028 = vtanh.f32 %v2752_v29 }
 0x4ff   :  { %v2027_v18 = vpop.eup %2026 }
 0x500   :  { %v2029_v48 = vpop.eup %2028  ;;  %680 = vrot.lane.b32.xlu1 %v2027_v18, %s2153_s10 }
 0x501   :  { %705 = vrot.lane.b32.xlu0 %v2029_v48, %s2153_s10 }
 0x503   :  { %v2758_v23 = vpop.permute.xlu1 %713 }
 0x504   :  { %v2760_v53 = vpop.permute.xlu0 %720  ;;  %vm715_vm13 = vcmp.eq.s32.totalorder %v2758_v23, 1 }
 0x505   :  { %vm722_vm14 = vcmp.eq.s32.totalorder %v2760_v53, 1  ;;  %v2809_v13 = vsel %vm715_vm13, %v2750_v22, %v2741_v10 }
 0x506   :  { %v2816_v21 = vsel %vm722_vm14, %v2752_v29, %v2747_v16 }
 0x572   :  { %v681_v62 = vpop.permute.xlu1 %680 }
 0x573   :  { %v2762_v4 = vmul.f32 %v2023_v35, %v681_v62  ;;  %v706_v14 = vpop.permute.xlu0 %705 }
 0x574   :  { %v2765_v34 = vmul.f32 %v2025_v0, %v706_v14 }
 0x575   :  { %v2772_v36 = vsel %vm715_vm13, %v2762_v4, %v2698_v61 }
 0x576   :  { %742 = vrot.lane.b32.xlu1 %v2772_v36, %s2154_s1  ;;  %v2780_v38 = vsel %vm722_vm14, %v2765_v34, %v2705_v5 }
 0x577   :  { %746 = vrot.lane.b32.xlu0 %v2780_v38, %s2153_s10 }
 0x5e8   :  { %v743_v42 = vpop.permute.xlu1 %742 }
 0x5e9   :  { %v747_v45 = vpop.permute.xlu0 %746 }
 0x5ea   :  { %v749_v47 = vsel %vm573_vm8, %v743_v42, %v747_v45 }
 0x5eb   :  { %1717 = vmatmul.mubr.msk.f32.vlgmr.msra.gmra.mrb[12].mxu1 %vm428_vm10, %v749_v47 }
 0x5ec   :  { %1875 = vmatpush1.bf16.msra.mxu1 %v2407_v27  ;;  %982 = vmatprep.mubr.f32.mxu1 %v2150_v7 }
 0x5ed   :  { %1877 = vmatprep.subr.bf16.mxu1 %v2410_v28 }
 0x5f0   :  { %1879 = vmatpush1.bf16.msra.mxu1 %v2442_v40 }
 0x5f1   :  { %1881 = vmatprep.subr.bf16.mxu1 %v2445_v41 }
 0x5f4   :  { %1883 = vmatpush1.bf16.msra.mxu1 %v2477_v55 }
 0x5f5   :  { %1885 = vmatprep.subr.bf16.mxu1 %v2480_v56 }
 0x5f8   :  { %1887 = vmatpush1.bf16.msra.mxu1 %v2506_v6 }
 0x5f9   :  { %1889 = vmatprep.subr.bf16.mxu1 %v2375_v15 }
 0x6be   :  { %v819_v61 = vpop.f32.mrb[12].mxu1 }
 0x6bf   :  { %v824_v5 = vadd.f32 %v2662_v39, %v819_v61  ;;  %v821_v50 = vpop.f32.mrb[13].mxu1 }
 0x6c0   :  { %v849_v52 = vadd.f32 %v821_v50, %v2648_v20 }
 0x6c1   :  { %2030 = vtanh.f32 %v824_v5  ;;  %v1718_v58 = vmul.f32 -1.442695, %v824_v5 }
 0x6c2   :  { %2032 = vtanh.f32 %v849_v52  ;;  %v1719_v59 = vmul.f32 -1.442695, %v849_v52 }
 0x6c3   :  { %2034 = vpow2.f32 %v1718_v58 }
 0x6c4   :  { %2036 = vpow2.f32 %v1719_v59 }
 0x6cb   :  { %v2031_v54 = vpop.eup %2030 }
 0x6cc   :  { %v2033_v57 = vpop.eup %2032  ;;  %834 = vrot.lane.b32.xlu1 %v2031_v54, %s2153_s10 }
 0x6cd   :  { %859 = vrot.lane.b32.xlu0 %v2033_v57, %s2153_s10  ;;  %v2035_v60 = vpop.eup %2034 }
 0x6ce   :  { %v2037_v63 = vpop.eup %2036  ;;  %v828_v35 = vadd.f32 1.0, %v2035_v60 }
 0x6cf   :  { %v853_v26 = vadd.f32 1.0, %v2037_v63 }
 0x6d0   :  { %2038 = vrcp.f32 %v828_v35 }
 0x6d1   :  { %2040 = vrcp.f32 %v853_v26 }
 0x6da   :  { %v2039_v39 = vpop.eup %2038 }
 0x6db   :  { %v2041_v0 = vpop.eup %2040  ;;  %v832_v17 = vmul.f32 %v2039_v39, %v2809_v13 }
 0x6dc   :  { %v857_v18 = vmul.f32 %v2041_v0, %v2816_v21 }
 0x73e   :  { %v835_v20 = vpop.permute.xlu1 %834 }
 0x73f   :  { %v837_v1 = vmul.f32 %v2039_v39, %v835_v20  ;;  %v860_v2 = vpop.permute.xlu0 %859 }
 0x740   :  { %v862_v3 = vmul.f32 %v2041_v0, %v860_v2 }
 0x741   :  { %839 = vrot.lane.b32.xlu1 %v837_v1, %s2154_s1 }
 0x742   :  { %864 = vrot.lane.b32.xlu0 %v862_v3, %s2154_s1 }
 0x745   :  { %878 = vperm.xlu1 %1997, %v876_v8  }
 0x746   :  { %885 = vperm.xlu0 %1996, %v883_v9  }
 0x7b3   :  { %v840_v24 = vpop.permute.xlu1 %839 }
 0x7b4   :  { %v2819_v48 = vadd.f32 %v840_v24, %v832_v17  ;;  %v865_v62 = vpop.permute.xlu0 %864  ;;  %v1041_v17 = vsel %vm1039_vm3, 1, %v2152_v43  ;;  %v1048_v24 = vsel %vm1040_vm4, 1, %v2152_v43 }
 0x7b5   :  { %v2821_v14 = vadd.f32 %v865_v62, %v857_v18 }
 0x7b6   :  { %2042 = vtanh.f32 %v2819_v48 }
 0x7b7   :  { %2044 = vtanh.f32 %v2821_v14 }
 0x7c0   :  { %v2043_v10 = vpop.eup %2042 }
 0x7c1   :  { %v2045_v22 = vpop.eup %2044  ;;  %845 = vrot.lane.b32.xlu1 %v2043_v10, %s2153_s10 }
 0x7c2   :  { %870 = vrot.lane.b32.xlu0 %v2045_v22, %s2153_s10 }
 0x7c4   :  { %v2827_v16 = vpop.permute.xlu1 %878 }
 0x7c5   :  { %v2829_v29 = vpop.permute.xlu0 %885  ;;  %vm880_vm1 = vcmp.eq.s32.totalorder %v2827_v16, 1 }
 0x7c6   :  { %vm887_vm2 = vcmp.eq.s32.totalorder %v2829_v29, 1  ;;  %v2878_v18 = vsel %vm880_vm1, %v2819_v48, %v2809_v13 }
 0x7c7   :  { %v2885_v51 = vsel %vm887_vm2, %v2821_v14, %v2816_v21 }
 0x833   :  { %v846_v42 = vpop.permute.xlu1 %845 }
 0x834   :  { %v2831_v45 = vmul.f32 %v2039_v39, %v846_v42  ;;  %v871_v47 = vpop.permute.xlu0 %870 }
 0x835   :  { %v2834_v61 = vmul.f32 %v2041_v0, %v871_v47 }
 0x836   :  { %v2841_v5 = vsel %vm880_vm1, %v2831_v45, %v2772_v36 }
 0x837   :  { %907 = vrot.lane.b32.xlu1 %v2841_v5, %s2154_s1  ;;  %v2849_v50 = vsel %vm887_vm2, %v2834_v61, %v2780_v38 }
 0x838   :  { %911 = vrot.lane.b32.xlu0 %v2849_v50, %s2153_s10 }
 0x8a9   :  { %v908_v52 = vpop.permute.xlu1 %907 }
 0x8aa   :  { %v912_v54 = vpop.permute.xlu0 %911 }
 0x8ab   :  { %v914_v57 = vsel %vm573_vm8, %v908_v52, %v912_v54 }
 0x8ac   :  { %1722 = vmatmul.mubr.msk.f32.vlgmr.msra.gmra.mrb[14].mxu1 %vm428_vm10, %v914_v57 }
 0x8ad   :  { %1891 = vmatpush1.bf16.msra.mxu1 %v2407_v27  ;;  %1147 = vmatprep.mubr.f32.mxu1 %v2150_v7 }
 0x8ae   :  { %1893 = vmatprep.subr.bf16.mxu1 %v2410_v28 }
 0x8b1   :  { %1895 = vmatpush1.bf16.msra.mxu1 %v2442_v40 }
 0x8b2   :  { %1897 = vmatprep.subr.bf16.mxu1 %v2445_v41 }
 0x8b5   :  { %1899 = vmatpush1.bf16.msra.mxu1 %v2477_v55 }
 0x8b6   :  { %1901 = vmatprep.subr.bf16.mxu1 %v2480_v56 }
 0x8b9   :  { %1903 = vmatpush1.bf16.msra.mxu1 %v2506_v6 }
 0x8ba   :  { %1905 = vmatprep.subr.bf16.mxu1 %v2375_v15 }
 0x97f   :  { %v984_v36 = vpop.f32.mrb[14].mxu1 }
 0x980   :  { %v989_v38 = vadd.f32 %v2666_v46, %v984_v36  ;;  %v986_v58 = vpop.f32.mrb[15].mxu1 }
 0x981   :  { %v1014_v59 = vadd.f32 %v986_v58, %v2644_v12 }
 0x982   :  { %2046 = vtanh.f32 %v989_v38  ;;  %v1723_v35 = vmul.f32 -1.442695, %v989_v38 }
 0x983   :  { %2048 = vtanh.f32 %v1014_v59  ;;  %v1724_v26 = vmul.f32 -1.442695, %v1014_v59 }
 0x984   :  { %2050 = vpow2.f32 %v1723_v35 }
 0x985   :  { %2052 = vpow2.f32 %v1724_v26 }
 0x98c   :  { %v2047_v60 = vpop.eup %2046 }
 0x98d   :  { %v2049_v63 = vpop.eup %2048  ;;  %999 = vrot.lane.b32.xlu1 %v2047_v60, %s2153_s10 }
 0x98e   :  { %1024 = vrot.lane.b32.xlu0 %v2049_v63, %s2153_s10  ;;  %v2051_v39 = vpop.eup %2050 }
 0x98f   :  { %v2053_v20 = vpop.eup %2052  ;;  %v993_v0 = vadd.f32 1.0, %v2051_v39 }
 0x990   :  { %v1018_v1 = vadd.f32 1.0, %v2053_v20 }
 0x991   :  { %2054 = vrcp.f32 %v993_v0 }
 0x992   :  { %2056 = vrcp.f32 %v1018_v1 }
 0x99b   :  { %v2055_v46 = vpop.eup %2054 }
 0x99c   :  { %v2057_v2 = vpop.eup %2056  ;;  %v997_v62 = vmul.f32 %v2055_v46, %v2878_v18 }
 0x99d   :  { %v1022_v22 = vmul.f32 %v2057_v2, %v2885_v51 }
 0x9ff   :  { %v1000_v12 = vpop.permute.xlu1 %999 }
 0xa00   :  { %v1002_v3 = vmul.f32 %v2055_v46, %v1000_v12  ;;  %v1025_v8 = vpop.permute.xlu0 %1024 }
 0xa01   :  { %v1027_v9 = vmul.f32 %v2057_v2, %v1025_v8 }
 0xa02   :  { %1004 = vrot.lane.b32.xlu1 %v1002_v3, %s2154_s1 }
 0xa03   :  { %1029 = vrot.lane.b32.xlu0 %v1027_v9, %s2154_s1 }
 0xa06   :  { %1043 = vperm.xlu1 %1997, %v1041_v17  }
 0xa07   :  { %1050 = vperm.xlu0 %1996, %v1048_v24  }
 0xa74   :  { %v1005_v10 = vpop.permute.xlu1 %1004 }
 0xa75   :  { %v2888_v43 = vadd.f32 %v1005_v10, %v997_v62  ;;  %v1030_v42 = vpop.permute.xlu0 %1029 }
 0xa76   :  { %v2890_v47 = vadd.f32 %v1030_v42, %v1022_v22 }
 0xa77   :  { %2058 = vtanh.f32 %v2888_v43 }
 0xa78   :  { %2060 = vtanh.f32 %v2890_v47 }
 0xa81   :  { %v2059_v13 = vpop.eup %2058 }
 0xa82   :  { %v2061_v48 = vpop.eup %2060  ;;  %1010 = vrot.lane.b32.xlu1 %v2059_v13, %s2153_s10 }
 0xa83   :  { %1035 = vrot.lane.b32.xlu0 %v2061_v48, %s2153_s10 }
 0xa85   :  { %v2896_v21 = vpop.permute.xlu1 %1043 }
 0xa86   :  { %v2898_v14 = vpop.permute.xlu0 %1050  ;;  %vm1045_vm5 = vcmp.eq.s32.totalorder %v2896_v21, 1 }
 0xa87   :  { %vm1052_vm11 = vcmp.eq.s32.totalorder %v2898_v14, 1  ;;  %v2943_v24 = vsel %vm1045_vm5, %v2888_v43, %v2878_v18 }
 0xa88   :  { %v2950_v10 = vsel %vm1052_vm11, %v2890_v47, %v2885_v51 }
 0xaf4   :  { %v1011_v52 = vpop.permute.xlu1 %1010 }
 0xaf5   :  { %v2900_v54 = vmul.f32 %v2055_v46, %v1011_v52  ;;  %v1036_v57 = vpop.permute.xlu0 %1035 }
 0xaf6   :  { %v2903_v36 = vmul.f32 %v2057_v2, %v1036_v57 }
 0xaf7   :  { %v2910_v38 = vsel %vm1045_vm5, %v2900_v54, %v2841_v5 }
 0xaf8   :  { %1072 = vrot.lane.b32.xlu1 %v2910_v38, %s2154_s1  ;;  %v2918_v58 = vsel %vm1052_vm11, %v2903_v36, %v2849_v50 }
 0xaf9   :  { %1076 = vrot.lane.b32.xlu0 %v2918_v58, %s2153_s10 }
 0xb6a   :  { %v1073_v59 = vpop.permute.xlu1 %1072 }
 0xb6b   :  { %v1077_v60 = vpop.permute.xlu0 %1076 }
 0xb6c   :  { %v1079_v63 = vsel %vm573_vm8, %v1073_v59, %v1077_v60 }
 0xb6d   :  { %1727 = vmatmul.mubr.msk.f32.vlgmr.msra.gmra.mrb[16].mxu1 %vm428_vm10, %v1079_v63 }
 0xb6e   :  { %1907 = vmatpush1.bf16.msra.mxu1 %v2407_v27  ;;  %1298 = vmatprep.mubr.f32.mxu1 %v2150_v7 }
 0xb6f   :  { %1909 = vmatprep.subr.bf16.mxu1 %v2410_v28 }
 0xb72   :  { %1911 = vmatpush1.bf16.msra.mxu1 %v2442_v40 }
 0xb73   :  { %1913 = vmatprep.subr.bf16.mxu1 %v2445_v41 }
 0xb76   :  { %1915 = vmatpush1.bf16.msra.mxu1 %v2477_v55 }
 0xb77   :  { %1917 = vmatprep.subr.bf16.mxu1 %v2480_v56 }
 0xb7a   :  { %1919 = vmatpush1.bf16.msra.mxu1 %v2506_v6 }
 0xb7b   :  { %1921 = vmatprep.subr.bf16.mxu1 %v2375_v15 }
 0xc40   :  { %v1149_v5 = vpop.f32.mrb[16].mxu1 }
 0xc41   :  { %v1154_v50 = vadd.f32 %v1149_v5, %v2642_v11  ;;  %v1151_v35 = vpop.f32.mrb[17].mxu1 }
 0xc42   :  { %v1179_v26 = vadd.f32 %v2668_v49, %v1151_v35 }
 0xc43   :  { %2062 = vtanh.f32 %v1154_v50  ;;  %v1728_v0 = vmul.f32 -1.442695, %v1154_v50 }
 0xc44   :  { %2064 = vtanh.f32 %v1179_v26  ;;  %v1729_v1 = vmul.f32 -1.442695, %v1179_v26 }
 0xc45   :  { %2066 = vpow2.f32 %v1728_v0 }
 0xc46   :  { %2068 = vpow2.f32 %v1729_v1 }
 0xc4d   :  { %v2063_v39 = vpop.eup %2062 }
 0xc4e   :  { %v2065_v20 = vpop.eup %2064  ;;  %1164 = vrot.lane.b32.xlu1 %v2063_v39, %s2153_s10 }
 0xc4f   :  { %1189 = vrot.lane.b32.xlu0 %v2065_v20, %s2153_s10  ;;  %v2067_v46 = vpop.eup %2066 }
 0xc50   :  { %v2069_v15 = vpop.eup %2068  ;;  %v1158_v12 = vadd.f32 1.0, %v2067_v46 }
 0xc51   :  { %v1183_v2 = vadd.f32 1.0, %v2069_v15 }
 0xc52   :  { %2070 = vrcp.f32 %v1158_v12 }
 0xc53   :  { %2072 = vrcp.f32 %v1183_v2 }
 0xc5c   :  { %v2071_v11 = vpop.eup %2070 }
 0xc5d   :  { %v2073_v3 = vpop.eup %2072  ;;  %v1162_v62 = vmul.f32 %v2071_v11, %v2943_v24 }
 0xc5e   :  { %v1187_v42 = vmul.f32 %v2073_v3, %v2950_v10 }
 0xcc0   :  { %v1165_v49 = vpop.permute.xlu1 %1164 }
 0xcc1   :  { %v1167_v8 = vmul.f32 %v2071_v11, %v1165_v49  ;;  %v1190_v9 = vpop.permute.xlu0 %1189 }
 0xcc2   :  { %v1192_v17 = vmul.f32 %v2073_v3, %v1190_v9 }
 0xcc3   :  { %1169 = vrot.lane.b32.xlu1 %v1167_v8, %s2154_s1 }
 0xcc4   :  { %1194 = vrot.lane.b32.xlu0 %v1192_v17, %s2154_s1 }
 0xd35   :  { %v1170_v22 = vpop.permute.xlu1 %1169 }
 0xd36   :  { %v1172_v13 = vadd.f32 %v1170_v22, %v1162_v62  ;;  %v1195_v48 = vpop.permute.xlu0 %1194 }
 0xd37   :  { %v1197_v52 = vadd.f32 %v1195_v48, %v1187_v42 }
 0xd38   :  { %2074 = vtanh.f32 %v1172_v13  ;;  %v1205_v15 = vsel %vm1052_vm11, %v1172_v13, %v2943_v24 }
 0xd39   :  { %2076 = vtanh.f32 %v1197_v52  ;;  %v1207_v2 = vsel %vm1045_vm5, %v1197_v52, %v2950_v10 }
 0xd42   :  { %v2075_v57 = vpop.eup %2074 }
 0xd43   :  { %v2077_v59 = vpop.eup %2076  ;;  %1175 = vrot.lane.b32.xlu1 %v2075_v57, %s2153_s10 }
 0xd44   :  { %1200 = vrot.lane.b32.xlu0 %v2077_v59, %s2153_s10 }
 0xdb5   :  { %v1176_v18 = vpop.permute.xlu1 %1175 }
 0xdb6   :  { %v2955_v43 = vmul.f32 %v2071_v11, %v1176_v18  ;;  %v1201_v60 = vpop.permute.xlu0 %1200 }
 0xdb7   :  { %v2957_v51 = vmul.f32 %v2073_v3, %v1201_v60 }
 0xdb8   :  { %v2963_v47 = vsel %vm1052_vm11, %v2955_v43, %v2910_v38 }
 0xdb9   :  { %1223 = vrot.lane.b32.xlu1 %v2963_v47, %s2154_s1  ;;  %v2971_v63 = vsel %vm1045_vm5, %v2957_v51, %v2918_v58 }
 0xdba   :  { %1227 = vrot.lane.b32.xlu0 %v2971_v63, %s2153_s10 }
 0xe2b   :  { %v1224_v5 = vpop.permute.xlu1 %1223 }
 0xe2c   :  { %v1228_v50 = vpop.permute.xlu0 %1227 }
 0xe2d   :  { %v1230_v35 = vsel %vm573_vm8, %v1224_v5, %v1228_v50 }
 0xe2e   :  { %1732 = vmatmul.mubr.msk.f32.vlgmr.msra.gmra.mrb[18].mxu1 %vm428_vm10, %v1230_v35 }
 0xe2f   :  { %1923 = vmatpush1.bf16.msra.mxu1 %v2407_v27  ;;  %1449 = vmatprep.mubr.f32.mxu1 %v2150_v7 }
 0xe30   :  { %1925 = vmatprep.subr.bf16.mxu1 %v2410_v28 }
 0xe33   :  { %1927 = vmatpush1.bf16.msra.mxu1 %v2442_v40 }
 0xe34   :  { %1929 = vmatprep.subr.bf16.mxu1 %v2445_v41 }
 0xe37   :  { %1931 = vmatpush1.bf16.msra.mxu1 %v2477_v55 }
 0xe38   :  { %1933 = vmatprep.subr.bf16.mxu1 %v2480_v56 }
 0xe3b   :  { %1935 = vmatpush1.bf16.msra.mxu1 %v2506_v6 }
 0xf01   :  { %v1300_v38 = vpop.f32.mrb[18].mxu1 }
 0xf02   :  { %v1305_v58 = vadd.f32 %v1300_v38, %v2646_v19  ;;  %v1302_v26 = vpop.f32.mrb[19].mxu1 }
 0xf03   :  { %v1330_v27 = vadd.f32 %v2664_v44, %v1302_v26 }
 0xf04   :  { %2078 = vtanh.f32 %v1305_v58  ;;  %v1733_v40 = vmul.f32 -1.442695, %v1305_v58 }
 0xf05   :  { %2080 = vtanh.f32 %v1330_v27  ;;  %v1734_v41 = vmul.f32 -1.442695, %v1330_v27 }
 0xf06   :  { %2082 = vpow2.f32 %v1733_v40 }
 0xf07   :  { %2084 = vpow2.f32 %v1734_v41 }
 0xf0e   :  { %v2079_v7 = vpop.eup %2078 }
 0xf0f   :  { %v2081_v28 = vpop.eup %2080  ;;  %1315 = vrot.lane.b32.xlu1 %v2079_v7, %s2153_s10 }
 0xf10   :  { %1340 = vrot.lane.b32.xlu0 %v2081_v28, %s2153_s10  ;;  %v2083_v55 = vpop.eup %2082 }
 0xf11   :  { %v2085_v56 = vpop.eup %2084  ;;  %v1309_v6 = vadd.f32 1.0, %v2083_v55 }
 0xf12   :  { %v1334_v39 = vadd.f32 1.0, %v2085_v56 }
 0xf13   :  { %2086 = vrcp.f32 %v1309_v6 }
 0xf14   :  { %2088 = vrcp.f32 %v1334_v39 }
 0xf1d   :  { %v2087_v19 = vpop.eup %2086 }
 0xf1e   :  { %v2089_v20 = vpop.eup %2088  ;;  %v1313_v12 = vmul.f32 %v2087_v19, %v1205_v15 }
 0xf1f   :  { %v1338_v49 = vmul.f32 %v2089_v20, %v1207_v2 }
 0xf81   :  { %v1316_v44 = vpop.permute.xlu1 %1315 }
 0xf82   :  { %v1318_v0 = vmul.f32 %v2087_v19, %v1316_v44  ;;  %v1341_v1 = vpop.permute.xlu0 %1340 }
 0xf83   :  { %v1343_v46 = vmul.f32 %v2089_v20, %v1341_v1 }
 0xf84   :  { %1320 = vrot.lane.b32.xlu1 %v1318_v0, %s2154_s1 }
 0xf85   :  { %1345 = vrot.lane.b32.xlu0 %v1343_v46, %s2154_s1 }
 0xff6   :  { %v1321_v11 = vpop.permute.xlu1 %1320 }
 0xff7   :  { %v1323_v3 = vadd.f32 %v1321_v11, %v1313_v12  ;;  %v1346_v8 = vpop.permute.xlu0 %1345 }
 0xff8   :  { %v1348_v9 = vadd.f32 %v1346_v8, %v1338_v49 }
 0xff9   :  { %2090 = vtanh.f32 %v1323_v3  ;;  %v1356_v56 = vsel %vm887_vm2, %v1323_v3, %v1205_v15 }
 0xffa   :  { %2092 = vtanh.f32 %v1348_v9  ;;  %v1358_v39 = vsel %vm880_vm1, %v1348_v9, %v1207_v2 }
0x1003   :  { %v2091_v17 = vpop.eup %2090 }
0x1004   :  { %v2093_v62 = vpop.eup %2092  ;;  %1326 = vrot.lane.b32.xlu1 %v2091_v17, %s2153_s10 }
0x1005   :  { %1351 = vrot.lane.b32.xlu0 %v2093_v62, %s2153_s10 }
0x1076   :  { %v1327_v22 = vpop.permute.xlu1 %1326 }
0x1077   :  { %v2999_v24 = vmul.f32 %v2087_v19, %v1327_v22  ;;  %v1352_v42 = vpop.permute.xlu0 %1351 }
0x1078   :  { %v3001_v13 = vmul.f32 %v2089_v20, %v1352_v42 }
0x1079   :  { %v1355_v10 = vsel %vm887_vm2, %v2999_v24, %v2963_v47 }
0x107a   :  { %1374 = vrot.lane.b32.xlu1 %v1355_v10, %s2154_s1  ;;  %v1357_v48 = vsel %vm880_vm1, %v3001_v13, %v2971_v63 }
0x107b   :  { %1378 = vrot.lane.b32.xlu0 %v1357_v48, %s2153_s10 }
0x10ec   :  { %v1375_v52 = vpop.permute.xlu1 %1374 }
0x10ed   :  { %v1379_v57 = vpop.permute.xlu0 %1378 }
0x10ee   :  { %v1381_v59 = vsel %vm573_vm8, %v1375_v52, %v1379_v57 }
0x10ef   :  { %1737 = vmatmul.mubr.msk.f32.vlgmr.msra.gmra.mrb[20].mxu1 %vm428_vm10, %v1381_v59 }
0x11c2   :  { %v1451_v18 = vpop.f32.mrb[20].mxu1 }
0x11c3   :  { %v1456_v60 = vadd.f32 %v1451_v18, %v2650_v25  ;;  %v1453_v5 = vpop.f32.mrb[21].mxu1 }
0x11c4   :  { %v1481_v47 = vadd.f32 %v2660_v37, %v1453_v5 }
0x11c5   :  { %2094 = vtanh.f32 %v1456_v60  ;;  %v1738_v63 = vmul.f32 -1.442695, %v1456_v60 }
0x11c6   :  { %2096 = vtanh.f32 %v1481_v47  ;;  %v1739_v38 = vmul.f32 -1.442695, %v1481_v47 }
0x11c7   :  { %2098 = vpow2.f32 %v1738_v63 }
0x11c8   :  { %2100 = vpow2.f32 %v1739_v38 }
0x11cf   :  { %v2095_v50 = vpop.eup %2094 }
0x11d0   :  { %v2097_v35 = vpop.eup %2096  ;;  %1466 = vrot.lane.b32.xlu1 %v2095_v50, %s2153_s10 }
0x11d1   :  { %1491 = vrot.lane.b32.xlu0 %v2097_v35, %s2153_s10  ;;  %v2099_v58 = vpop.eup %2098 }
0x11d2   :  { %v2101_v26 = vpop.eup %2100  ;;  %v1460_v27 = vadd.f32 1.0, %v2099_v58 }
0x11d3   :  { %v1485_v7 = vadd.f32 1.0, %v2101_v26 }
0x11d4   :  { %2102 = vrcp.f32 %v1460_v27 }
0x11d5   :  { %2104 = vrcp.f32 %v1485_v7 }
0x11de   :  { %v2103_v25 = vpop.eup %2102 }
0x11df   :  { %v2105_v28 = vpop.eup %2104  ;;  %v1464_v6 = vmul.f32 %v2103_v25, %v1356_v56 }
0x11e0   :  { %v1489_v44 = vmul.f32 %v2105_v28, %v1358_v39 }
0x1242   :  { %v1467_v37 = vpop.permute.xlu1 %1466 }
0x1243   :  { %v1469_v40 = vmul.f32 %v2103_v25, %v1467_v37  ;;  %v1492_v41 = vpop.permute.xlu0 %1491 }
0x1244   :  { %v1494_v55 = vmul.f32 %v2105_v28, %v1492_v41 }
0x1245   :  { %1471 = vrot.lane.b32.xlu1 %v1469_v40, %s2154_s1 }
0x1246   :  { %1496 = vrot.lane.b32.xlu0 %v1494_v55, %s2154_s1 }
0x12b7   :  { %v1472_v19 = vpop.permute.xlu1 %1471 }
0x12b8   :  { %v1474_v20 = vadd.f32 %v1472_v19, %v1464_v6  ;;  %v1497_v0 = vpop.permute.xlu0 %1496  ;;  %v897_v19 = vsel %vm887_vm2, %v2834_v61, 0.0  ;;  %v1208_v61 = vsel %vm1052_vm11, %v2955_v43, 0.0 }
0x12b9   :  { %v1499_v1 = vadd.f32 %v1497_v0, %v1489_v44  ;;  %v890_v44 = vsel %vm880_vm1, %v2831_v45, 0.0  ;;  %v1214_v45 = vsel %vm1045_vm5, %v2957_v51, 0.0 }
0x12ba   :  { %2106 = vtanh.f32 %v1474_v20  ;;  %v1507_v26 = vsel %vm722_vm14, %v1474_v20, %v1356_v56  ;;  %v732_v56 = vsel %vm722_vm14, %v2765_v34, 0.0  ;;  %v1062_v34 = vsel %vm1052_vm11, %v2903_v36, 0.0 }
0x12bb   :  { %2108 = vtanh.f32 %v1499_v1  ;;  %v1509_v7 = vsel %vm715_vm13, %v1499_v1, %v1358_v39  ;;  %v725_v39 = vsel %vm715_vm13, %v2762_v4, 0.0  ;;  %v1055_v4 = vsel %vm1045_vm5, %v2900_v54, 0.0 }
0x12bc   :  { %v1359_v36 = vsel %vm887_vm2, %v2999_v24, 0.0  ;;  %v1365_v54 = vsel %vm880_vm1, %v3001_v13, 0.0 }
0x12c4   :  { %v2107_v46 = vpop.eup %2106 }
0x12c5   :  { %v2109_v12 = vpop.eup %2108  ;;  %1477 = vrot.lane.b32.xlu1 %v2107_v46, %s2153_s10 }
0x12c6   :  { %1502 = vrot.lane.b32.xlu0 %v2109_v12, %s2153_s10 }
0x1337   :  { %v1478_v11 = vpop.permute.xlu1 %1477 }
0x1338   :  { %v3027_v49 = vmul.f32 %v2103_v25, %v1478_v11  ;;  %v1503_v15 = vpop.permute.xlu0 %1502 }
0x1339   :  { %v3029_v3 = vmul.f32 %v2105_v28, %v1503_v15 }
0x133a   :  { %v3034_v2 = vsel %vm722_vm14, %v3027_v49, %v1355_v10  ;;  %v1510_v14 = vsel %vm722_vm14, %v3027_v49, 0.0 }
0x133b   :  { %1525 = vrot.lane.b32.xlu1 %v3034_v2, %s2154_s1  ;;  %v3041_v8 = vsel %vm715_vm13, %v3029_v3, %v1357_v48  ;;  %v1516_v21 = vsel %vm715_vm13, %v3029_v3, 0.0 }
0x133c   :  { %1529 = vrot.lane.b32.xlu0 %v3041_v8, %s2153_s10 }
0x13ad   :  { %v1526_v9 = vpop.permute.xlu1 %1525 }
0x13ae   :  { %v1530_v17 = vpop.permute.xlu0 %1529 }
0x13af   :  { %v1532_v62 = vsel %vm573_vm8, %v1526_v9, %v1530_v17 }
0x13b0   :  { %1742 = vmatmul.mubr.msk.f32.vlgmr.msra.gmra.mrb[16].mxu0 %vm428_vm10, %v1532_v62 }
0x1483   :  { %v1602_v22 = vpop.f32.mrb[16].mxu0 }
0x1484   :  { %v1607_v42 = vadd.f32 %v1602_v22, %v2654_v32  ;;  %v1604_v10 = vpop.f32.mrb[17].mxu0 }
0x1485   :  { %v1632_v52 = vadd.f32 %v2656_v33, %v1604_v10 }
0x1486   :  { %2110 = vtanh.f32 %v1607_v42  ;;  %v1743_v59 = vmul.f32 -1.442695, %v1607_v42 }
0x1487   :  { %2112 = vtanh.f32 %v1632_v52  ;;  %v1744_v18 = vmul.f32 -1.442695, %v1632_v52 }
0x1488   :  { %2114 = vpow2.f32 %v1743_v59 }
0x1489   :  { %2116 = vpow2.f32 %v1744_v18 }
0x1490   :  { %v2111_v57 = vpop.eup %2110 }
0x1491   :  { %v2113_v48 = vpop.eup %2112  ;;  %1617 = vrot.lane.b32.xlu1 %v2111_v57, %s2153_s10 }
0x1492   :  { %1642 = vrot.lane.b32.xlu0 %v2113_v48, %s2153_s10  ;;  %v2115_v60 = vpop.eup %2114 }
0x1493   :  { %v2117_v5 = vpop.eup %2116  ;;  %v1611_v47 = vadd.f32 1.0, %v2115_v60 }
0x1494   :  { %v1636_v50 = vadd.f32 1.0, %v2117_v5 }
0x1495   :  { %2118 = vrcp.f32 %v1611_v47 }
0x1496   :  { %2120 = vrcp.f32 %v1636_v50 }
0x149f   :  { %v2119_v32 = vpop.eup %2118 }
0x14a0   :  { %v2121_v35 = vpop.eup %2120  ;;  %v1615_v27 = vmul.f32 %v2119_v32, %v1507_v26 }
0x14a1   :  { %v1640_v37 = vmul.f32 %v2121_v35, %v1509_v7 }
0x1503   :  { %v1618_v33 = vpop.permute.xlu1 %1617 }
0x1504   :  { %v1620_v63 = vmul.f32 %v2119_v32, %v1618_v33  ;;  %v1643_v38 = vpop.permute.xlu0 %1642 }
0x1505   :  { %v1645_v58 = vmul.f32 %v2121_v35, %v1643_v38 }
0x1506   :  { %1622 = vrot.lane.b32.xlu1 %v1620_v63, %s2154_s1 }
0x1507   :  { %1647 = vrot.lane.b32.xlu0 %v1645_v58, %s2154_s1 }
0x1578   :  { %v1623_v25 = vpop.permute.xlu1 %1622 }
0x1579   :  { %v1625_v28 = vadd.f32 %v1623_v25, %v1615_v27  ;;  %v1648_v40 = vpop.permute.xlu0 %1647 }
0x157a   :  { %v1650_v41 = vadd.f32 %v1648_v40, %v1640_v37 }
0x157b   :  { %2122 = vtanh.f32 %v1625_v28 }
0x157c   :  { %2124 = vtanh.f32 %v1650_v41 }
0x1585   :  { %v2123_v55 = vpop.eup %2122 }
0x1586   :  { %v2125_v6 = vpop.eup %2124  ;;  %1628 = vrot.lane.b32.xlu1 %v2123_v55, %s2153_s10 }
0x1587   :  { %1653 = vrot.lane.b32.xlu0 %v2125_v6, %s2153_s10 }
0x158a   :  { %734 = vrot.lane.b32.xlu1 %v732_v56, %s2153_s10 }
0x158b   :  { %727 = vrot.lane.b32.xlu0 %v725_v39, %s2154_s1 }
0x158e   :  { %899 = vrot.lane.b32.xlu1 %v897_v19, %s2153_s10 }
0x158f   :  { %892 = vrot.lane.b32.xlu0 %v890_v44, %s2154_s1 }
0x1592   :  { %1064 = vrot.lane.b32.xlu1 %v1062_v34, %s2153_s10 }
0x1593   :  { %1057 = vrot.lane.b32.xlu0 %v1055_v4, %s2154_s1 }
0x1596   :  { %1210 = vrot.lane.b32.xlu1 %v1208_v61, %s2154_s1 }
0x1597   :  { %1216 = vrot.lane.b32.xlu0 %v1214_v45, %s2153_s10 }
0x159a   :  { %1361 = vrot.lane.b32.xlu1 %v1359_v36, %s2154_s1 }
0x159b   :  { %1367 = vrot.lane.b32.xlu0 %v1365_v54, %s2153_s10 }
0x159e   :  { %1512 = vrot.lane.b32.xlu1 %v1510_v14, %s2154_s1 }
0x159f   :  { %1518 = vrot.lane.b32.xlu0 %v1516_v21, %s2153_s10 }
0x15f8   :  { %v1629_v29 = vpop.permute.xlu1 %1628 }
0x15f9   :  { %v1631_v43 = vmul.f32 %v2119_v32, %v1629_v29  ;;  %v1654_v51 = vpop.permute.xlu0 %1653 }
0x15fa   :  { %v1656_v24 = vmul.f32 %v2121_v35, %v1654_v51 }
0x15fb   :  { %v1657_v16 = vsel %vm566_vm7, %v1631_v43, %v3034_v2  ;;  %v1659_v20 = vsel %vm566_vm7, %v1631_v43, 0.0 }
0x15fc   :  { %1672 = vrot.lane.b32.xlu1 %v1657_v16, %s2154_s1  ;;  %v735_v53 = vpop.permute.xlu1 %734  ;;  %v1658_v13 = vsel %vm559_vm6, %v1656_v24, %v3041_v8  ;;  %v1665_v1 = vsel %vm559_vm6, %v1656_v24, 0.0 }
0x15fd   :  { %1716 = vst.msk [vmem:[%s3196_s5 + $0x30] sm:$0xff] %vm580_vm9, %v735_v53  ;;  %1677 = vrot.lane.b32.xlu0 %v1658_v13, %s2153_s10  ;;  %v728_v23 = vpop.permute.xlu0 %727 }
0x15fe   :  { %1715 = vst.msk [vmem:[%s3196_s5 + $0x8] sm:$0xff] %vm573_vm8, %v728_v23 }
0x1600   :  { %1661 = vrot.lane.b32.xlu1 %v1659_v20, %s2154_s1  ;;  %v900_v0 = vpop.permute.xlu1 %899  ;;  %s2155_s1 = smov [#allocation3]  }
0x1601   :  { %1721 = vst.msk [vmem:[%s3196_s5 + $0x28] sm:$0xff] %vm580_vm9, %v900_v0  ;;  %1667 = vrot.lane.b32.xlu0 %v1665_v1, %s2153_s10  ;;  %v893_v46 = vpop.permute.xlu0 %892  ;;  %s1689_s11 = sshll.u32 %s2155_s1, 4  ;;  %s1690_s11 = int_to_ptr.vmem [resolvable:$true] %s1689_s11 }
0x1602   :  { %1720 = vst.msk [vmem:[%s3196_s5 + $0x10] sm:$0xff] %vm573_vm8, %v893_v46  ;;  %s2126_s12 = scalar_lea.vmem %s1690_s11, 128  ;;  %p2131_p1 = scmp.lt.s32.totalorder %s1690_s11, %s1690_s11 }
0x1603   :  { %p2127_p0 = scmp.ne.s32.totalorder %s1690_s11, %s2126_s12  ;;  %p2132_p2 = scmp.lt.s32.totalorder %s2126_s12, %s2126_s12 }
0x1604   :  { %v1065_v30 = vpop.permute.xlu1 %1064 }
0x1605   :  { %1726 = vst.msk [vmem:[%s3196_s5 + $0x20] sm:$0xff] %vm580_vm9, %v1065_v30  ;;  %v1058_v31 = vpop.permute.xlu0 %1057  ;;  %p2133_p3 = por %p2132_p2, %p2131_p1 }
0x1606   :  { %1725 = vst.msk [vmem:[%s3196_s5 + $0x18] sm:$0xff] %vm573_vm8, %v1058_v31 }
0x1607   :  { %p2134_p4 = pnand %p2133_p3, %p2127_p0 }
0x1608   :  { %v1211_v12 = vpop.permute.xlu1 %1210 }
0x1609   :  { %1730 = vst.msk [vmem:[%s3196_s5 + $0x20] sm:$0xff] %vm573_vm8, %v1211_v12  ;;  %v1217_v11 = vpop.permute.xlu0 %1216 }
0x160a   :  { %1731 = vst.msk [vmem:[%s3196_s5 + $0x18] sm:$0xff] %vm580_vm9, %v1217_v11 }
0x160c   :  { %v1362_v49 = vpop.permute.xlu1 %1361 }
0x160d   :  { %1735 = vst.msk [vmem:[%s3196_s5 + $0x28] sm:$0xff] %vm573_vm8, %v1362_v49  ;;  %v1368_v15 = vpop.permute.xlu0 %1367 }
0x160e   :  { %1736 = vst.msk [vmem:[%s3196_s5 + $0x10] sm:$0xff] %vm580_vm9, %v1368_v15 }
0x1610   :  { %v1513_v3 = vpop.permute.xlu1 %1512 }
0x1611   :  { %1740 = vst.msk [vmem:[%s3196_s5 + $0x30] sm:$0xff] %vm573_vm8, %v1513_v3  ;;  %v1519_v2 = vpop.permute.xlu0 %1518 }
0x1612   :  { %1741 = vst.msk [vmem:[%s3196_s5 + $0x8] sm:$0xff] %vm580_vm9, %v1519_v2 }
0x166e   :  { %v1673_v8 = vpop.permute.xlu1 %1672 }
0x166f   :  { %1675 = vst.msk [vmem:[#allocation3] sm:$0xff] %vm573_vm8, %v1673_v8  ;;  %v1678_v9 = vpop.permute.xlu0 %1677 }
0x1670   :  { %1680 = vst.msk [vmem:[#allocation3] sm:$0xff] %vm580_vm9, %v1678_v9 }
0x1671   :  { %2137 = shalt.err (!%p2134_p4)
}
0x1672   :  { %s2138_s15 = scalar_lea.hbm %s3197_s6, 128 }
0x1673   :  { %p2139_p5 = scmp.ne.s32.totalorder %s3197_s6, %s2138_s15  ;;  %p2142_p6 = scmp.lt.u32.totalorder %s2138_s15, %s3197_s6 }
0x1675   :  { %p2144_p7 = pnand %p2142_p6, %p2139_p5 }
0x1677   :  { %2147 = shalt.err (!%p2144_p7)
}
0x1678   :  { %1692 = dma.vmem_to_hbm [thread:$0]  %s1690_s11, 128, %s3197_s6, [#allocation4]   ;;  %v1662_v17 = vpop.permute.xlu1 %1661  ;;  %v1668_v62 = vpop.permute.xlu0 %1667 }
0x1679   :  { %1745 = vst.msk [vmem:[%s3196_s5 + $0x38] sm:$0xff] %vm573_vm8, %v1662_v17 }
0x167a   :  { %1670 = vst.msk [vmem:[%s3196_s5] sm:$0xff] %vm580_vm9, %v1668_v62 }
0x167b   :  { %2148 = dma.done.wait [#allocation4], 128  }
0x167c   :  { %2149 = vsyncadd [#allocation4], 4294967168 }
0x167d   :  { %1698 = vsyncpa [#allocation4], 1 }

</bundles_post_ra>
